<compile_context>
chip_gen: v7x
topology: tpu7x:2x2x1
jax: 0.10.0
libtpu: 0.0.40
codegen_flags: <defaults>
</compile_context>

<pallas_src>
import functools

import jax
import jax.numpy as jnp
from jax import lax
from jax.experimental import pallas as pl
from jax.experimental.pallas import tpu as pltpu

_EPS = 1e-5


def _bn_act(y, gamma, beta, groups, activation):
    """Training-mode BatchNorm2d + activation on a column-grouped layout.

    y:      (M, K) f32 with K = groups * cout; column j holds channel (j % cout)
    gamma:  (1, cout) f32 BN weight
    beta:   (1, cout) f32 BN bias
    Batch statistics are over all M * groups values per channel — exactly
    PyTorch BatchNorm2d training mode (biased variance, eps = 1e-5).
    """
    m, k = y.shape
    cout = k // groups
    inv_n = 1.0 / float(m * groups)

    # Single pass over y: per-column sum and sum-of-squares, packed into (2, K).
    colsum = jnp.sum(y, axis=0, keepdims=True)
    colsq = jnp.sum(y * y, axis=0, keepdims=True)
    stats = jnp.concatenate([colsum, colsq], axis=0)               # (2, K)

    if groups == 1:
        stats_c = stats                                            # columns == channels
    else:
        # Fold the `groups` column-blocks per channel with one small MXU call.
        # One-hot G[col, ch] = 1 iff col == ch + g*cout for some g, built from
        # iotas in-kernel (no DMA'd input, no integer division/mod).
        col = lax.broadcasted_iota(jnp.int32, (k, cout), 0)
        ch = lax.broadcasted_iota(jnp.int32, (k, cout), 1)
        hit = col == ch
        for g in range(1, groups):
            hit = jnp.logical_or(hit, col == ch + g * cout)
        fold = hit.astype(jnp.float32)                             # (K, cout)
        stats_c = jnp.dot(stats, fold, preferred_element_type=jnp.float32)  # (2, cout)

    mean_c = stats_c[0:1, :] * inv_n
    var_c = jnp.maximum(stats_c[1:2, :] * inv_n - mean_c * mean_c, 0.0)
    inv_std = lax.rsqrt(var_c + _EPS)
    scale_c = gamma * inv_std                                      # (1, cout)
    shift_c = beta - mean_c * scale_c                              # (1, cout)
    packed = jnp.concatenate([scale_c, shift_c], axis=0)           # (2, cout)

    if groups == 1:
        cols = packed
    else:
        # Broadcast channel scale/shift back to all K columns with one packed
        # MXU call against the transposed one-hot.
        colt = lax.broadcasted_iota(jnp.int32, (cout, k), 1)
        cht = lax.broadcasted_iota(jnp.int32, (cout, k), 0)
        hit_t = colt == cht
        for g in range(1, groups):
            hit_t = jnp.logical_or(hit_t, colt == cht + g * cout)
        unfold = hit_t.astype(jnp.float32)                         # (cout, K)
        cols = jnp.dot(packed, unfold, preferred_element_type=jnp.float32)  # (2, K)

    out = y * cols[0:1, :] + cols[1:2, :]
    if activation == "relu":
        return jnp.maximum(out, 0.0)
    return jax.nn.sigmoid(out)


def _decoder_fused_kernel(x_ref, w1_ref, w2_ref, w3_ref, w4_ref,
                          g1_ref, b1_ref, g2_ref, b2_ref,
                          g3_ref, b3_ref, g4_ref, b4_ref,
                          o_ref, *, ss2, ss3):
    """Fused m1 -> m2 -> m3 -> bottle forward on one (M0, ...) row block.

    Rows stay the N*d*d input pixels for the whole kernel; the k*k
    sub-positions of strided ConvTranspose layers accumulate as column groups
    (block-diagonal weights), so no in-kernel pixel-shuffle is needed.
    """
    # m1: ConvT(256->128, k=1) + BN + ReLU
    y = jnp.dot(x_ref[...], w1_ref[...], preferred_element_type=jnp.float32)
    a = _bn_act(y, g1_ref[...], b1_ref[...], groups=1, activation="relu")

    # m2: ConvT(128->64, k=s2) + BN + ReLU          (columns: ss2 groups x 64)
    y = jnp.dot(a.astype(jnp.bfloat16), w2_ref[...],
                preferred_element_type=jnp.float32)
    a = _bn_act(y, g2_ref[...], b2_ref[...], groups=ss2, activation="relu")

    # m3: ConvT(64->32, k=s3) + BN + ReLU           (columns: ss2*ss3 groups x 32)
    y = jnp.dot(a.astype(jnp.bfloat16), w3_ref[...],
                preferred_element_type=jnp.float32)
    a = _bn_act(y, g3_ref[...], b3_ref[...], groups=ss2 * ss3, activation="relu")

    # bottle: ConvT(32->C, k=1) + BN + Sigmoid      (columns: ss2*ss3 groups x C)
    y = jnp.dot(a.astype(jnp.bfloat16), w4_ref[...],
                preferred_element_type=jnp.float32)
    o_ref[...] = _bn_act(y, g4_ref[...], b4_ref[...], groups=ss2 * ss3,
                         activation="sigmoid")


def _decoder_forward(x, params, *, d, s2, s3, color_channels):
    ss2, ss3 = s2 * s2, s3 * s3
    x4 = x.reshape(-1, 256, d, d)                    # == x.view(-1, 256, d, d)
    n = x4.shape[0]
    m0 = n * d * d
    # NCHW -> flattened NHWC pixel rows (rows = (n, i0, j0), cols = channel).
    rows = jnp.transpose(x4, (0, 2, 3, 1)).reshape(m0, 256).astype(jnp.bfloat16)

    k_out = ss2 * ss3 * color_channels
    kernel = functools.partial(_decoder_fused_kernel, ss2=ss2, ss3=ss3)
    out2d = pl.pallas_call(
        kernel,
        out_shape=jax.ShapeDtypeStruct((m0, k_out), jnp.float32),
        in_specs=[pl.BlockSpec(memory_space=pltpu.MemorySpace.VMEM)] * 13,
        out_specs=pl.BlockSpec(memory_space=pltpu.MemorySpace.VMEM),
    )(rows, params["w1"], params["w2"], params["w3"], params["w4"],
      params["g1"], params["b1"], params["g2"], params["b2"],
      params["g3"], params["b3"], params["g4"], params["b4"])

    # Un-scramble accumulated sub-positions back to spatial NCHW (a few KB):
    #   out[n, c, (i0*s2+di1)*s3+di2, (j0*s2+dj1)*s3+dj2]
    #     = out2d[(n*d+i0)*d + j0, ((di1*s2+dj1)*ss3 + di2*s3+dj2)*C + c]
    out = out2d.reshape(n, d, d, s2, s2, s3, s3, color_channels)
    out = jnp.transpose(out, (0, 7, 1, 3, 5, 2, 4, 6))
    return out.reshape(n, color_channels, d * s2 * s3, d * s2 * s3)


def _reorder_convt_weight(w):
    """(Cin, Cout, k, k) ConvTranspose2d weight -> (Cin, k*k*Cout), columns
    ordered (sub-position di*k+dj, output channel)."""
    cin, cout, k, _ = w.shape
    return jnp.transpose(w, (0, 2, 3, 1)).reshape(cin, k * k * cout)


class Decoder:
    """JAX/Pallas port of the PyTorch Decoder (m1 -> m2 -> m3 -> bottle)."""

    def __init__(self, color_channels, pooling_kernels, decoder_input_size, key):
        self.decoder_input_size = decoder_input_size
        s2 = pooling_kernels[1]        # m2 stride
        s3 = pooling_kernels[0]        # m3 stride
        ss2, ss3 = s2 * s2, s3 * s3

        specs = [
            (256, 128, 1),             # m1
            (128, 64, s2),             # m2
            (64, 32, s3),              # m3
            (32, color_channels, 1),   # bottle
        ]
        raw = []
        for cin, cout, k in specs:
            key, wk = jax.random.split(key)
            bound = 1.0 / float(cin * k * k) ** 0.5
            raw.append(jax.random.uniform(wk, (cin, cout, k, k), jnp.float32,
                                          -bound, bound))
        # ConvTranspose2d bias is intentionally omitted: a per-channel constant
        # added before training-mode BatchNorm cancels exactly.

        w1 = _reorder_convt_weight(raw[0])                         # (256, 128)
        w2 = _reorder_convt_weight(raw[1])                         # (128, ss2*64)
        # Later layers act independently per accumulated sub-position group:
        # block-diagonal weights keep each fused layer a single plain matmul.
        w3 = jnp.kron(jnp.eye(ss2, dtype=jnp.float32),
                      _reorder_convt_weight(raw[2]))               # (ss2*64, ss2*ss3*32)
        w4 = jnp.kron(jnp.eye(ss2 * ss3, dtype=jnp.float32),
                      _reorder_convt_weight(raw[3]))               # (ss2*ss3*32, ss2*ss3*C)

        self.params = {
            "w1": w1.astype(jnp.bfloat16),
            "w2": w2.astype(jnp.bfloat16),
            "w3": w3.astype(jnp.bfloat16),
            "w4": w4.astype(jnp.bfloat16),
        }
        for i, (_, cout, _) in enumerate(specs, start=1):
            self.params[f"g{i}"] = jnp.ones((1, cout), jnp.float32)   # BN weight
            self.params[f"b{i}"] = jnp.zeros((1, cout), jnp.float32)  # BN bias

        self._forward = jax.jit(functools.partial(
            _decoder_forward, d=decoder_input_size, s2=s2, s3=s3,
            color_channels=color_channels))

    def __call__(self, x):
        return self._forward(x, self.params)


if __name__ == "__main__":
    key = jax.random.PRNGKey(0)
    pkey, xkey = jax.random.split(key)

    color_channels = 3
    pooling_kernels = (2, 2)
    decoder_input_size = 4
    batch = 2

    dec = Decoder(color_channels, pooling_kernels, decoder_input_size, pkey)

    # Latent input; forward() views it as (-1, 256, d, d).
    x = jax.random.normal(
        xkey, (batch, 256 * decoder_input_size * decoder_input_size), jnp.float32)

    out = dec(x)
    out = jax.block_until_ready(out)

    hw = decoder_input_size * pooling_kernels[0] * pooling_kernels[1]
    assert out.shape == (batch, color_channels, hw, hw), out.shape
    assert bool(jnp.all(jnp.isfinite(out)))
    assert bool(jnp.all((out >= 0.0) & (out <= 1.0)))  # sigmoid output range
    print("KERNEL_OK")
</pallas_src>

<mosaic_0001>
module attributes {stable_mosaic.version = 11 : i64} {
  func.func @_decoder_fused_kernel(%arg0: memref<32x256xbf16, #tpu.memory_space<vmem>>, %arg1: memref<256x128xbf16, #tpu.memory_space<vmem>>, %arg2: memref<128x256xbf16, #tpu.memory_space<vmem>>, %arg3: memref<256x512xbf16, #tpu.memory_space<vmem>>, %arg4: memref<512x48xbf16, #tpu.memory_space<vmem>>, %arg5: memref<1x128xf32, #tpu.memory_space<vmem>>, %arg6: memref<1x128xf32, #tpu.memory_space<vmem>>, %arg7: memref<1x64xf32, #tpu.memory_space<vmem>>, %arg8: memref<1x64xf32, #tpu.memory_space<vmem>>, %arg9: memref<1x32xf32, #tpu.memory_space<vmem>>, %arg10: memref<1x32xf32, #tpu.memory_space<vmem>>, %arg11: memref<1x3xf32, #tpu.memory_space<vmem>>, %arg12: memref<1x3xf32, #tpu.memory_space<vmem>>, %arg13: memref<32x48xf32, #tpu.memory_space<vmem>>) attributes {dimension_semantics = [], scalar_prefetch = 0 : i64, scratch_operands = 0 : i64, tpu.core_type = #tpu.core_type<tc>} {
    %c0 = arith.constant 0 : index
    %c0_0 = arith.constant 0 : index
    %0 = vector.load %arg0[%c0, %c0_0] : memref<32x256xbf16, #tpu.memory_space<vmem>>, vector<32x256xbf16>
    %c0_1 = arith.constant 0 : index
    %c0_2 = arith.constant 0 : index
    %1 = vector.load %arg1[%c0_1, %c0_2] : memref<256x128xbf16, #tpu.memory_space<vmem>>, vector<256x128xbf16>
    %cst = arith.constant dense<0.000000e+00> : vector<32x128xf32>
    %2 = tpu.matmul %0, %1, %cst {dimension_numbers = #tpu.dot_dimension_numbers<[1], [0], [0], [1], [0, 0, 1, 1], [], []>} : vector<32x256xbf16>, vector<256x128xbf16>, vector<32x128xf32> -> vector<32x128xf32>
    %c0_3 = arith.constant 0 : index
    %c0_4 = arith.constant 0 : index
    %3 = vector.load %arg5[%c0_3, %c0_4] : memref<1x128xf32, #tpu.memory_space<vmem>>, vector<1x128xf32>
    %c0_5 = arith.constant 0 : index
    %c0_6 = arith.constant 0 : index
    %4 = vector.load %arg6[%c0_5, %c0_6] : memref<1x128xf32, #tpu.memory_space<vmem>>, vector<1x128xf32>
    %cst_7 = arith.constant dense<0.000000e+00> : vector<128xf32>
    %5 = vector.multi_reduction <add>, %2, %cst_7 [0] : vector<32x128xf32> to vector<128xf32>
    %6 = vector.shape_cast %5 : vector<128xf32> to vector<1x128xf32>
    %7 = arith.mulf %2, %2 : vector<32x128xf32>
    %cst_8 = arith.constant dense<0.000000e+00> : vector<128xf32>
    %8 = vector.multi_reduction <add>, %7, %cst_8 [0] : vector<32x128xf32> to vector<128xf32>
    %9 = vector.shape_cast %8 : vector<128xf32> to vector<1x128xf32>
    %10 = tpu.concatenate %6, %9 in 0 : vector<1x128xf32>, vector<1x128xf32> -> vector<2x128xf32>
    %11 = vector.extract_strided_slice %10 {offsets = [0, 0], sizes = [1, 128], strides = [1, 1]} : vector<2x128xf32> to vector<1x128xf32>
    %cst_9 = arith.constant 3.125000e-02 : f32
    %12 = vector.broadcast %cst_9 : f32 to vector<1x128xf32>
    %13 = arith.mulf %11, %12 : vector<1x128xf32>
    %14 = vector.extract_strided_slice %10 {offsets = [1, 0], sizes = [1, 128], strides = [1, 1]} : vector<2x128xf32> to vector<1x128xf32>
    %cst_10 = arith.constant 3.125000e-02 : f32
    %15 = vector.broadcast %cst_10 : f32 to vector<1x128xf32>
    %16 = arith.mulf %14, %15 : vector<1x128xf32>
    %17 = arith.mulf %13, %13 : vector<1x128xf32>
    %18 = arith.subf %16, %17 : vector<1x128xf32>
    %cst_11 = arith.constant 0.000000e+00 : f32
    %19 = vector.broadcast %cst_11 : f32 to vector<1x128xf32>
    %20 = arith.maximumf %18, %19 : vector<1x128xf32>
    %cst_12 = arith.constant 9.99999974E-6 : f32
    %21 = vector.broadcast %cst_12 : f32 to vector<1x128xf32>
    %22 = arith.addf %20, %21 : vector<1x128xf32>
    %23 = math.rsqrt %22 : vector<1x128xf32>
    %24 = arith.mulf %3, %23 : vector<1x128xf32>
    %25 = arith.mulf %13, %24 : vector<1x128xf32>
    %26 = arith.subf %4, %25 : vector<1x128xf32>
    %27 = tpu.concatenate %24, %26 in 0 : vector<1x128xf32>, vector<1x128xf32> -> vector<2x128xf32>
    %28 = vector.extract_strided_slice %27 {offsets = [0, 0], sizes = [1, 128], strides = [1, 1]} : vector<2x128xf32> to vector<1x128xf32>
    %29 = vector.broadcast %28 : vector<1x128xf32> to vector<32x128xf32>
    %30 = arith.mulf %2, %29 : vector<32x128xf32>
    %31 = vector.extract_strided_slice %27 {offsets = [1, 0], sizes = [1, 128], strides = [1, 1]} : vector<2x128xf32> to vector<1x128xf32>
    %32 = vector.broadcast %31 : vector<1x128xf32> to vector<32x128xf32>
    %33 = arith.addf %30, %32 : vector<32x128xf32>
    %cst_13 = arith.constant 0.000000e+00 : f32
    %34 = vector.broadcast %cst_13 : f32 to vector<32x128xf32>
    %35 = arith.maximumf %33, %34 : vector<32x128xf32>
    %36 = arith.truncf %35 : vector<32x128xf32> to vector<32x128xbf16>
    %c0_14 = arith.constant 0 : index
    %c0_15 = arith.constant 0 : index
    %37 = vector.load %arg2[%c0_14, %c0_15] : memref<128x256xbf16, #tpu.memory_space<vmem>>, vector<128x256xbf16>
    %cst_16 = arith.constant dense<0.000000e+00> : vector<32x256xf32>
    %38 = tpu.matmul %36, %37, %cst_16 {dimension_numbers = #tpu.dot_dimension_numbers<[1], [0], [0], [1], [0, 0, 1, 1], [], []>} : vector<32x128xbf16>, vector<128x256xbf16>, vector<32x256xf32> -> vector<32x256xf32>
    %c0_17 = arith.constant 0 : index
    %c0_18 = arith.constant 0 : index
    %39 = vector.load %arg7[%c0_17, %c0_18] : memref<1x64xf32, #tpu.memory_space<vmem>>, vector<1x64xf32>
    %c0_19 = arith.constant 0 : index
    %c0_20 = arith.constant 0 : index
    %40 = vector.load %arg8[%c0_19, %c0_20] : memref<1x64xf32, #tpu.memory_space<vmem>>, vector<1x64xf32>
    %cst_21 = arith.constant dense<0.000000e+00> : vector<256xf32>
    %41 = vector.multi_reduction <add>, %38, %cst_21 [0] : vector<32x256xf32> to vector<256xf32>
    %42 = vector.shape_cast %41 : vector<256xf32> to vector<1x256xf32>
    %43 = arith.mulf %38, %38 : vector<32x256xf32>
    %cst_22 = arith.constant dense<0.000000e+00> : vector<256xf32>
    %44 = vector.multi_reduction <add>, %43, %cst_22 [0] : vector<32x256xf32> to vector<256xf32>
    %45 = vector.shape_cast %44 : vector<256xf32> to vector<1x256xf32>
    %46 = tpu.concatenate %42, %45 in 0 : vector<1x256xf32>, vector<1x256xf32> -> vector<2x256xf32>
    %47 = tpu.iota {dimensions = array<i32: 0>} : vector<256x64xi32>
    %48 = tpu.iota {dimensions = array<i32: 1>} : vector<256x64xi32>
    %49 = arith.cmpi eq, %47, %48 : vector<256x64xi32>
    %c64_i32 = arith.constant 64 : i32
    %50 = vector.broadcast %c64_i32 : i32 to vector<256x64xi32>
    %51 = arith.addi %48, %50 : vector<256x64xi32>
    %52 = arith.cmpi eq, %47, %51 : vector<256x64xi32>
    %53 = arith.ori %49, %52 : vector<256x64xi1>
    %c128_i32 = arith.constant 128 : i32
    %54 = vector.broadcast %c128_i32 : i32 to vector<256x64xi32>
    %55 = arith.addi %48, %54 : vector<256x64xi32>
    %56 = arith.cmpi eq, %47, %55 : vector<256x64xi32>
    %57 = arith.ori %53, %56 : vector<256x64xi1>
    %c192_i32 = arith.constant 192 : i32
    %58 = vector.broadcast %c192_i32 : i32 to vector<256x64xi32>
    %59 = arith.addi %48, %58 : vector<256x64xi32>
    %60 = arith.cmpi eq, %47, %59 : vector<256x64xi32>
    %61 = arith.ori %57, %60 : vector<256x64xi1>
    %62 = arith.extui %61 : vector<256x64xi1> to vector<256x64xi32>
    %63 = arith.sitofp %62 : vector<256x64xi32> to vector<256x64xf32>
    %cst_23 = arith.constant dense<0.000000e+00> : vector<2x64xf32>
    %64 = tpu.matmul %46, %63, %cst_23 {dimension_numbers = #tpu.dot_dimension_numbers<[1], [0], [0], [1], [0, 0, 1, 1], [], []>} : vector<2x256xf32>, vector<256x64xf32>, vector<2x64xf32> -> vector<2x64xf32>
    %65 = vector.extract_strided_slice %64 {offsets = [0, 0], sizes = [1, 64], strides = [1, 1]} : vector<2x64xf32> to vector<1x64xf32>
    %cst_24 = arith.constant 7.812500e-03 : f32
    %66 = vector.broadcast %cst_24 : f32 to vector<1x64xf32>
    %67 = arith.mulf %65, %66 : vector<1x64xf32>
    %68 = vector.extract_strided_slice %64 {offsets = [1, 0], sizes = [1, 64], strides = [1, 1]} : vector<2x64xf32> to vector<1x64xf32>
    %cst_25 = arith.constant 7.812500e-03 : f32
    %69 = vector.broadcast %cst_25 : f32 to vector<1x64xf32>
    %70 = arith.mulf %68, %69 : vector<1x64xf32>
    %71 = arith.mulf %67, %67 : vector<1x64xf32>
    %72 = arith.subf %70, %71 : vector<1x64xf32>
    %cst_26 = arith.constant 0.000000e+00 : f32
    %73 = vector.broadcast %cst_26 : f32 to vector<1x64xf32>
    %74 = arith.maximumf %72, %73 : vector<1x64xf32>
    %cst_27 = arith.constant 9.99999974E-6 : f32
    %75 = vector.broadcast %cst_27 : f32 to vector<1x64xf32>
    %76 = arith.addf %74, %75 : vector<1x64xf32>
    %77 = math.rsqrt %76 : vector<1x64xf32>
    %78 = arith.mulf %39, %77 : vector<1x64xf32>
    %79 = arith.mulf %67, %78 : vector<1x64xf32>
    %80 = arith.subf %40, %79 : vector<1x64xf32>
    %81 = tpu.concatenate %78, %80 in 0 : vector<1x64xf32>, vector<1x64xf32> -> vector<2x64xf32>
    %82 = tpu.iota {dimensions = array<i32: 1>} : vector<64x256xi32>
    %83 = tpu.iota {dimensions = array<i32: 0>} : vector<64x256xi32>
    %84 = arith.cmpi eq, %82, %83 : vector<64x256xi32>
    %c64_i32_28 = arith.constant 64 : i32
    %85 = vector.broadcast %c64_i32_28 : i32 to vector<64x256xi32>
    %86 = arith.addi %83, %85 : vector<64x256xi32>
    %87 = arith.cmpi eq, %82, %86 : vector<64x256xi32>
    %88 = arith.ori %84, %87 : vector<64x256xi1>
    %c128_i32_29 = arith.constant 128 : i32
    %89 = vector.broadcast %c128_i32_29 : i32 to vector<64x256xi32>
    %90 = arith.addi %83, %89 : vector<64x256xi32>
    %91 = arith.cmpi eq, %82, %90 : vector<64x256xi32>
    %92 = arith.ori %88, %91 : vector<64x256xi1>
    %c192_i32_30 = arith.constant 192 : i32
    %93 = vector.broadcast %c192_i32_30 : i32 to vector<64x256xi32>
    %94 = arith.addi %83, %93 : vector<64x256xi32>
    %95 = arith.cmpi eq, %82, %94 : vector<64x256xi32>
    %96 = arith.ori %92, %95 : vector<64x256xi1>
    %97 = arith.extui %96 : vector<64x256xi1> to vector<64x256xi32>
    %98 = arith.sitofp %97 : vector<64x256xi32> to vector<64x256xf32>
    %cst_31 = arith.constant dense<0.000000e+00> : vector<2x256xf32>
    %99 = tpu.matmul %81, %98, %cst_31 {dimension_numbers = #tpu.dot_dimension_numbers<[1], [0], [0], [1], [0, 0, 1, 1], [], []>} : vector<2x64xf32>, vector<64x256xf32>, vector<2x256xf32> -> vector<2x256xf32>
    %100 = vector.extract_strided_slice %99 {offsets = [0, 0], sizes = [1, 256], strides = [1, 1]} : vector<2x256xf32> to vector<1x256xf32>
    %101 = vector.broadcast %100 : vector<1x256xf32> to vector<32x256xf32>
    %102 = arith.mulf %38, %101 : vector<32x256xf32>
    %103 = vector.extract_strided_slice %99 {offsets = [1, 0], sizes = [1, 256], strides = [1, 1]} : vector<2x256xf32> to vector<1x256xf32>
    %104 = vector.broadcast %103 : vector<1x256xf32> to vector<32x256xf32>
    %105 = arith.addf %102, %104 : vector<32x256xf32>
    %cst_32 = arith.constant 0.000000e+00 : f32
    %106 = vector.broadcast %cst_32 : f32 to vector<32x256xf32>
    %107 = arith.maximumf %105, %106 : vector<32x256xf32>
    %108 = arith.truncf %107 : vector<32x256xf32> to vector<32x256xbf16>
    %c0_33 = arith.constant 0 : index
    %c0_34 = arith.constant 0 : index
    %109 = vector.load %arg3[%c0_33, %c0_34] : memref<256x512xbf16, #tpu.memory_space<vmem>>, vector<256x512xbf16>
    %cst_35 = arith.constant dense<0.000000e+00> : vector<32x512xf32>
    %110 = tpu.matmul %108, %109, %cst_35 {dimension_numbers = #tpu.dot_dimension_numbers<[1], [0], [0], [1], [0, 0, 1, 1], [], []>} : vector<32x256xbf16>, vector<256x512xbf16>, vector<32x512xf32> -> vector<32x512xf32>
    %c0_36 = arith.constant 0 : index
    %c0_37 = arith.constant 0 : index
    %111 = vector.load %arg9[%c0_36, %c0_37] : memref<1x32xf32, #tpu.memory_space<vmem>>, vector<1x32xf32>
    %c0_38 = arith.constant 0 : index
    %c0_39 = arith.constant 0 : index
    %112 = vector.load %arg10[%c0_38, %c0_39] : memref<1x32xf32, #tpu.memory_space<vmem>>, vector<1x32xf32>
    %cst_40 = arith.constant dense<0.000000e+00> : vector<512xf32>
    %113 = vector.multi_reduction <add>, %110, %cst_40 [0] : vector<32x512xf32> to vector<512xf32>
    %114 = vector.shape_cast %113 : vector<512xf32> to vector<1x512xf32>
    %115 = arith.mulf %110, %110 : vector<32x512xf32>
    %cst_41 = arith.constant dense<0.000000e+00> : vector<512xf32>
    %116 = vector.multi_reduction <add>, %115, %cst_41 [0] : vector<32x512xf32> to vector<512xf32>
    %117 = vector.shape_cast %116 : vector<512xf32> to vector<1x512xf32>
    %118 = tpu.concatenate %114, %117 in 0 : vector<1x512xf32>, vector<1x512xf32> -> vector<2x512xf32>
    %119 = tpu.iota {dimensions = array<i32: 0>} : vector<512x32xi32>
    %120 = tpu.iota {dimensions = array<i32: 1>} : vector<512x32xi32>
    %121 = arith.cmpi eq, %119, %120 : vector<512x32xi32>
    %c32_i32 = arith.constant 32 : i32
    %122 = vector.broadcast %c32_i32 : i32 to vector<512x32xi32>
    %123 = arith.addi %120, %122 : vector<512x32xi32>
    %124 = arith.cmpi eq, %119, %123 : vector<512x32xi32>
    %125 = arith.ori %121, %124 : vector<512x32xi1>
    %c64_i32_42 = arith.constant 64 : i32
    %126 = vector.broadcast %c64_i32_42 : i32 to vector<512x32xi32>
    %127 = arith.addi %120, %126 : vector<512x32xi32>
    %128 = arith.cmpi eq, %119, %127 : vector<512x32xi32>
    %129 = arith.ori %125, %128 : vector<512x32xi1>
    %c96_i32 = arith.constant 96 : i32
    %130 = vector.broadcast %c96_i32 : i32 to vector<512x32xi32>
    %131 = arith.addi %120, %130 : vector<512x32xi32>
    %132 = arith.cmpi eq, %119, %131 : vector<512x32xi32>
    %133 = arith.ori %129, %132 : vector<512x32xi1>
    %c128_i32_43 = arith.constant 128 : i32
    %134 = vector.broadcast %c128_i32_43 : i32 to vector<512x32xi32>
    %135 = arith.addi %120, %134 : vector<512x32xi32>
    %136 = arith.cmpi eq, %119, %135 : vector<512x32xi32>
    %137 = arith.ori %133, %136 : vector<512x32xi1>
    %c160_i32 = arith.constant 160 : i32
    %138 = vector.broadcast %c160_i32 : i32 to vector<512x32xi32>
    %139 = arith.addi %120, %138 : vector<512x32xi32>
    %140 = arith.cmpi eq, %119, %139 : vector<512x32xi32>
    %141 = arith.ori %137, %140 : vector<512x32xi1>
    %c192_i32_44 = arith.constant 192 : i32
    %142 = vector.broadcast %c192_i32_44 : i32 to vector<512x32xi32>
    %143 = arith.addi %120, %142 : vector<512x32xi32>
    %144 = arith.cmpi eq, %119, %143 : vector<512x32xi32>
    %145 = arith.ori %141, %144 : vector<512x32xi1>
    %c224_i32 = arith.constant 224 : i32
    %146 = vector.broadcast %c224_i32 : i32 to vector<512x32xi32>
    %147 = arith.addi %120, %146 : vector<512x32xi32>
    %148 = arith.cmpi eq, %119, %147 : vector<512x32xi32>
    %149 = arith.ori %145, %148 : vector<512x32xi1>
    %c256_i32 = arith.constant 256 : i32
    %150 = vector.broadcast %c256_i32 : i32 to vector<512x32xi32>
    %151 = arith.addi %120, %150 : vector<512x32xi32>
    %152 = arith.cmpi eq, %119, %151 : vector<512x32xi32>
    %153 = arith.ori %149, %152 : vector<512x32xi1>
    %c288_i32 = arith.constant 288 : i32
    %154 = vector.broadcast %c288_i32 : i32 to vector<512x32xi32>
    %155 = arith.addi %120, %154 : vector<512x32xi32>
    %156 = arith.cmpi eq, %119, %155 : vector<512x32xi32>
    %157 = arith.ori %153, %156 : vector<512x32xi1>
    %c320_i32 = arith.constant 320 : i32
    %158 = vector.broadcast %c320_i32 : i32 to vector<512x32xi32>
    %159 = arith.addi %120, %158 : vector<512x32xi32>
    %160 = arith.cmpi eq, %119, %159 : vector<512x32xi32>
    %161 = arith.ori %157, %160 : vector<512x32xi1>
    %c352_i32 = arith.constant 352 : i32
    %162 = vector.broadcast %c352_i32 : i32 to vector<512x32xi32>
    %163 = arith.addi %120, %162 : vector<512x32xi32>
    %164 = arith.cmpi eq, %119, %163 : vector<512x32xi32>
    %165 = arith.ori %161, %164 : vector<512x32xi1>
    %c384_i32 = arith.constant 384 : i32
    %166 = vector.broadcast %c384_i32 : i32 to vector<512x32xi32>
    %167 = arith.addi %120, %166 : vector<512x32xi32>
    %168 = arith.cmpi eq, %119, %167 : vector<512x32xi32>
    %169 = arith.ori %165, %168 : vector<512x32xi1>
    %c416_i32 = arith.constant 416 : i32
    %170 = vector.broadcast %c416_i32 : i32 to vector<512x32xi32>
    %171 = arith.addi %120, %170 : vector<512x32xi32>
    %172 = arith.cmpi eq, %119, %171 : vector<512x32xi32>
    %173 = arith.ori %169, %172 : vector<512x32xi1>
    %c448_i32 = arith.constant 448 : i32
    %174 = vector.broadcast %c448_i32 : i32 to vector<512x32xi32>
    %175 = arith.addi %120, %174 : vector<512x32xi32>
    %176 = arith.cmpi eq, %119, %175 : vector<512x32xi32>
    %177 = arith.ori %173, %176 : vector<512x32xi1>
    %c480_i32 = arith.constant 480 : i32
    %178 = vector.broadcast %c480_i32 : i32 to vector<512x32xi32>
    %179 = arith.addi %120, %178 : vector<512x32xi32>
    %180 = arith.cmpi eq, %119, %179 : vector<512x32xi32>
    %181 = arith.ori %177, %180 : vector<512x32xi1>
    %182 = arith.extui %181 : vector<512x32xi1> to vector<512x32xi32>
    %183 = arith.sitofp %182 : vector<512x32xi32> to vector<512x32xf32>
    %cst_45 = arith.constant dense<0.000000e+00> : vector<2x32xf32>
    %184 = tpu.matmul %118, %183, %cst_45 {dimension_numbers = #tpu.dot_dimension_numbers<[1], [0], [0], [1], [0, 0, 1, 1], [], []>} : vector<2x512xf32>, vector<512x32xf32>, vector<2x32xf32> -> vector<2x32xf32>
    %185 = vector.extract_strided_slice %184 {offsets = [0, 0], sizes = [1, 32], strides = [1, 1]} : vector<2x32xf32> to vector<1x32xf32>
    %cst_46 = arith.constant 0.001953125 : f32
    %186 = vector.broadcast %cst_46 : f32 to vector<1x32xf32>
    %187 = arith.mulf %185, %186 : vector<1x32xf32>
    %188 = vector.extract_strided_slice %184 {offsets = [1, 0], sizes = [1, 32], strides = [1, 1]} : vector<2x32xf32> to vector<1x32xf32>
    %cst_47 = arith.constant 0.001953125 : f32
    %189 = vector.broadcast %cst_47 : f32 to vector<1x32xf32>
    %190 = arith.mulf %188, %189 : vector<1x32xf32>
    %191 = arith.mulf %187, %187 : vector<1x32xf32>
    %192 = arith.subf %190, %191 : vector<1x32xf32>
    %cst_48 = arith.constant 0.000000e+00 : f32
    %193 = vector.broadcast %cst_48 : f32 to vector<1x32xf32>
    %194 = arith.maximumf %192, %193 : vector<1x32xf32>
    %cst_49 = arith.constant 9.99999974E-6 : f32
    %195 = vector.broadcast %cst_49 : f32 to vector<1x32xf32>
    %196 = arith.addf %194, %195 : vector<1x32xf32>
    %197 = math.rsqrt %196 : vector<1x32xf32>
    %198 = arith.mulf %111, %197 : vector<1x32xf32>
    %199 = arith.mulf %187, %198 : vector<1x32xf32>
    %200 = arith.subf %112, %199 : vector<1x32xf32>
    %201 = tpu.concatenate %198, %200 in 0 : vector<1x32xf32>, vector<1x32xf32> -> vector<2x32xf32>
    %202 = tpu.iota {dimensions = array<i32: 1>} : vector<32x512xi32>
    %203 = tpu.iota {dimensions = array<i32: 0>} : vector<32x512xi32>
    %204 = arith.cmpi eq, %202, %203 : vector<32x512xi32>
    %c32_i32_50 = arith.constant 32 : i32
    %205 = vector.broadcast %c32_i32_50 : i32 to vector<32x512xi32>
    %206 = arith.addi %203, %205 : vector<32x512xi32>
    %207 = arith.cmpi eq, %202, %206 : vector<32x512xi32>
    %208 = arith.ori %204, %207 : vector<32x512xi1>
    %c64_i32_51 = arith.constant 64 : i32
    %209 = vector.broadcast %c64_i32_51 : i32 to vector<32x512xi32>
    %210 = arith.addi %203, %209 : vector<32x512xi32>
    %211 = arith.cmpi eq, %202, %210 : vector<32x512xi32>
    %212 = arith.ori %208, %211 : vector<32x512xi1>
    %c96_i32_52 = arith.constant 96 : i32
    %213 = vector.broadcast %c96_i32_52 : i32 to vector<32x512xi32>
    %214 = arith.addi %203, %213 : vector<32x512xi32>
    %215 = arith.cmpi eq, %202, %214 : vector<32x512xi32>
    %216 = arith.ori %212, %215 : vector<32x512xi1>
    %c128_i32_53 = arith.constant 128 : i32
    %217 = vector.broadcast %c128_i32_53 : i32 to vector<32x512xi32>
    %218 = arith.addi %203, %217 : vector<32x512xi32>
    %219 = arith.cmpi eq, %202, %218 : vector<32x512xi32>
    %220 = arith.ori %216, %219 : vector<32x512xi1>
    %c160_i32_54 = arith.constant 160 : i32
    %221 = vector.broadcast %c160_i32_54 : i32 to vector<32x512xi32>
    %222 = arith.addi %203, %221 : vector<32x512xi32>
    %223 = arith.cmpi eq, %202, %222 : vector<32x512xi32>
    %224 = arith.ori %220, %223 : vector<32x512xi1>
    %c192_i32_55 = arith.constant 192 : i32
    %225 = vector.broadcast %c192_i32_55 : i32 to vector<32x512xi32>
    %226 = arith.addi %203, %225 : vector<32x512xi32>
    %227 = arith.cmpi eq, %202, %226 : vector<32x512xi32>
    %228 = arith.ori %224, %227 : vector<32x512xi1>
    %c224_i32_56 = arith.constant 224 : i32
    %229 = vector.broadcast %c224_i32_56 : i32 to vector<32x512xi32>
    %230 = arith.addi %203, %229 : vector<32x512xi32>
    %231 = arith.cmpi eq, %202, %230 : vector<32x512xi32>
    %232 = arith.ori %228, %231 : vector<32x512xi1>
    %c256_i32_57 = arith.constant 256 : i32
    %233 = vector.broadcast %c256_i32_57 : i32 to vector<32x512xi32>
    %234 = arith.addi %203, %233 : vector<32x512xi32>
    %235 = arith.cmpi eq, %202, %234 : vector<32x512xi32>
    %236 = arith.ori %232, %235 : vector<32x512xi1>
    %c288_i32_58 = arith.constant 288 : i32
    %237 = vector.broadcast %c288_i32_58 : i32 to vector<32x512xi32>
    %238 = arith.addi %203, %237 : vector<32x512xi32>
    %239 = arith.cmpi eq, %202, %238 : vector<32x512xi32>
    %240 = arith.ori %236, %239 : vector<32x512xi1>
    %c320_i32_59 = arith.constant 320 : i32
    %241 = vector.broadcast %c320_i32_59 : i32 to vector<32x512xi32>
    %242 = arith.addi %203, %241 : vector<32x512xi32>
    %243 = arith.cmpi eq, %202, %242 : vector<32x512xi32>
    %244 = arith.ori %240, %243 : vector<32x512xi1>
    %c352_i32_60 = arith.constant 352 : i32
    %245 = vector.broadcast %c352_i32_60 : i32 to vector<32x512xi32>
    %246 = arith.addi %203, %245 : vector<32x512xi32>
    %247 = arith.cmpi eq, %202, %246 : vector<32x512xi32>
    %248 = arith.ori %244, %247 : vector<32x512xi1>
    %c384_i32_61 = arith.constant 384 : i32
    %249 = vector.broadcast %c384_i32_61 : i32 to vector<32x512xi32>
    %250 = arith.addi %203, %249 : vector<32x512xi32>
    %251 = arith.cmpi eq, %202, %250 : vector<32x512xi32>
    %252 = arith.ori %248, %251 : vector<32x512xi1>
    %c416_i32_62 = arith.constant 416 : i32
    %253 = vector.broadcast %c416_i32_62 : i32 to vector<32x512xi32>
    %254 = arith.addi %203, %253 : vector<32x512xi32>
    %255 = arith.cmpi eq, %202, %254 : vector<32x512xi32>
    %256 = arith.ori %252, %255 : vector<32x512xi1>
    %c448_i32_63 = arith.constant 448 : i32
    %257 = vector.broadcast %c448_i32_63 : i32 to vector<32x512xi32>
    %258 = arith.addi %203, %257 : vector<32x512xi32>
    %259 = arith.cmpi eq, %202, %258 : vector<32x512xi32>
    %260 = arith.ori %256, %259 : vector<32x512xi1>
    %c480_i32_64 = arith.constant 480 : i32
    %261 = vector.broadcast %c480_i32_64 : i32 to vector<32x512xi32>
    %262 = arith.addi %203, %261 : vector<32x512xi32>
    %263 = arith.cmpi eq, %202, %262 : vector<32x512xi32>
    %264 = arith.ori %260, %263 : vector<32x512xi1>
    %265 = arith.extui %264 : vector<32x512xi1> to vector<32x512xi32>
    %266 = arith.sitofp %265 : vector<32x512xi32> to vector<32x512xf32>
    %cst_65 = arith.constant dense<0.000000e+00> : vector<2x512xf32>
    %267 = tpu.matmul %201, %266, %cst_65 {dimension_numbers = #tpu.dot_dimension_numbers<[1], [0], [0], [1], [0, 0, 1, 1], [], []>} : vector<2x32xf32>, vector<32x512xf32>, vector<2x512xf32> -> vector<2x512xf32>
    %268 = vector.extract_strided_slice %267 {offsets = [0, 0], sizes = [1, 512], strides = [1, 1]} : vector<2x512xf32> to vector<1x512xf32>
    %269 = vector.broadcast %268 : vector<1x512xf32> to vector<32x512xf32>
    %270 = arith.mulf %110, %269 : vector<32x512xf32>
    %271 = vector.extract_strided_slice %267 {offsets = [1, 0], sizes = [1, 512], strides = [1, 1]} : vector<2x512xf32> to vector<1x512xf32>
    %272 = vector.broadcast %271 : vector<1x512xf32> to vector<32x512xf32>
    %273 = arith.addf %270, %272 : vector<32x512xf32>
    %cst_66 = arith.constant 0.000000e+00 : f32
    %274 = vector.broadcast %cst_66 : f32 to vector<32x512xf32>
    %275 = arith.maximumf %273, %274 : vector<32x512xf32>
    %276 = arith.truncf %275 : vector<32x512xf32> to vector<32x512xbf16>
    %c0_67 = arith.constant 0 : index
    %c0_68 = arith.constant 0 : index
    %277 = vector.load %arg4[%c0_67, %c0_68] : memref<512x48xbf16, #tpu.memory_space<vmem>>, vector<512x48xbf16>
    %cst_69 = arith.constant dense<0.000000e+00> : vector<32x48xf32>
    %278 = tpu.matmul %276, %277, %cst_69 {dimension_numbers = #tpu.dot_dimension_numbers<[1], [0], [0], [1], [0, 0, 1, 1], [], []>} : vector<32x512xbf16>, vector<512x48xbf16>, vector<32x48xf32> -> vector<32x48xf32>
    %c0_70 = arith.constant 0 : index
    %c0_71 = arith.constant 0 : index
    %279 = vector.load %arg11[%c0_70, %c0_71] : memref<1x3xf32, #tpu.memory_space<vmem>>, vector<1x3xf32>
    %c0_72 = arith.constant 0 : index
    %c0_73 = arith.constant 0 : index
    %280 = vector.load %arg12[%c0_72, %c0_73] : memref<1x3xf32, #tpu.memory_space<vmem>>, vector<1x3xf32>
    %cst_74 = arith.constant dense<0.000000e+00> : vector<48xf32>
    %281 = vector.multi_reduction <add>, %278, %cst_74 [0] : vector<32x48xf32> to vector<48xf32>
    %282 = vector.shape_cast %281 : vector<48xf32> to vector<1x48xf32>
    %283 = arith.mulf %278, %278 : vector<32x48xf32>
    %cst_75 = arith.constant dense<0.000000e+00> : vector<48xf32>
    %284 = vector.multi_reduction <add>, %283, %cst_75 [0] : vector<32x48xf32> to vector<48xf32>
    %285 = vector.shape_cast %284 : vector<48xf32> to vector<1x48xf32>
    %286 = tpu.concatenate %282, %285 in 0 : vector<1x48xf32>, vector<1x48xf32> -> vector<2x48xf32>
    %287 = tpu.iota {dimensions = array<i32: 0>} : vector<48x3xi32>
    %288 = tpu.iota {dimensions = array<i32: 1>} : vector<48x3xi32>
    %289 = arith.cmpi eq, %287, %288 : vector<48x3xi32>
    %c3_i32 = arith.constant 3 : i32
    %290 = vector.broadcast %c3_i32 : i32 to vector<48x3xi32>
    %291 = arith.addi %288, %290 : vector<48x3xi32>
    %292 = arith.cmpi eq, %287, %291 : vector<48x3xi32>
    %293 = arith.ori %289, %292 : vector<48x3xi1>
    %c6_i32 = arith.constant 6 : i32
    %294 = vector.broadcast %c6_i32 : i32 to vector<48x3xi32>
    %295 = arith.addi %288, %294 : vector<48x3xi32>
    %296 = arith.cmpi eq, %287, %295 : vector<48x3xi32>
    %297 = arith.ori %293, %296 : vector<48x3xi1>
    %c9_i32 = arith.constant 9 : i32
    %298 = vector.broadcast %c9_i32 : i32 to vector<48x3xi32>
    %299 = arith.addi %288, %298 : vector<48x3xi32>
    %300 = arith.cmpi eq, %287, %299 : vector<48x3xi32>
    %301 = arith.ori %297, %300 : vector<48x3xi1>
    %c12_i32 = arith.constant 12 : i32
    %302 = vector.broadcast %c12_i32 : i32 to vector<48x3xi32>
    %303 = arith.addi %288, %302 : vector<48x3xi32>
    %304 = arith.cmpi eq, %287, %303 : vector<48x3xi32>
    %305 = arith.ori %301, %304 : vector<48x3xi1>
    %c15_i32 = arith.constant 15 : i32
    %306 = vector.broadcast %c15_i32 : i32 to vector<48x3xi32>
    %307 = arith.addi %288, %306 : vector<48x3xi32>
    %308 = arith.cmpi eq, %287, %307 : vector<48x3xi32>
    %309 = arith.ori %305, %308 : vector<48x3xi1>
    %c18_i32 = arith.constant 18 : i32
    %310 = vector.broadcast %c18_i32 : i32 to vector<48x3xi32>
    %311 = arith.addi %288, %310 : vector<48x3xi32>
    %312 = arith.cmpi eq, %287, %311 : vector<48x3xi32>
    %313 = arith.ori %309, %312 : vector<48x3xi1>
    %c21_i32 = arith.constant 21 : i32
    %314 = vector.broadcast %c21_i32 : i32 to vector<48x3xi32>
    %315 = arith.addi %288, %314 : vector<48x3xi32>
    %316 = arith.cmpi eq, %287, %315 : vector<48x3xi32>
    %317 = arith.ori %313, %316 : vector<48x3xi1>
    %c24_i32 = arith.constant 24 : i32
    %318 = vector.broadcast %c24_i32 : i32 to vector<48x3xi32>
    %319 = arith.addi %288, %318 : vector<48x3xi32>
    %320 = arith.cmpi eq, %287, %319 : vector<48x3xi32>
    %321 = arith.ori %317, %320 : vector<48x3xi1>
    %c27_i32 = arith.constant 27 : i32
    %322 = vector.broadcast %c27_i32 : i32 to vector<48x3xi32>
    %323 = arith.addi %288, %322 : vector<48x3xi32>
    %324 = arith.cmpi eq, %287, %323 : vector<48x3xi32>
    %325 = arith.ori %321, %324 : vector<48x3xi1>
    %c30_i32 = arith.constant 30 : i32
    %326 = vector.broadcast %c30_i32 : i32 to vector<48x3xi32>
    %327 = arith.addi %288, %326 : vector<48x3xi32>
    %328 = arith.cmpi eq, %287, %327 : vector<48x3xi32>
    %329 = arith.ori %325, %328 : vector<48x3xi1>
    %c33_i32 = arith.constant 33 : i32
    %330 = vector.broadcast %c33_i32 : i32 to vector<48x3xi32>
    %331 = arith.addi %288, %330 : vector<48x3xi32>
    %332 = arith.cmpi eq, %287, %331 : vector<48x3xi32>
    %333 = arith.ori %329, %332 : vector<48x3xi1>
    %c36_i32 = arith.constant 36 : i32
    %334 = vector.broadcast %c36_i32 : i32 to vector<48x3xi32>
    %335 = arith.addi %288, %334 : vector<48x3xi32>
    %336 = arith.cmpi eq, %287, %335 : vector<48x3xi32>
    %337 = arith.ori %333, %336 : vector<48x3xi1>
    %c39_i32 = arith.constant 39 : i32
    %338 = vector.broadcast %c39_i32 : i32 to vector<48x3xi32>
    %339 = arith.addi %288, %338 : vector<48x3xi32>
    %340 = arith.cmpi eq, %287, %339 : vector<48x3xi32>
    %341 = arith.ori %337, %340 : vector<48x3xi1>
    %c42_i32 = arith.constant 42 : i32
    %342 = vector.broadcast %c42_i32 : i32 to vector<48x3xi32>
    %343 = arith.addi %288, %342 : vector<48x3xi32>
    %344 = arith.cmpi eq, %287, %343 : vector<48x3xi32>
    %345 = arith.ori %341, %344 : vector<48x3xi1>
    %c45_i32 = arith.constant 45 : i32
    %346 = vector.broadcast %c45_i32 : i32 to vector<48x3xi32>
    %347 = arith.addi %288, %346 : vector<48x3xi32>
    %348 = arith.cmpi eq, %287, %347 : vector<48x3xi32>
    %349 = arith.ori %345, %348 : vector<48x3xi1>
    %350 = arith.extui %349 : vector<48x3xi1> to vector<48x3xi32>
    %351 = arith.sitofp %350 : vector<48x3xi32> to vector<48x3xf32>
    %cst_76 = arith.constant dense<0.000000e+00> : vector<2x3xf32>
    %352 = tpu.matmul %286, %351, %cst_76 {dimension_numbers = #tpu.dot_dimension_numbers<[1], [0], [0], [1], [0, 0, 1, 1], [], []>} : vector<2x48xf32>, vector<48x3xf32>, vector<2x3xf32> -> vector<2x3xf32>
    %353 = vector.extract_strided_slice %352 {offsets = [0, 0], sizes = [1, 3], strides = [1, 1]} : vector<2x3xf32> to vector<1x3xf32>
    %cst_77 = arith.constant 0.001953125 : f32
    %354 = vector.broadcast %cst_77 : f32 to vector<1x3xf32>
    %355 = arith.mulf %353, %354 : vector<1x3xf32>
    %356 = vector.extract_strided_slice %352 {offsets = [1, 0], sizes = [1, 3], strides = [1, 1]} : vector<2x3xf32> to vector<1x3xf32>
    %cst_78 = arith.constant 0.001953125 : f32
    %357 = vector.broadcast %cst_78 : f32 to vector<1x3xf32>
    %358 = arith.mulf %356, %357 : vector<1x3xf32>
    %359 = arith.mulf %355, %355 : vector<1x3xf32>
    %360 = arith.subf %358, %359 : vector<1x3xf32>
    %cst_79 = arith.constant 0.000000e+00 : f32
    %361 = vector.broadcast %cst_79 : f32 to vector<1x3xf32>
    %362 = arith.maximumf %360, %361 : vector<1x3xf32>
    %cst_80 = arith.constant 9.99999974E-6 : f32
    %363 = vector.broadcast %cst_80 : f32 to vector<1x3xf32>
    %364 = arith.addf %362, %363 : vector<1x3xf32>
    %365 = math.rsqrt %364 : vector<1x3xf32>
    %366 = arith.mulf %279, %365 : vector<1x3xf32>
    %367 = arith.mulf %355, %366 : vector<1x3xf32>
    %368 = arith.subf %280, %367 : vector<1x3xf32>
    %369 = tpu.concatenate %366, %368 in 0 : vector<1x3xf32>, vector<1x3xf32> -> vector<2x3xf32>
    %370 = tpu.iota {dimensions = array<i32: 1>} : vector<3x48xi32>
    %371 = tpu.iota {dimensions = array<i32: 0>} : vector<3x48xi32>
    %372 = arith.cmpi eq, %370, %371 : vector<3x48xi32>
    %c3_i32_81 = arith.constant 3 : i32
    %373 = vector.broadcast %c3_i32_81 : i32 to vector<3x48xi32>
    %374 = arith.addi %371, %373 : vector<3x48xi32>
    %375 = arith.cmpi eq, %370, %374 : vector<3x48xi32>
    %376 = arith.ori %372, %375 : vector<3x48xi1>
    %c6_i32_82 = arith.constant 6 : i32
    %377 = vector.broadcast %c6_i32_82 : i32 to vector<3x48xi32>
    %378 = arith.addi %371, %377 : vector<3x48xi32>
    %379 = arith.cmpi eq, %370, %378 : vector<3x48xi32>
    %380 = arith.ori %376, %379 : vector<3x48xi1>
    %c9_i32_83 = arith.constant 9 : i32
    %381 = vector.broadcast %c9_i32_83 : i32 to vector<3x48xi32>
    %382 = arith.addi %371, %381 : vector<3x48xi32>
    %383 = arith.cmpi eq, %370, %382 : vector<3x48xi32>
    %384 = arith.ori %380, %383 : vector<3x48xi1>
    %c12_i32_84 = arith.constant 12 : i32
    %385 = vector.broadcast %c12_i32_84 : i32 to vector<3x48xi32>
    %386 = arith.addi %371, %385 : vector<3x48xi32>
    %387 = arith.cmpi eq, %370, %386 : vector<3x48xi32>
    %388 = arith.ori %384, %387 : vector<3x48xi1>
    %c15_i32_85 = arith.constant 15 : i32
    %389 = vector.broadcast %c15_i32_85 : i32 to vector<3x48xi32>
    %390 = arith.addi %371, %389 : vector<3x48xi32>
    %391 = arith.cmpi eq, %370, %390 : vector<3x48xi32>
    %392 = arith.ori %388, %391 : vector<3x48xi1>
    %c18_i32_86 = arith.constant 18 : i32
    %393 = vector.broadcast %c18_i32_86 : i32 to vector<3x48xi32>
    %394 = arith.addi %371, %393 : vector<3x48xi32>
    %395 = arith.cmpi eq, %370, %394 : vector<3x48xi32>
    %396 = arith.ori %392, %395 : vector<3x48xi1>
    %c21_i32_87 = arith.constant 21 : i32
    %397 = vector.broadcast %c21_i32_87 : i32 to vector<3x48xi32>
    %398 = arith.addi %371, %397 : vector<3x48xi32>
    %399 = arith.cmpi eq, %370, %398 : vector<3x48xi32>
    %400 = arith.ori %396, %399 : vector<3x48xi1>
    %c24_i32_88 = arith.constant 24 : i32
    %401 = vector.broadcast %c24_i32_88 : i32 to vector<3x48xi32>
    %402 = arith.addi %371, %401 : vector<3x48xi32>
    %403 = arith.cmpi eq, %370, %402 : vector<3x48xi32>
    %404 = arith.ori %400, %403 : vector<3x48xi1>
    %c27_i32_89 = arith.constant 27 : i32
    %405 = vector.broadcast %c27_i32_89 : i32 to vector<3x48xi32>
    %406 = arith.addi %371, %405 : vector<3x48xi32>
    %407 = arith.cmpi eq, %370, %406 : vector<3x48xi32>
    %408 = arith.ori %404, %407 : vector<3x48xi1>
    %c30_i32_90 = arith.constant 30 : i32
    %409 = vector.broadcast %c30_i32_90 : i32 to vector<3x48xi32>
    %410 = arith.addi %371, %409 : vector<3x48xi32>
    %411 = arith.cmpi eq, %370, %410 : vector<3x48xi32>
    %412 = arith.ori %408, %411 : vector<3x48xi1>
    %c33_i32_91 = arith.constant 33 : i32
    %413 = vector.broadcast %c33_i32_91 : i32 to vector<3x48xi32>
    %414 = arith.addi %371, %413 : vector<3x48xi32>
    %415 = arith.cmpi eq, %370, %414 : vector<3x48xi32>
    %416 = arith.ori %412, %415 : vector<3x48xi1>
    %c36_i32_92 = arith.constant 36 : i32
    %417 = vector.broadcast %c36_i32_92 : i32 to vector<3x48xi32>
    %418 = arith.addi %371, %417 : vector<3x48xi32>
    %419 = arith.cmpi eq, %370, %418 : vector<3x48xi32>
    %420 = arith.ori %416, %419 : vector<3x48xi1>
    %c39_i32_93 = arith.constant 39 : i32
    %421 = vector.broadcast %c39_i32_93 : i32 to vector<3x48xi32>
    %422 = arith.addi %371, %421 : vector<3x48xi32>
    %423 = arith.cmpi eq, %370, %422 : vector<3x48xi32>
    %424 = arith.ori %420, %423 : vector<3x48xi1>
    %c42_i32_94 = arith.constant 42 : i32
    %425 = vector.broadcast %c42_i32_94 : i32 to vector<3x48xi32>
    %426 = arith.addi %371, %425 : vector<3x48xi32>
    %427 = arith.cmpi eq, %370, %426 : vector<3x48xi32>
    %428 = arith.ori %424, %427 : vector<3x48xi1>
    %c45_i32_95 = arith.constant 45 : i32
    %429 = vector.broadcast %c45_i32_95 : i32 to vector<3x48xi32>
    %430 = arith.addi %371, %429 : vector<3x48xi32>
    %431 = arith.cmpi eq, %370, %430 : vector<3x48xi32>
    %432 = arith.ori %428, %431 : vector<3x48xi1>
    %433 = arith.extui %432 : vector<3x48xi1> to vector<3x48xi32>
    %434 = arith.sitofp %433 : vector<3x48xi32> to vector<3x48xf32>
    %cst_96 = arith.constant dense<0.000000e+00> : vector<2x48xf32>
    %435 = tpu.matmul %369, %434, %cst_96 {dimension_numbers = #tpu.dot_dimension_numbers<[1], [0], [0], [1], [0, 0, 1, 1], [], []>} : vector<2x3xf32>, vector<3x48xf32>, vector<2x48xf32> -> vector<2x48xf32>
    %436 = vector.extract_strided_slice %435 {offsets = [0, 0], sizes = [1, 48], strides = [1, 1]} : vector<2x48xf32> to vector<1x48xf32>
    %437 = vector.broadcast %436 : vector<1x48xf32> to vector<32x48xf32>
    %438 = arith.mulf %278, %437 : vector<32x48xf32>
    %439 = vector.extract_strided_slice %435 {offsets = [1, 0], sizes = [1, 48], strides = [1, 1]} : vector<2x48xf32> to vector<1x48xf32>
    %440 = vector.broadcast %439 : vector<1x48xf32> to vector<32x48xf32>
    %441 = arith.addf %438, %440 : vector<32x48xf32>
    %442 = arith.negf %441 : vector<32x48xf32>
    %443 = math.exp %442 : vector<32x48xf32>
    %cst_97 = arith.constant 1.000000e+00 : f32
    %444 = vector.broadcast %cst_97 : f32 to vector<32x48xf32>
    %445 = arith.addf %444, %443 : vector<32x48xf32>
    %446 = arith.divf %444, %445 : vector<32x48xf32>
    %c0_98 = arith.constant 0 : index
    %c0_99 = arith.constant 0 : index
    %447 = vector.load %arg13[%c0_98, %c0_99] : memref<32x48xf32, #tpu.memory_space<vmem>>, vector<32x48xf32>
    tpu.vector_store %arg13[%c0_98, %c0_99], %446 {strides = array<i32>} : memref<32x48xf32, #tpu.memory_space<vmem>>, vector<32x48xf32>,
    return
  }
}

</mosaic_0001>

<bundles_post_ra>
// kernel: _decoder_forward.1
= control target key start
LH: loop header
LB: loop body
LE: loop exit
PB: predicated region body
PF: predicated region fallthrough
CT: control target
= control target key end

     0   :  { %v6638_v36 = vmov 0   ;;  %v285_v37 = vlaneseq  ;;  %v9161_v45 = vmov 0  ;;  %v9072_v46 = vmov 1.0|1.0   ;;  %s9007_s1 = inlined_call_operand.vmem [shape: bf16[256,128], index: 1, kind: input, shape index: {}]   ;;  %s9008_s0 = inlined_call_operand.vmem [shape: bf16[32,256], index: 0, kind: input, shape index: {}]   ;;  %s9009_s2 = inlined_call_operand.vmem [shape: bf16[128,256], index: 2, kind: input, shape index: {}]   ;;  %s9010_s5 = inlined_call_operand.vmem [shape: f32[1,128], index: 5, kind: input, shape index: {}]   ;;  %s9011_s6 = inlined_call_operand.vmem [shape: f32[1,128], index: 6, kind: input, shape index: {}]   ;;  %s9012_s3 = inlined_call_operand.vmem [shape: bf16[256,512], index: 3, kind: input, shape index: {}]   ;;  %s9013_s7 = inlined_call_operand.vmem [shape: f32[1,64], index: 7, kind: input, shape index: {}]   ;;  %s9014_s8 = inlined_call_operand.vmem [shape: f32[1,64], index: 8, kind: input, shape index: {}]   ;;  %s9015_s4 = inlined_call_operand.vmem [shape: bf16[512,48], index: 4, kind: input, shape index: {}]   ;;  %s9016_s9 = inlined_call_operand.vmem [shape: f32[1,32], index: 9, kind: input, shape index: {}]   ;;  %s9017_s10 = inlined_call_operand.vmem [shape: f32[1,32], index: 10, kind: input, shape index: {}]   ;;  %s9018_s11 = inlined_call_operand.vmem [shape: f32[1,3], index: 11, kind: input, shape index: {}]   ;;  %s9019_s12 = inlined_call_operand.vmem [shape: f32[1,3], index: 12, kind: input, shape index: {}]   ;;  %s9020_s13 = inlined_call_operand.vmem [shape: f32[32,48], index: 13, kind: output, shape index: {}]  }
   0x1   :  { %v6440_v0 = vld [vmem:[%s9007_s1 + $0x40] sm:$0xff]   ;;  %v6442_v2 = vld [vmem:[%s9007_s1 + $0x48] sm:$0xff]   ;;  %v6444_v4 = vld [vmem:[%s9007_s1 + $0x50] sm:$0xff]   ;;  %458 = vmatprep.mubr.bf16.mxu1 %v6638_v36  ;;  %vm9119_vm10 = vcmask 1040384  }
   0x2   :  { %v6441_v1 = vld [vmem:[%s9007_s1] sm:$0xff]   ;;  %6076 = vmatprep.subr.bf16.mxu0 %v6440_v0  ;;  %v6443_v3 = vld [vmem:[%s9007_s1 + $0x8] sm:$0xff]   ;;  %v6445_v5 = vld [vmem:[%s9007_s1 + $0x10] sm:$0xff]   ;;  %v6825_v38 = vshrl.u32 %v285_v37, 7  ;;  %v6833_v41 = vand.u32 127, %v285_v37 }
   0x3   :  { %6077 = vmatpush3.bf16.msra.mxu0 %v6441_v1  ;;  %v6446_v6 = vld [vmem:[%s9007_s1 + $0x58] sm:$0xff]   ;;  %v6448_v8 = vld [vmem:[%s9007_s1 + $0x60] sm:$0xff]   ;;  %v6450_v10 = vld [vmem:[%s9007_s1 + $0x68] sm:$0xff]  }
   0x4   :  { %6078 = vmatprep.subr.bf16.mxu0 %v6442_v2  ;;  %v6447_v7 = vld [vmem:[%s9007_s1 + $0x18] sm:$0xff]   ;;  %v6449_v9 = vld [vmem:[%s9007_s1 + $0x20] sm:$0xff]   ;;  %v6451_v12 = vld [vmem:[%s9007_s1 + $0x28] sm:$0xff]   ;;  %v6828_v39 = vadd.s32 128, %v6825_v38  ;;  %v6831_v40 = vadd.s32 136, %v6825_v38  ;;  %v6836_v42 = vadd.s32 8, %v6825_v38  ;;  %vm9021_vm0 = vcmp.eq.s32.totalorder %v6825_v38, %v6833_v41 }
   0x5   :  { %v6458_v11 = vld [vmem:[%s9008_s0 + $0x4] ss:$8 sps:$4 sm:$0xff]   ;;  %v6452_v13 = vld [vmem:[%s9007_s1 + $0x70] sm:$0xff]   ;;  %v6454_v15 = vld [vmem:[%s9007_s1 + $0x78] sm:$0xff]   ;;  %v6839_v43 = vadd.s32 64, %v6833_v41  ;;  %v6842_v44 = vadd.s32 128, %v6833_v41 }
   0x6   :  { %229 = vmatprep.mubr.bf16.mxu0 %v6458_v11  ;;  %v6453_v14 = vld [vmem:[%s9007_s1 + $0x30] sm:$0xff]   ;;  %v6455_v16 = vld [vmem:[%s9007_s1 + $0x38] sm:$0xff]   ;;  %v6456_v17 = vld [vmem:[%s9008_s0] ss:$8 sps:$4 sm:$0xff]   ;;  %vm9022_vm1 = vcmp.eq.s32.totalorder %v6836_v42, %v6833_v41  ;;  %v6900_v37 = vsub.s32 0, %v6825_v38 }
   0x7   :  { %6079 = vmatpush3.bf16.msra.mxu0 %v6443_v3  ;;  %v6459_v18 = vld [vmem:[%s9008_s0 + $0x14] ss:$8 sps:$4 sm:$0xff]   ;;  %v6461_v19 = vld [vmem:[%s9008_s0 + $0x10] ss:$8 sps:$4 sm:$0xff]   ;;  %v6462_v20 = vld [vmem:[%s9009_s2 + $0x4] ss:$8 sps:$4 sm:$0xff]   ;;  %vm9118_vm2 = vcmp.eq.s32.totalorder %v6828_v39, %v6839_v43  ;;  %vm9117_vm3 = vcmp.eq.s32.totalorder %v6831_v40, %v6839_v43  ;;  %vm9038_vm4 = vcmp.eq.s32.totalorder %v6828_v39, %v6842_v44  ;;  %vm9037_vm5 = vcmp.eq.s32.totalorder %v6831_v40, %v6842_v44 }
   0x8   :  { %6080 = vmatprep.subr.bf16.mxu0 %v6444_v4  ;;  %v6464_v21 = vld [vmem:[%s9009_s2] ss:$8 sps:$4 sm:$0xff]   ;;  %426 = vmatprep.subr.bf16.mxu1 %v6462_v20  ;;  %v6465_v22 = vld [vmem:[%s9009_s2 + $0x14] ss:$8 sps:$4 sm:$0xff]   ;;  %v6467_v23 = vld [vmem:[%s9009_s2 + $0x10] ss:$8 sps:$4 sm:$0xff]  }
   0x9   :  { %427 = vmatpush1.bf16.msra.mxu1 %v6464_v21  ;;  %v6468_v24 = vld [vmem:[%s9009_s2 + $0x24] ss:$8 sps:$4 sm:$0xff]   ;;  %v6470_v25 = vld [vmem:[%s9009_s2 + $0x20] ss:$8 sps:$4 sm:$0xff]   ;;  %v6471_v26 = vld [vmem:[%s9009_s2 + $0x34] ss:$8 sps:$4 sm:$0xff]  }
   0xa   :  { %428 = vmatprep.subr.bf16.mxu1 %v6465_v22  ;;  %v6473_v27 = vld [vmem:[%s9009_s2 + $0x30] ss:$8 sps:$4 sm:$0xff]   ;;  %v6474_v28 = vld [vmem:[%s9009_s2 + $0x44] ss:$8 sps:$4 sm:$0xff]   ;;  %v6476_v29 = vld [vmem:[%s9009_s2 + $0x40] ss:$8 sps:$4 sm:$0xff]  }
   0xb   :  { %6081 = vmatpush3.bf16.msra.mxu0 %v6445_v5  ;;  %v6477_v30 = vld [vmem:[%s9009_s2 + $0x54] ss:$8 sps:$4 sm:$0xff]   ;;  %v6479_v31 = vld [vmem:[%s9009_s2 + $0x50] ss:$8 sps:$4 sm:$0xff]   ;;  %v6480_v32 = vld [vmem:[%s9009_s2 + $0x64] ss:$8 sps:$4 sm:$0xff]  }
   0xc   :  { %6082 = vmatprep.subr.bf16.mxu0 %v6446_v6  ;;  %v6482_v33 = vld [vmem:[%s9009_s2 + $0x60] ss:$8 sps:$4 sm:$0xff]   ;;  %v6483_v34 = vld [vmem:[%s9009_s2 + $0x74] ss:$8 sps:$4 sm:$0xff]   ;;  %v6485_v35 = vld [vmem:[%s9009_s2 + $0x70] ss:$8 sps:$4 sm:$0xff]  }
   0xd   :  { %429 = vmatpush1.bf16.msra.mxu1 %v6467_v23  ;;  %vm6862_vm6 = vmpackc.low %vm9022_vm1, %vm9021_vm0  ;;  %9164 = vst [vmem:[#allocation3_spill] sm:$0xff] %v6900_v37 }
   0xe   :  { %430 = vmatprep.subr.bf16.mxu1 %v6468_v24  ;;  %v9162_v45 = vsel %vm6862_vm6, 4294967295, %v9161_v45  ;;  %vm708_vm7 = vmor %vm9118_vm2, %vm9038_vm4  ;;  %v6640_v24 = vmov 1966171168  }
   0xf   :  { %6083 = vmatpush3.bf16.msra.mxu0 %v6447_v7  ;;  %vm709_vm8 = vmor %vm9117_vm3, %vm9037_vm5 }
  0x10   :  { %6084 = vmatprep.subr.bf16.mxu0 %v6448_v8  ;;  %vm6294_vm9 = vmpackc.low %vm709_vm8, %vm708_vm7 }
  0x11   :  { %431 = vmatpush1.bf16.msra.mxu1 %v6470_v25  ;;  %v283_v25 = vunpack.c.l.s4 %v6640_v24  ;;  %v7114_v24 = vadd.s32 88, %v6825_v38 }
  0x12   :  { %432 = vmatprep.subr.bf16.mxu1 %v6471_v26 }
  0x13   :  { %6085 = vmatpush3.bf16.msra.mxu0 %v6449_v9  ;;  %v284_v26 = vunpack.c.0.s8 %v283_v25  ;;  %9172 = vst [vmem:[#allocation9_spill] sm:$0xff] %v7114_v24  ;;  %v7127_v25 = vadd.s32 224, %v6825_v38 }
  0x14   :  { %6086 = vmatprep.subr.bf16.mxu0 %v6450_v10 }
  0x15   :  { %433 = vmatpush1.bf16.msra.mxu1 %v6473_v27  ;;  %v6889_v27 = vsub.s32 %v284_v26, %v6825_v38  ;;  %9173 = vst [vmem:[#allocation10_spill] sm:$0xff] %v7127_v25  ;;  %v7141_v26 = vadd.s32 232, %v6825_v38 }
  0x16   :  { %434 = vmatprep.subr.bf16.mxu1 %v6474_v28 }
  0x17   :  { %6087 = vmatpush3.bf16.msra.mxu0 %v6451_v12  ;;  %9163 = vst [vmem:[#allocation2_spill] sm:$0xff] %v6889_v27  ;;  %9174 = vst [vmem:[#allocation11_spill] sm:$0xff] %v7141_v26 }
  0x18   :  { %6088 = vmatprep.subr.bf16.mxu0 %v6452_v13 }
  0x19   :  { %435 = vmatpush1.bf16.msra.mxu1 %v6476_v29 }
  0x1a   :  { %436 = vmatprep.subr.bf16.mxu1 %v6477_v30 }
  0x1b   :  { %6089 = vmatpush3.bf16.msra.mxu0 %v6453_v14 }
  0x1c   :  { %6090 = vmatprep.subr.bf16.mxu0 %v6454_v15 }
  0x1d   :  { %437 = vmatpush1.bf16.msra.mxu1 %v6479_v31  ;;  %v246_v31 = vld [vmem:[%s9010_s5] sm:$0x1] }
  0x1e   :  { %438 = vmatprep.subr.bf16.mxu1 %v6480_v32 }
  0x1f   :  { %6091 = vmatpush3.bf16.msra.mxu0 %v6455_v16 }
  0x20   :  { %6295 = vmatprep.subr.msk.bf16.mxu0 %vm6294_vm9, %v9072_v46 }
  0x21   :  { %439 = vmatpush1.bf16.msra.mxu1 %v6482_v33 }
  0x22   :  { %230 = vmatmul.mubr.bf16.vlgmr.msra.gmra.mrb[0].mxu0 %v6456_v17  ;;  %440 = vmatprep.subr.bf16.mxu1 %v6483_v34  ;;  %v247_v34 = vld [vmem:[%s9011_s6] sm:$0x1] }
  0x23   :  { %237 = vmatprep.mubr.bf16.mxu0 %v6459_v18  ;;  %6297 = vmatpush3.bf16.msk.msra.mxu0 %vm6862_vm6, %v9072_v46 }
  0x25   :  { %441 = vmatpush1.bf16.msra.mxu1 %v6485_v35 }
  0x2a   :  { %238 = vmatmul.mubr.bf16.gmra.mrb[4].mxu0 %v6461_v19 }
  0xf5   :  { %v6092_v47 = vpop.f32.mrb[0].mxu0 }
  0xf6   :  { %v6093_v48 = vpop.f32.mrb[1].mxu0 }
  0xf7   :  { %v6882_v49 = vadd.f32 %v6093_v48, %v6092_v47  ;;  %v6095_v50 = vpop.f32.mrb[2].mxu0 }
  0xf8   :  { %v6096_v51 = vpop.f32.mrb[3].mxu0 }
  0xf9   :  { %v6097_v52 = vadd.f32 %v6096_v51, %v6095_v50  ;;  %v257_v53 = vmul.f32 %v6882_v49, %v6882_v49  ;;  %v6904_v50 = vsub.s32 1, %v6825_v38 }
  0xfb   :  { %v248_v54 = vadd.f32 %v6097_v52, %v6882_v49  ;;  %v258_v55 = vmul.f32 %v6097_v52, %v6097_v52  ;;  %9165 = vst [vmem:[#allocation4_spill] sm:$0xff] %v6904_v50 }
  0xfd   :  { %v261_v56 = vadd.f32 %v258_v55, %v257_v53  ;;  %v6098_v57 = vpop.f32.mrb[4].mxu0 }
  0xfe   :  { %v6099_v58 = vpop.f32.mrb[5].mxu0 }
  0xff   :  { %v6100_v59 = vadd.f32 %v6099_v58, %v6098_v57  ;;  %v6101_v60 = vpop.f32.mrb[6].mxu0 }
 0x100   :  { %v6102_v61 = vpop.f32.mrb[7].mxu0 }
 0x101   :  { %v249_v62 = vadd.f32 %v6100_v59, %v248_v54  ;;  %v259_v63 = vmul.f32 %v6100_v59, %v6100_v59  ;;  %v6103_v0 = vadd.f32 %v6102_v61, %v6101_v60 }
 0x103   :  { %v262_v1 = vadd.f32 %v261_v56, %v259_v63  ;;  %v250_v2 = vadd.f32 %v6103_v0, %v249_v62  ;;  %v260_v3 = vmul.f32 %v6103_v0, %v6103_v0 }
 0x105   :  { %v251_v4 = vrot.slane %v250_v2, 4  ;;  %v263_v5 = vadd.f32 %v262_v1, %v260_v3 }
 0x107   :  { %v252_v6 = vadd.f32 %v251_v4, %v250_v2  ;;  %v264_v7 = vrot.slane %v263_v5, 4 }
 0x109   :  { %v253_v8 = vrot.slane %v252_v6, 2  ;;  %v265_v9 = vadd.f32 %v264_v7, %v263_v5  ;;  %v9070_v7 = vmov 0.0  }
 0x10b   :  { %v254_v10 = vadd.f32 %v253_v8, %v252_v6  ;;  %v266_v11 = vrot.slane %v265_v9, 2  ;;  %v6948_v8 = vadd.s32 168, %v6825_v38 }
 0x10d   :  { %v255_v12 = vrot.slane %v254_v10, 1  ;;  %v267_v13 = vadd.f32 %v266_v11, %v265_v9  ;;  %v9166_v9 = vmov 0  ;;  %v6993_v11 = vadd.s32 40, %v6825_v38 }
 0x10f   :  { %v268_v14 = vrot.slane %v267_v13, 1  ;;  %v256_v15 = vadd.f32 %v255_v12, %v254_v10  ;;  %v6990_v10 = vadd.s32 32, %v6825_v38  ;;  %9168 = vst [vmem:[#allocation5_spill] sm:$0xff] %v6993_v11  ;;  %v7007_v12 = vadd.s32 176, %v6825_v38 }
 0x111   :  { %v269_v16 = vadd.f32 %v268_v14, %v267_v13  ;;  %v7010_v13 = vadd.s32 184, %v6825_v38  ;;  %v7013_v14 = vadd.s32 48, %v6825_v38 }
 0x113   :  { %v271_v17 = vsel %vm9119_vm10, %v256_v15, %v269_v16  ;;  %v7016_v15 = vadd.s32 56, %v6825_v38  ;;  %v7023_v16 = vadd.s32 192, %v6825_v38 }
 0x114   :  { %v272_v18 = vmul.f32 0.03125, %v271_v17  ;;  %v7026_v17 = vadd.s32 192, %v6833_v41 }
 0x116   :  { %v273_v19 = vmul.f32 %v272_v18, %v272_v18 }
 0x118   :  { %v275_v20 = vrot.slane %v273_v19, 7  ;;  %v7046_v19 = vadd.s32 64, %v6825_v38 }
 0x11a   :  { %v277_v21 = vsub.f32 %v272_v18, %v275_v20  ;;  %v7059_v20 = vadd.s32 72, %v6825_v38 }
 0x11c   :  { %v278_v22 = vmax.f32 %v277_v21, 0.0  ;;  %v7073_v21 = vadd.s32 208, %v6825_v38 }
 0x11e   :  { %v279_v23 = vadd.f32 1e-05, %v278_v22  ;;  %9169 = vst [vmem:[#allocation6_spill] sm:$0xff] %v7073_v21  ;;  %v7087_v22 = vadd.s32 216, %v6825_v38 }
 0x120   :  { %6614 = vrsqrt.f32 %v279_v23  ;;  %9170 = vst [vmem:[#allocation7_spill] sm:$0xff] %v7087_v22  ;;  %v7100_v23 = vadd.s32 80, %v6825_v38 }
 0x122   :  { %9171 = vst [vmem:[#allocation8_spill] sm:$0xff] %v7100_v23 }
 0x12a   :  { %v6615_v28 = vpop.eup %6614 }
 0x12b   :  { %v288_v29 = vrot.slane %v6615_v28, %v6889_v27  ;;  %v7154_v28 = vadd.s32 96, %v6825_v38 }
 0x12d   :  { %v289_v30 = vcombine.high %v288_v29, %v288_v29  ;;  %9175 = vst [vmem:[#allocation12_spill] sm:$0xff] %v7154_v28  ;;  %v7168_v29 = vadd.s32 104, %v6825_v38 }
 0x12f   :  { %v296_v32 = vrot.slane %v289_v30, %v6889_v27  ;;  %9176 = vst [vmem:[#allocation13_spill] sm:$0xff] %v7168_v29  ;;  %v7181_v30 = vadd.s32 240, %v6825_v38 }
 0x131   :  { %v298_v33 = vmul.f32 %v296_v32, %v246_v31  ;;  %9177 = vst [vmem:[#allocation14_spill] sm:$0xff] %v7181_v30  ;;  %v7195_v31 = vadd.s32 248, %v6825_v38  ;;  %v7208_v32 = vadd.s32 112, %v6825_v38 }
 0x133   :  { %v299_v35 = vmul.f32 %v298_v33, %v272_v18  ;;  %v7033_v18 = vadd.s32 200, %v6825_v38  ;;  %9178 = vst [vmem:[#allocation15_spill] sm:$0xff] %v7195_v31  ;;  %9179 = vst [vmem:[#allocation16_spill] sm:$0xff] %v7208_v32 }
 0x135   :  { %v300_v47 = vsub.f32 %v247_v34, %v299_v35  ;;  %vm9045_vm5 = vcmp.eq.s32.totalorder %v7033_v18, %v6842_v44  ;;  %vm9044_vm4 = vcmp.eq.s32.totalorder %v7033_v18, %v7026_v17 }
 0x137   :  { %v305_v48 = vrot.slane %v300_v47, %v6900_v37 }
 0x139   :  { %v307_v51 = vsel %vm9119_vm10, %v298_v33, %v305_v48  ;;  %v7222_v33 = vadd.s32 120, %v6825_v38 }
 0x13a   :  { %v311_v53 = vrot.slane %v307_v51, %v6900_v37  ;;  %v319_v54 = vrot.slane %v307_v51, %v6904_v50 }
 0x13b   :  { %9180 = vst [vmem:[#allocation17_spill] sm:$0xff] %v7222_v33 }
 0x13c   :  { %v315_v55 = vmul.f32 %v6103_v0, %v311_v53  ;;  %v312_v56 = vmul.f32 %v6882_v49, %v311_v53  ;;  %v313_v57 = vmul.f32 %v6097_v52, %v311_v53  ;;  %v314_v58 = vmul.f32 %v6100_v59, %v311_v53 }
 0x13d   :  { %v6913_v49 = vadd.s32 144, %v6825_v38  ;;  %v6916_v52 = vadd.s32 152, %v6825_v38  ;;  %v6936_v59 = vadd.s32 24, %v6825_v38  ;;  %v6945_v0 = vadd.s32 160, %v6825_v38 }
 0x13e   :  { %v320_v60 = vadd.f32 %v319_v54, %v312_v56  ;;  %v321_v61 = vadd.f32 %v319_v54, %v313_v57  ;;  %v322_v62 = vadd.f32 %v319_v54, %v314_v58  ;;  %v323_v63 = vadd.f32 %v319_v54, %v315_v55 }
 0x13f   :  { %vm9034_vm11 = vcmp.eq.s32.totalorder %v6913_v49, %v6839_v43  ;;  %vm9027_vm12 = vcmp.eq.s32.totalorder %v6916_v52, %v6839_v43  ;;  %vm9026_vm13 = vcmp.eq.s32.totalorder %v6913_v49, %v6842_v44  ;;  %vm9023_vm14 = vcmp.eq.s32.totalorder %v6916_v52, %v6842_v44 }
 0x140   :  { %v324_v1 = vmax.f32 %v320_v60, 0.0  ;;  %v325_v2 = vmax.f32 %v321_v61, 0.0  ;;  %v326_v3 = vmax.f32 %v322_v62, 0.0  ;;  %v327_v4 = vmax.f32 %v323_v63, 0.0  ;;  %vm710_vm15 = vmor %vm9034_vm11, %vm9026_vm13 }
 0x141   :  { %vm711_vm7 = vmor %vm9027_vm12, %vm9023_vm14  ;;  %vm9024_vm0 = vcmp.eq.s32.totalorder %v6936_v59, %v6833_v41  ;;  %vm9028_vm14 = vcmp.eq.s32.totalorder %v6945_v0, %v6842_v44  ;;  %vm9030_vm12 = vcmp.eq.s32.totalorder %v6990_v10, %v6833_v41  ;;  %vm9042_vm11 = vcmp.eq.s32.totalorder %v7023_v16, %v6842_v44 }
 0x142   :  { %v328_v5 = vpack.c.bf16 %v325_v2, %v324_v1  ;;  %v329_v6 = vpack.c.bf16 %v327_v4, %v326_v3  ;;  %vm6298_vm8 = vmpackc.low %vm711_vm7, %vm710_vm15  ;;  %vm9033_vm15 = vcmp.eq.s32.totalorder %v6945_v0, %v6839_v43  ;;  %vm9032_vm7 = vcmp.eq.s32.totalorder %v6948_v8, %v6839_v43 }
 0x143   :  { %6299 = vmatprep.subr.msk.bf16.mxu0 %vm6298_vm8, %v9072_v46  ;;  %vm9031_vm8 = vcmp.eq.s32.totalorder %v6948_v8, %v6842_v44 }
 0x144   :  { %459 = vmatmul.mubr.bf16.vlgmr.msra.gmra.mrb[0].mxu1 %v328_v5 }
 0x145   :  { %468 = vmatprep.mubr.bf16.mxu1 %v6638_v36  ;;  %v6933_v36 = vadd.s32 16, %v6825_v38 }
 0x147   :  { %vm9025_vm9 = vcmp.eq.s32.totalorder %v6933_v36, %v6833_v41 }
 0x148   :  { %vm6961_vm1 = vmpackc.low %vm9024_vm0, %vm9025_vm9 }
 0x149   :  { %v9167_v9 = vsel %vm6961_vm1, 4294967295, %v9166_v9  ;;  %6301 = vmatpush3.bf16.msk.msra.mxu0 %vm6961_vm1, %v9072_v46  ;;  %vm712_vm0 = vmor %vm9033_vm15, %vm9028_vm14  ;;  %vm9029_vm14 = vcmp.eq.s32.totalorder %v6993_v11, %v6833_v41 }
 0x14a   :  { %vm713_vm9 = vmor %vm9032_vm7, %vm9031_vm8  ;;  %vm9043_vm8 = vcmp.eq.s32.totalorder %v7013_v14, %v6833_v41  ;;  %vm9040_vm7 = vcmp.eq.s32.totalorder %v7016_v15, %v6833_v41 }
 0x14b   :  { %vm6302_vm13 = vmpackc.low %vm713_vm9, %vm712_vm0  ;;  %vm9035_vm9 = vcmp.eq.s32.totalorder %v7007_v12, %v6842_v44 }
 0x14c   :  { %469 = vmatmul.mubr.bf16.gmra.mrb[4].mxu1 %v329_v6  ;;  %6303 = vmatprep.subr.msk.bf16.mxu0 %vm6302_vm13, %v9072_v46  ;;  %vm6304_vm0 = vmpackc.low %vm9029_vm14, %vm9030_vm12  ;;  %vm9036_vm13 = vcmp.eq.s32.totalorder %v7007_v12, %v6839_v43  ;;  %vm9039_vm14 = vcmp.eq.s32.totalorder %v7010_v13, %v6842_v44 }
 0x14d   :  { %1192 = vmatprep.mubr.f32.mxu1 %v9070_v7  ;;  %6305 = vmatpush3.bf16.msk.msra.mxu0 %vm6304_vm0, %v9072_v46  ;;  %vm9064_vm0 = vcmp.eq.s32.totalorder %v7010_v13, %v6839_v43  ;;  %vm714_vm12 = vmor %vm9036_vm13, %vm9035_vm9  ;;  %vm9041_vm9 = vcmp.eq.s32.totalorder %v7023_v16, %v7026_v17 }
 0x14e   :  { %vm715_vm15 = vmor %vm9064_vm0, %vm9039_vm14  ;;  %vm9101_vm0 = vcmp.eq.s32.totalorder %v7208_v32, %v6833_v41 }
 0x14f   :  { %vm6306_vm13 = vmpackc.low %vm715_vm15, %vm714_vm12  ;;  %vm9047_vm15 = vcmp.eq.s32.totalorder %v7046_v19, %v6833_v41 }
 0x150   :  { %6307 = vmatprep.subr.msk.bf16.mxu0 %vm6306_vm13, %v9072_v46  ;;  %vm6308_vm14 = vmpackc.low %vm9040_vm7, %vm9043_vm8  ;;  %vm9046_vm13 = vcmp.eq.s32.totalorder %v7046_v19, %v6839_v43  ;;  %vm9049_vm7 = vcmp.eq.s32.totalorder %v7059_v20, %v6833_v41 }
 0x151   :  { %6309 = vmatpush3.bf16.msk.msra.mxu0 %vm6308_vm14, %v9072_v46  ;;  %vm781_vm12 = vmor %vm9042_vm11, %vm9041_vm9  ;;  %vm9048_vm9 = vcmp.eq.s32.totalorder %v7059_v20, %v6839_v43 }
 0x152   :  { %vm782_vm14 = vmor %vm9045_vm5, %vm9044_vm4  ;;  %vm9051_vm4 = vcmp.eq.s32.totalorder %v7073_v21, %v6842_v44  ;;  %vm9050_vm5 = vcmp.eq.s32.totalorder %v7073_v21, %v7026_v17 }
 0x153   :  { %vm6310_vm11 = vmpackc.low %vm782_vm14, %vm781_vm12  ;;  %vm9053_vm12 = vcmp.eq.s32.totalorder %v7087_v22, %v6842_v44  ;;  %vm9052_vm14 = vcmp.eq.s32.totalorder %v7087_v22, %v7026_v17 }
 0x154   :  { %6311 = vmatprep.subr.msk.bf16.mxu0 %vm6310_vm11, %v9072_v46  ;;  %vm635_vm8 = vmor %vm9047_vm15, %vm9046_vm13 }
 0x155   :  { %vm636_vm11 = vmor %vm9049_vm7, %vm9048_vm9  ;;  %vm9055_vm9 = vcmp.eq.s32.totalorder %v7100_v23, %v6833_v41  ;;  %vm9054_vm7 = vcmp.eq.s32.totalorder %v7100_v23, %v6839_v43 }
 0x156   :  { %vm6312_vm13 = vmpackc.low %vm636_vm11, %vm635_vm8  ;;  %vm9056_vm11 = vcmp.eq.s32.totalorder %v7114_v24, %v6839_v43 }
 0x157   :  { %6313 = vmatpush3.bf16.msk.msra.mxu0 %vm6312_vm13, %v9072_v46  ;;  %vm783_vm15 = vmor %vm9051_vm4, %vm9050_vm5  ;;  %vm9057_vm13 = vcmp.eq.s32.totalorder %v7114_v24, %v6833_v41 }
 0x158   :  { %vm784_vm8 = vmor %vm9053_vm12, %vm9052_vm14  ;;  %vm9059_vm14 = vcmp.eq.s32.totalorder %v7127_v25, %v6842_v44  ;;  %vm9058_vm12 = vcmp.eq.s32.totalorder %v7127_v25, %v7026_v17 }
 0x159   :  { %vm6314_vm5 = vmpackc.low %vm784_vm8, %vm783_vm15  ;;  %vm9061_vm15 = vcmp.eq.s32.totalorder %v7141_v26, %v6842_v44  ;;  %vm9060_vm8 = vcmp.eq.s32.totalorder %v7141_v26, %v7026_v17 }
 0x15a   :  { %6315 = vmatprep.subr.msk.bf16.mxu0 %vm6314_vm5, %v9072_v46  ;;  %vm637_vm4 = vmor %vm9055_vm9, %vm9054_vm7 }
 0x15b   :  { %vm638_vm5 = vmor %vm9057_vm13, %vm9056_vm11  ;;  %vm9063_vm11 = vcmp.eq.s32.totalorder %v7154_v28, %v6833_v41  ;;  %vm9062_vm13 = vcmp.eq.s32.totalorder %v7154_v28, %v6839_v43 }
 0x15c   :  { %vm6316_vm7 = vmpackc.low %vm638_vm5, %vm637_vm4  ;;  %vm9065_vm5 = vcmp.eq.s32.totalorder %v7168_v29, %v6839_v43 }
 0x15d   :  { %6317 = vmatpush3.bf16.msk.msra.mxu0 %vm6316_vm7, %v9072_v46  ;;  %vm785_vm9 = vmor %vm9059_vm14, %vm9058_vm12  ;;  %vm9114_vm7 = vcmp.eq.s32.totalorder %v7168_v29, %v6833_v41 }
 0x15e   :  { %vm786_vm4 = vmor %vm9061_vm15, %vm9060_vm8  ;;  %vm9067_vm8 = vcmp.eq.s32.totalorder %v7181_v30, %v6842_v44  ;;  %vm9066_vm15 = vcmp.eq.s32.totalorder %v7181_v30, %v7026_v17 }
 0x15f   :  { %vm6318_vm12 = vmpackc.low %vm786_vm4, %vm785_vm9  ;;  %vm9068_vm4 = vcmp.eq.s32.totalorder %v7195_v31, %v7026_v17 }
 0x160   :  { %6319 = vmatprep.subr.msk.bf16.mxu0 %vm6318_vm12, %v9072_v46  ;;  %vm639_vm14 = vmor %vm9063_vm11, %vm9062_vm13  ;;  %vm9069_vm12 = vcmp.eq.s32.totalorder %v7195_v31, %v6842_v44 }
 0x161   :  { %vm640_vm9 = vmor %vm9114_vm7, %vm9065_vm5  ;;  %vm9099_vm5 = vcmp.eq.s32.totalorder %v7208_v32, %v6839_v43 }
 0x162   :  { %vm6320_vm13 = vmpackc.low %vm640_vm9, %vm639_vm14  ;;  %vm9098_vm9 = vcmp.eq.s32.totalorder %v7222_v33, %v6839_v43 }
 0x163   :  { %6321 = vmatpush3.bf16.msk.msra.mxu0 %vm6320_vm13, %v9072_v46  ;;  %vm787_vm11 = vmor %vm9067_vm8, %vm9066_vm15  ;;  %vm9100_vm13 = vcmp.eq.s32.totalorder %v7222_v33, %v6833_v41 }
 0x164   :  { %vm788_vm14 = vmor %vm9069_vm12, %vm9068_vm4 }
 0x165   :  { %vm6322_vm15 = vmpackc.low %vm788_vm14, %vm787_vm11  ;;  %vm9105_vm11 = vcmp.eq.s32.totalorder %v6842_v44, %v6828_v39  ;;  %vm9109_vm14 = vcmp.eq.s32.totalorder %v6833_v41, %v6825_v38 }
 0x166   :  { %6323 = vmatprep.subr.msk.bf16.mxu0 %vm6322_vm15, %v9072_v46  ;;  %vm641_vm8 = vmor %vm9101_vm0, %vm9099_vm5  ;;  %vm9106_vm5 = vcmp.eq.s32.totalorder %v6833_v41, %v7046_v19 }
 0x167   :  { %vm642_vm4 = vmor %vm9100_vm13, %vm9098_vm9  ;;  %vm9108_vm9 = vcmp.eq.s32.totalorder %v6833_v41, %v6836_v42 }
 0x168   :  { %vm6324_vm12 = vmpackc.low %vm642_vm4, %vm641_vm8  ;;  %vm9102_vm8 = vcmp.eq.s32.totalorder %v6842_v44, %v7023_v16 }
 0x169   :  { %6325 = vmatpush3.bf16.msk.msra.mxu0 %vm6324_vm12, %v9072_v46  ;;  %vm1077_vm4 = vmor %vm9105_vm11, %vm9102_vm8 }
 0x217   :  { %v7269_v34 = vpop.f32.mrb[0].mxu1 }
 0x218   :  { %v7271_v35 = vpop.f32.mrb[1].mxu1  ;;  %v499_v48 = vmul.f32 %v7269_v34, %v7269_v34 }
 0x219   :  { %v7273_v47 = vpop.f32.mrb[2].mxu1  ;;  %v500_v55 = vmul.f32 %v7271_v35, %v7271_v35 }
 0x21a   :  { %v481_v51 = vadd.f32 %v7273_v47, %v7269_v34  ;;  %v501_v53 = vmul.f32 %v7273_v47, %v7273_v47  ;;  %v7281_v54 = vpop.f32.mrb[3].mxu1 }
 0x21b   :  { %v490_v56 = vadd.f32 %v7281_v54, %v7271_v35  ;;  %v502_v57 = vmul.f32 %v7281_v54, %v7281_v54 }
 0x21c   :  { %v507_v58 = vadd.f32 %v501_v53, %v499_v48 }
 0x21d   :  { %v516_v60 = vadd.f32 %v502_v57, %v500_v55 }
 0x21f   :  { %v7289_v61 = vpop.f32.mrb[4].mxu1 }
 0x220   :  { %v482_v62 = vadd.f32 %v481_v51, %v7289_v61  ;;  %v503_v63 = vmul.f32 %v7289_v61, %v7289_v61  ;;  %v7294_v1 = vpop.f32.mrb[5].mxu1 }
 0x221   :  { %v491_v2 = vadd.f32 %v490_v56, %v7294_v1  ;;  %v504_v3 = vmul.f32 %v7294_v1, %v7294_v1  ;;  %v7299_v4 = vpop.f32.mrb[6].mxu1 }
 0x222   :  { %v508_v5 = vadd.f32 %v507_v58, %v503_v63  ;;  %v483_v6 = vadd.f32 %v482_v62, %v7299_v4  ;;  %v505_v48 = vmul.f32 %v7299_v4, %v7299_v4  ;;  %v7304_v53 = vpop.f32.mrb[7].mxu1 }
 0x223   :  { %v517_v51 = vadd.f32 %v516_v60, %v504_v3  ;;  %v492_v55 = vadd.f32 %v491_v2, %v7304_v53  ;;  %v506_v57 = vmul.f32 %v7304_v53, %v7304_v53 }
 0x224   :  { %v484_v56 = vrot.slane %v483_v6, 4  ;;  %v509_v7 = vadd.f32 %v508_v5, %v505_v48 }
 0x225   :  { %v493_v46 = vrot.slane %v492_v55, 4  ;;  %v518_v33 = vadd.f32 %v517_v51, %v506_v57 }
 0x226   :  { %v485_v32 = vadd.f32 %v484_v56, %v483_v6  ;;  %v510_v31 = vrot.slane %v509_v7, 4  ;;  %v1057_v56 = vadd.s32 192, %v6993_v11 }
 0x227   :  { %v494_v58 = vadd.f32 %v493_v46, %v492_v55  ;;  %v519_v63 = vrot.slane %v518_v33, 4  ;;  %v1018_v55 = vadd.s32 128, %v6993_v11 }
 0x228   :  { %v486_v62 = vrot.slane %v485_v32, 2  ;;  %v511_v30 = vadd.f32 %v510_v31, %v509_v7  ;;  %v7312_v31 = vadd.s32 128, %v6836_v42 }
 0x229   :  { %v495_v29 = vrot.slane %v494_v58, 2  ;;  %v520_v28 = vadd.f32 %v519_v63, %v518_v33  ;;  %v1056_v33 = vadd.s32 192, %v6990_v10  ;;  %v979_v63 = vadd.s32 64, %v6993_v11 }
 0x22a   :  { %v487_v26 = vadd.f32 %v486_v62, %v485_v32  ;;  %v512_v25 = vrot.slane %v511_v30, 2  ;;  %vm9104_vm15 = vcmp.eq.s32.totalorder %v6842_v44, %v7312_v31  ;;  %v1017_v32 = vadd.s32 128, %v6990_v10 }
 0x22b   :  { %v496_v60 = vadd.f32 %v495_v29, %v494_v58  ;;  %v521_v3 = vrot.slane %v520_v28, 2  ;;  %v7315_v29 = vadd.s32 192, %v6836_v42  ;;  %v978_v58 = vadd.s32 64, %v6990_v10 }
 0x22c   :  { %v488_v2 = vrot.slane %v487_v26, 1  ;;  %v513_v24 = vadd.f32 %v512_v25, %v511_v30  ;;  %v7318_v25 = vadd.s32 64, %v6836_v42  ;;  %v7375_v30 = vadd.s32 64, %v6936_v59 }
 0x22d   :  { %v497_v23 = vrot.slane %v496_v60, 1  ;;  %v522_v22 = vadd.f32 %v521_v3, %v520_v28  ;;  %vm9103_vm12 = vcmp.eq.s32.totalorder %v6842_v44, %v7315_v29  ;;  %v9185_v28 = vmov 1.0|1.0  }
 0x22e   :  { %v514_v21 = vrot.slane %v513_v24, 1  ;;  %v489_v48 = vadd.f32 %v488_v2, %v487_v26  ;;  %vm9107_vm13 = vcmp.eq.s32.totalorder %v6833_v41, %v7318_v25  ;;  %vm1079_vm0 = vmor %vm9104_vm15, %vm9103_vm12  ;;  %v7361_v26 = vadd.s32 64, %v6933_v36  ;;  %9186 = vst [vmem:[#allocation22_spill] sm:$0xff] %v7375_v30 }
 0x22f   :  { %v523_v5 = vrot.slane %v522_v22, 1  ;;  %v498_v6 = vadd.f32 %v497_v23, %v496_v60  ;;  %v7355_v23 = vadd.s32 192, %v6933_v36  ;;  %vm6326_vm8 = vmpackc.low %vm1079_vm0, %vm1077_vm4  ;;  %vm990_vm3 = vcmp.eq.s32.totalorder %v6833_v41, %v978_v58  ;;  %v6515_v58 = vld [vmem:[%s9012_s3 + $0x8c] ss:$16 sps:$4 sm:$0xff]  }
 0x230   :  { %v515_v51 = vadd.f32 %v514_v21, %v513_v24  ;;  %v7349_v21 = vadd.s32 128, %v6933_v36  ;;  %v7358_v24 = vadd.s32 192, %v6936_v59  ;;  %9184 = vst [vmem:[#allocation21_spill] sm:$0xff] %v7361_v26  ;;  %6327 = vmatprep.subr.msk.bf16.mxu1 %vm6326_vm8, %v9185_v28  ;;  %vm998_vm12 = vmor %vm9109_vm14, %vm9106_vm5  ;;  %vm9115_vm14 = vcmp.eq.s32.totalorder %v6833_v41, %v7361_v26 }
 0x231   :  { %v524_v57 = vadd.f32 %v523_v5, %v522_v22  ;;  %v7352_v22 = vadd.s32 128, %v6936_v59  ;;  %9182 = vst [vmem:[#allocation19_spill] sm:$0xff] %v7355_v23  ;;  %vm9110_vm11 = vcmp.eq.s32.totalorder %v6842_v44, %v7355_v23  ;;  %vm1000_vm0 = vmor %vm9108_vm9, %vm9107_vm13  ;;  %vm9116_vm9 = vcmp.eq.s32.totalorder %v6833_v41, %v6933_v36  ;;  %v6489_v5 = vld [vmem:[%s9012_s3 + $0x8] ss:$16 sps:$4 sm:$0xff]  }
 0x232   :  { %v525_v46 = vsel %vm9119_vm10, %v489_v48, %v515_v51  ;;  %9183 = vst [vmem:[#allocation20_spill] sm:$0xff] %v7358_v24  ;;  %vm9111_vm15 = vcmp.eq.s32.totalorder %v6842_v44, %v7349_v21  ;;  %vm9112_vm4 = vcmp.eq.s32.totalorder %v6842_v44, %v7358_v24  ;;  %vm6328_vm5 = vmpackc.low %vm1000_vm0, %vm998_vm12  ;;  %vm9122_vm12 = vcmp.eq.s32.totalorder %v6833_v41, %v6936_v59  ;;  %v6491_v48 = vld [vmem:[%s9012_s3 + $0xc] ss:$16 sps:$4 sm:$0xff]  }
 0x233   :  { %v526_v7 = vsel %vm9119_vm10, %v498_v6, %v524_v57  ;;  %9181 = vst [vmem:[#allocation18_spill] sm:$0xff] %v7352_v22  ;;  %vm9113_vm8 = vcmp.eq.s32.totalorder %v6842_v44, %v7352_v22  ;;  %6329 = vmatpush1.bf16.msk.msra.mxu1 %vm6328_vm5, %v9185_v28  ;;  %vm1081_vm13 = vmor %vm9111_vm15, %vm9110_vm11  ;;  %vm9121_vm0 = vcmp.eq.s32.totalorder %v6833_v41, %v7375_v30  ;;  %v1019_v62 = vadd.s32 128, %v7013_v14  ;;  %v6495_v57 = vld [vmem:[%s9012_s3 + $0x28] ss:$16 sps:$4 sm:$0xff]  }
 0x234   :  { %917 = vmatprep.mubr.f32.mxu0 %v526_v7  ;;  %vm1083_vm5 = vmor %vm9113_vm8, %vm9112_vm4  ;;  %vm1030_vm4 = vcmp.eq.s32.totalorder %v6842_v44, %v1017_v32  ;;  %vm1069_vm8 = vcmp.eq.s32.totalorder %v6842_v44, %v1056_v33  ;;  %vm969_vm10 = vcmp.eq.s32.totalorder %v6833_v41, %v6993_v11  ;;  %vm992_vm1 = vcmp.eq.s32.totalorder %v6833_v41, %v979_v63  ;;  %v6488_v7 = vld [vmem:[%s9012_s3 + $0x4] ss:$16 sps:$4 sm:$0xff]   ;;  %v6501_v32 = vld [vmem:[%s9012_s3 + $0x48] ss:$16 sps:$4 sm:$0xff]  }
 0x235   :  { %918 = vmatmul.mubr.f32.vlgmr.msra.gmra.mrb[8].mxu0 %v525_v46  ;;  %vm6330_vm11 = vmpackc.low %vm1083_vm5, %vm1081_vm13  ;;  %vm1071_vm5 = vcmp.eq.s32.totalorder %v6842_v44, %v1057_v56  ;;  %v1058_v60 = vadd.s32 192, %v7013_v14  ;;  %v1020_v3 = vadd.s32 128, %v7016_v15  ;;  %v1059_v2 = vadd.s32 192, %v7016_v15  ;;  %1680 = vmatprep.subr.bf16.mxu0 %v6491_v48  ;;  %v6497_v46 = vld [vmem:[%s9012_s3 + $0x2c] ss:$16 sps:$4 sm:$0xff]  }
 0x236   :  { %6331 = vmatprep.subr.msk.bf16.mxu1 %vm6330_vm11, %v9185_v28  ;;  %vm1002_vm15 = vmor %vm9116_vm9, %vm9115_vm14  ;;  %vm1032_vm11 = vcmp.eq.s32.totalorder %v6842_v44, %v1018_v55  ;;  %vm9123_vm9 = vcmp.eq.s32.totalorder %v6833_v41, %v6990_v10  ;;  %v980_v51 = vadd.s32 64, %v7013_v14  ;;  %v981_v6 = vadd.s32 64, %v7016_v15  ;;  %1681 = vmatpush1.bf16.msra.mxu0 %v6489_v5  ;;  %v6503_v33 = vld [vmem:[%s9012_s3 + $0x4c] ss:$16 sps:$4 sm:$0xff]   ;;  %v6507_v55 = vld [vmem:[%s9012_s3 + $0x68] ss:$16 sps:$4 sm:$0xff]  }
 0x237   :  { %vm1004_vm13 = vmor %vm9122_vm12, %vm9121_vm0  ;;  %1682 = vmatprep.subr.bf16.mxu0 %v6497_v46  ;;  %v6509_v56 = vld [vmem:[%s9012_s3 + $0x6c] ss:$16 sps:$4 sm:$0xff]   ;;  %v6513_v63 = vld [vmem:[%s9012_s3 + $0x88] ss:$16 sps:$4 sm:$0xff]  }
 0x238   :  { %vm6332_vm7 = vmpackc.low %vm1004_vm13, %vm1002_vm15  ;;  %v6533_v5 = vld [vmem:[%s9012_s3 + $0xec] ss:$16 sps:$4 sm:$0xff]   ;;  %v6531_v48 = vld [vmem:[%s9012_s3 + $0xe8] ss:$16 sps:$4 sm:$0xff]  }
 0x239   :  { %6333 = vmatpush1.bf16.msk.msra.mxu1 %vm6332_vm7, %v9185_v28  ;;  %vm1085_vm14 = vmor %vm1030_vm4, %vm1069_vm8  ;;  %vm971_vm4 = vcmp.eq.s32.totalorder %v6833_v41, %v7013_v14  ;;  %v6543_v46 = vld [vmem:[%s9012_s3 + $0x128] ss:$16 sps:$4 sm:$0xff]  }
 0x23a   :  { %vm1087_vm2 = vmor %vm1032_vm11, %vm1071_vm5  ;;  %vm973_vm11 = vcmp.eq.s32.totalorder %v6833_v41, %v7016_v15  ;;  %vm996_vm5 = vcmp.eq.s32.totalorder %v6833_v41, %v981_v6  ;;  %1683 = vmatpush1.bf16.msra.mxu0 %v6495_v57  ;;  %v6537_v6 = vld [vmem:[%s9012_s3 + $0x108] ss:$16 sps:$4 sm:$0xff]   ;;  %v6545_v57 = vld [vmem:[%s9012_s3 + $0x12c] ss:$16 sps:$4 sm:$0xff]  }
 0x23b   :  { %vm6334_vm0 = vmpackc.low %vm1087_vm2, %vm1085_vm14  ;;  %vm1073_vm2 = vcmp.eq.s32.totalorder %v6842_v44, %v1058_v60  ;;  %1684 = vmatprep.subr.bf16.mxu0 %v6503_v33  ;;  %v6519_v60 = vld [vmem:[%s9012_s3 + $0xa8] ss:$16 sps:$4 sm:$0xff]   ;;  %v6557_v33 = vld [vmem:[%s9012_s3 + $0x16c] ss:$16 sps:$4 sm:$0xff]  }
 0x23c   :  { %6335 = vmatprep.subr.msk.bf16.mxu1 %vm6334_vm0, %v9185_v28  ;;  %vm1006_vm15 = vmor %vm9123_vm9, %vm990_vm3  ;;  %vm1036_vm3 = vcmp.eq.s32.totalorder %v6842_v44, %v1020_v3  ;;  %vm994_vm0 = vcmp.eq.s32.totalorder %v6833_v41, %v980_v51  ;;  %v6527_v3 = vld [vmem:[%s9012_s3 + $0xcc] ss:$16 sps:$4 sm:$0xff]  }
 0x23d   :  { %vm1008_vm7 = vmor %vm969_vm10, %vm992_vm1  ;;  %vm1034_vm1 = vcmp.eq.s32.totalorder %v6842_v44, %v1019_v62  ;;  %vm1075_vm10 = vcmp.eq.s32.totalorder %v6842_v44, %v1059_v2  ;;  %v6521_v62 = vld [vmem:[%s9012_s3 + $0xac] ss:$16 sps:$4 sm:$0xff]   ;;  %v6525_v2 = vld [vmem:[%s9012_s3 + $0xc8] ss:$16 sps:$4 sm:$0xff]  }
 0x23e   :  { %vm6336_vm8 = vmpackc.low %vm1008_vm7, %vm1006_vm15  ;;  %1685 = vmatpush1.bf16.msra.mxu0 %v6501_v32  ;;  %v6539_v51 = vld [vmem:[%s9012_s3 + $0x10c] ss:$16 sps:$4 sm:$0xff]   ;;  %v6549_v32 = vld [vmem:[%s9012_s3 + $0x148] ss:$16 sps:$4 sm:$0xff]  }
 0x23f   :  { %6337 = vmatpush1.bf16.msk.msra.mxu1 %vm6336_vm8, %v9185_v28  ;;  %vm1089_vm14 = vmor %vm1034_vm1, %vm1073_vm2  ;;  %1686 = vmatprep.subr.bf16.mxu0 %v6509_v56  ;;  %v6563_v56 = vld [vmem:[%s9012_s3 + $0x18c] ss:$16 sps:$4 sm:$0xff]   ;;  %vm1124_vm2 = vcmask 523264  }
 0x240   :  { %vm1091_vm13 = vmor %vm1036_vm3, %vm1075_vm10  ;;  %vm9187_vm3 = vcmask 1040384  }
 0x241   :  { %vm6338_vm15 = vmpackc.low %vm1091_vm13, %vm1089_vm14 }
 0x242   :  { %6339 = vmatprep.subr.msk.bf16.mxu1 %vm6338_vm15, %v9185_v28  ;;  %vm1010_vm7 = vmor %vm971_vm4, %vm994_vm0  ;;  %1687 = vmatpush1.bf16.msra.mxu0 %v6507_v55  ;;  %v6555_v55 = vld [vmem:[%s9012_s3 + $0x168] ss:$16 sps:$4 sm:$0xff]   ;;  %vm9188_vm0 = vcmp.eq.s32.totalorder %v6828_v39, %v6839_v43 }
 0x243   :  { %vm1012_vm8 = vmor %vm973_vm11, %vm996_vm5  ;;  %1688 = vmatprep.subr.bf16.mxu0 %v6515_v58  ;;  %v6561_v58 = vld [vmem:[%s9012_s3 + $0x188] ss:$16 sps:$4 sm:$0xff]   ;;  %vm9190_vm5 = vcmp.eq.s32.totalorder %v6831_v40, %v6839_v43 }
 0x244   :  { %vm6340_vm1 = vmpackc.low %vm1012_vm8, %vm1010_vm7 }
 0x245   :  { %6341 = vmatpush1.bf16.msk.msra.mxu1 %vm6340_vm1, %v9185_v28  ;;  %vm9191_vm1 = vcmp.eq.s32.totalorder %v6828_v39, %v6842_v44 }
 0x246   :  { %1627 = vmatprep.subr.bf16.mxu1 %v6488_v7  ;;  %1689 = vmatpush1.bf16.msra.mxu0 %v6513_v63  ;;  %v6551_v7 = vld [vmem:[%s9012_s3 + $0x14c] ss:$16 sps:$4 sm:$0xff]  }
 0x247   :  { %1690 = vmatprep.subr.bf16.mxu0 %v6521_v62 }
 0x24a   :  { %1691 = vmatpush1.bf16.msra.mxu0 %v6519_v60 }
 0x24b   :  { %1692 = vmatprep.subr.bf16.mxu0 %v6527_v3 }
 0x24e   :  { %1693 = vmatpush1.bf16.msra.mxu0 %v6525_v2 }
 0x24f   :  { %1694 = vmatprep.subr.bf16.mxu0 %v6533_v5 }
 0x252   :  { %1695 = vmatpush1.bf16.msra.mxu0 %v6531_v48 }
 0x253   :  { %1696 = vmatprep.subr.bf16.mxu0 %v6539_v51 }
 0x256   :  { %1697 = vmatpush1.bf16.msra.mxu0 %v6537_v6 }
 0x257   :  { %1698 = vmatprep.subr.bf16.mxu0 %v6545_v57 }
 0x25a   :  { %1699 = vmatpush1.bf16.msra.mxu0 %v6543_v46 }
 0x25b   :  { %1700 = vmatprep.subr.bf16.mxu0 %v6551_v7 }
 0x25e   :  { %1701 = vmatpush1.bf16.msra.mxu0 %v6549_v32  ;;  %v479_v32 = vld [vmem:[%s9013_s7] sm:$0x1] }
 0x25f   :  { %1702 = vmatprep.subr.bf16.mxu0 %v6557_v33 }
 0x262   :  { %1703 = vmatpush1.bf16.msra.mxu0 %v6555_v55 }
 0x263   :  { %1704 = vmatprep.subr.bf16.mxu0 %v6563_v56  ;;  %v480_v56 = vld [vmem:[%s9014_s8] sm:$0x1] }
 0x266   :  { %1705 = vmatpush1.bf16.msra.mxu0 %v6561_v58 }
 0x308   :  { %v6136_v63 = vpop.f32.mrb[8].mxu0 }
 0x309   :  { %v6137_v62 = vpop.f32.mrb[9].mxu0 }
 0x30a   :  { %v6138_v60 = vadd.f32 %v6137_v62, %v6136_v63 }
 0x30c   :  { %v923_v3 = vmul.f32 0.0078125, %v6138_v60  ;;  %v6486_v60 = vld [vmem:[%s9012_s3] ss:$16 sps:$4 sm:$0xff]  }
 0x30e   :  { %v924_v2 = vmul.f32 %v923_v3, %v923_v3 }
 0x310   :  { %v926_v5 = vrot.slane %v924_v2, 7  ;;  %v6494_v2 = vld [vmem:[%s9012_s3 + $0x24] ss:$16 sps:$4 sm:$0xff]  }
 0x312   :  { %v928_v48 = vsub.f32 %v923_v3, %v926_v5 }
 0x314   :  { %v929_v51 = vmax.f32 %v928_v48, 0.0  ;;  %v6500_v48 = vld [vmem:[%s9012_s3 + $0x44] ss:$16 sps:$4 sm:$0xff]  }
 0x316   :  { %v930_v6 = vadd.f32 1e-05, %v929_v51  ;;  %v6498_v51 = vld [vmem:[%s9012_s3 + $0x40] ss:$16 sps:$4 sm:$0xff]  }
 0x318   :  { %6616 = vrsqrt.f32 %v930_v6  ;;  %v6506_v6 = vld [vmem:[%s9012_s3 + $0x64] ss:$16 sps:$4 sm:$0xff]  }
 0x322   :  { %v6617_v57 = vpop.eup %6616 }
 0x323   :  { %v939_v46 = vrot.slane %v6617_v57, %v6889_v27  ;;  %v6504_v57 = vld [vmem:[%s9012_s3 + $0x60] ss:$16 sps:$4 sm:$0xff]  }
 0x325   :  { %v940_v7 = vcombine.high %v939_v46, %v939_v46  ;;  %v6512_v46 = vld [vmem:[%s9012_s3 + $0x84] ss:$16 sps:$4 sm:$0xff]  }
 0x327   :  { %v947_v33 = vrot.slane %v940_v7, %v6889_v27  ;;  %v6510_v7 = vld [vmem:[%s9012_s3 + $0x80] ss:$16 sps:$4 sm:$0xff]  }
 0x329   :  { %v949_v55 = vmul.f32 %v947_v33, %v479_v32  ;;  %v6518_v32 = vld [vmem:[%s9012_s3 + $0xa4] ss:$16 sps:$4 sm:$0xff]   ;;  %v6516_v33 = vld [vmem:[%s9012_s3 + $0xa0] ss:$16 sps:$4 sm:$0xff]  }
 0x32b   :  { %v950_v58 = vmul.f32 %v949_v55, %v923_v3  ;;  %v6492_v3 = vld [vmem:[%s9012_s3 + $0x20] ss:$16 sps:$4 sm:$0xff]  }
 0x32d   :  { %v951_v63 = vsub.f32 %v480_v56, %v950_v58  ;;  %v6522_v56 = vld [vmem:[%s9012_s3 + $0xc0] ss:$16 sps:$4 sm:$0xff]   ;;  %v6530_v58 = vld [vmem:[%s9012_s3 + $0xe4] ss:$16 sps:$4 sm:$0xff]  }
 0x32f   :  { %v956_v62 = vrot.slane %v951_v63, %v6900_v37  ;;  %v6528_v63 = vld [vmem:[%s9012_s3 + $0xe0] ss:$16 sps:$4 sm:$0xff]  }
 0x331   :  { %v958_v5 = vsel %vm9187_vm3, %v949_v55, %v956_v62  ;;  %v6524_v55 = vld [vmem:[%s9012_s3 + $0xc4] ss:$16 sps:$4 sm:$0xff]  }
 0x332   :  { %5802 = vmatmul.mubr.msk.f32.vlgmr.msra.gmra.mrb[8].mxu1 %vm1124_vm2, %v958_v5  ;;  %v6536_v62 = vld [vmem:[%s9012_s3 + $0x104] ss:$16 sps:$4 sm:$0xff]   ;;  %v6540_v5 = vld [vmem:[%s9012_s3 + $0x120] ss:$16 sps:$4 sm:$0xff]  }
 0x333   :  { %1628 = vmatpush1.bf16.msra.mxu1 %v6486_v60  ;;  %v6534_v60 = vld [vmem:[%s9012_s3 + $0x100] ss:$16 sps:$4 sm:$0xff]  }
 0x334   :  { %1629 = vmatprep.subr.bf16.mxu1 %v6494_v2  ;;  %v6542_v2 = vld [vmem:[%s9012_s3 + $0x124] ss:$16 sps:$4 sm:$0xff]  }
 0x337   :  { %1630 = vmatpush1.bf16.msra.mxu1 %v6492_v3  ;;  %v6548_v3 = vld [vmem:[%s9012_s3 + $0x144] ss:$16 sps:$4 sm:$0xff]  }
 0x338   :  { %1631 = vmatprep.subr.bf16.mxu1 %v6500_v48  ;;  %v6546_v48 = vld [vmem:[%s9012_s3 + $0x140] ss:$16 sps:$4 sm:$0xff]  }
 0x33b   :  { %1632 = vmatpush1.bf16.msra.mxu1 %v6498_v51  ;;  %v6554_v51 = vld [vmem:[%s9012_s3 + $0x164] ss:$16 sps:$4 sm:$0xff]  }
 0x33c   :  { %1633 = vmatprep.subr.bf16.mxu1 %v6506_v6  ;;  %v6552_v6 = vld [vmem:[%s9012_s3 + $0x160] ss:$16 sps:$4 sm:$0xff]  }
 0x33f   :  { %1634 = vmatpush1.bf16.msra.mxu1 %v6504_v57  ;;  %v6560_v57 = vld [vmem:[%s9012_s3 + $0x184] ss:$16 sps:$4 sm:$0xff]  }
 0x340   :  { %1635 = vmatprep.subr.bf16.mxu1 %v6512_v46  ;;  %v6558_v46 = vld [vmem:[%s9012_s3 + $0x180] ss:$16 sps:$4 sm:$0xff]  }
 0x343   :  { %1636 = vmatpush1.bf16.msra.mxu1 %v6510_v7  ;;  %v6566_v7 = vld [vmem:[%s9012_s3 + $0x1a4] ss:$16 sps:$4 sm:$0xff]  }
 0x344   :  { %1637 = vmatprep.subr.bf16.mxu1 %v6518_v32  ;;  %v6569_v32 = vld [vmem:[%s9012_s3 + $0x1ac] ss:$16 sps:$4 sm:$0xff]  }
 0x345   :  { %1706 = vmatprep.subr.bf16.mxu0 %v6569_v32  ;;  %v7694_v32 = vadd.s32 352, %v6833_v41 }
 0x347   :  { %1638 = vmatpush1.bf16.msra.mxu1 %v6516_v33  ;;  %v6564_v33 = vld [vmem:[%s9012_s3 + $0x1a0] ss:$16 sps:$4 sm:$0xff]  }
 0x348   :  { %1639 = vmatprep.subr.bf16.mxu1 %v6524_v55  ;;  %v6567_v55 = vld [vmem:[%s9012_s3 + $0x1a8] ss:$16 sps:$4 sm:$0xff]  }
 0x349   :  { %1707 = vmatpush1.bf16.msra.mxu0 %v6567_v55  ;;  %v7723_v55 = vadd.s32 160, %v6833_v41 }
 0x34b   :  { %1640 = vmatpush1.bf16.msra.mxu1 %v6522_v56  ;;  %v6572_v56 = vld [vmem:[%s9012_s3 + $0x1c4] ss:$16 sps:$4 sm:$0xff]  }
 0x34c   :  { %1641 = vmatprep.subr.bf16.mxu1 %v6530_v58  ;;  %v6575_v58 = vld [vmem:[%s9012_s3 + $0x1cc] ss:$16 sps:$4 sm:$0xff]  }
 0x34d   :  { %1708 = vmatprep.subr.bf16.mxu0 %v6575_v58  ;;  %v7727_v58 = vadd.s32 224, %v6833_v41 }
 0x34f   :  { %1642 = vmatpush1.bf16.msra.mxu1 %v6528_v63  ;;  %v6570_v63 = vld [vmem:[%s9012_s3 + $0x1c0] ss:$16 sps:$4 sm:$0xff]  }
 0x350   :  { %1643 = vmatprep.subr.bf16.mxu1 %v6536_v62  ;;  %v6573_v62 = vld [vmem:[%s9012_s3 + $0x1c8] ss:$16 sps:$4 sm:$0xff]  }
 0x351   :  { %1709 = vmatpush1.bf16.msra.mxu0 %v6573_v62 }
 0x353   :  { %1644 = vmatpush1.bf16.msra.mxu1 %v6534_v60  ;;  %v6578_v60 = vld [vmem:[%s9012_s3 + $0x1e4] ss:$16 sps:$4 sm:$0xff]  }
 0x354   :  { %1645 = vmatprep.subr.bf16.mxu1 %v6542_v2  ;;  %v6576_v2 = vld [vmem:[%s9012_s3 + $0x1e0] ss:$16 sps:$4 sm:$0xff]  }
 0x357   :  { %1646 = vmatpush1.bf16.msra.mxu1 %v6540_v5  ;;  %v6579_v5 = vld [vmem:[%s9012_s3 + $0x1e8] ss:$16 sps:$4 sm:$0xff]  }
 0x358   :  { %1647 = vmatprep.subr.bf16.mxu1 %v6548_v3  ;;  %v6581_v3 = vld [vmem:[%s9012_s3 + $0x1ec] ss:$16 sps:$4 sm:$0xff]  }
 0x359   :  { %1710 = vmatprep.subr.bf16.mxu0 %v6581_v3 }
 0x35a   :  { %1711 = vmatpush1.bf16.msra.mxu0 %v6579_v5 }
 0x35b   :  { %1648 = vmatpush1.bf16.msra.mxu1 %v6546_v48  ;;  %v7664_v48 = vadd.s32 32, %v6833_v41 }
 0x35c   :  { %1649 = vmatprep.subr.bf16.mxu1 %v6554_v51  ;;  %v7667_v51 = vadd.s32 96, %v6833_v41 }
 0x35d   :  { %vm1908_vm10 = vcmp.eq.s32.totalorder %v6828_v39, %v7664_v48  ;;  %vm1909_vm14 = vcmp.eq.s32.totalorder %v6831_v40, %v7664_v48 }
 0x35e   :  { %vm2133_vm4 = vcmp.eq.s32.totalorder %v6828_v39, %v7667_v51  ;;  %vm2068_vm13 = vmor %vm1908_vm10, %vm9188_vm0  ;;  %vm2134_vm11 = vcmp.eq.s32.totalorder %v6831_v40, %v7667_v51 }
 0x35f   :  { %1650 = vmatpush1.bf16.msra.mxu1 %v6552_v6  ;;  %v7681_v6 = vadd.s32 384, %v6825_v38  ;;  %vm2069_vm15 = vmor %vm1909_vm14, %vm9190_vm5  ;;  %vm9192_vm14 = vcmp.eq.s32.totalorder %v6831_v40, %v6842_v44  ;;  %v7720_v40 = vadd.s32 256, %v6825_v38 }
 0x360   :  { %1651 = vmatprep.subr.bf16.mxu1 %v6560_v57  ;;  %v7684_v57 = vadd.s32 288, %v6833_v41  ;;  %vm2197_vm7 = vmor %vm2068_vm13, %vm2133_vm4 }
 0x361   :  { %9189 = vst [vmem:[#allocation23_spill] sm:$0xff] %v7681_v6  ;;  %vm2198_vm8 = vmor %vm2069_vm15, %vm2134_vm11  ;;  %vm3131_vm5 = vcmp.eq.s32.totalorder %v7681_v6, %v7694_v32 }
 0x362   :  { %vm2293_vm2 = vmor %vm2197_vm7, %vm9191_vm1  ;;  %vm2873_vm3 = vcmp.eq.s32.totalorder %v7681_v6, %v7684_v57  ;;  %9193 = vst [vmem:[#allocation24_spill] sm:$0xff] %v7720_v40 }
 0x363   :  { %1652 = vmatpush1.bf16.msra.mxu1 %v6558_v46  ;;  %v7687_v46 = vadd.s32 320, %v6833_v41  ;;  %vm2294_vm4 = vmor %vm2198_vm8, %vm9192_vm14 }
 0x364   :  { %1653 = vmatprep.subr.bf16.mxu1 %v6566_v7  ;;  %v1844_v7 = vadd.s32 392, %v6825_v38  ;;  %vm6342_vm11 = vmpackc.low %vm2294_vm4, %vm2293_vm2 }
 0x365   :  { %vm3002_vm10 = vcmp.eq.s32.totalorder %v7681_v6, %v7687_v46 }
 0x366   :  { %vm2874_vm0 = vcmp.eq.s32.totalorder %v1844_v7, %v7684_v57  ;;  %vm3003_vm13 = vcmp.eq.s32.totalorder %v1844_v7, %v7687_v46  ;;  %vm3066_vm15 = vmor %vm2873_vm3, %vm3002_vm10  ;;  %vm3132_vm7 = vcmp.eq.s32.totalorder %v1844_v7, %v7694_v32  ;;  %vm2599_vm10 = vcmp.eq.s32.totalorder %v7720_v40, %v7727_v58 }
 0x367   :  { %1654 = vmatpush1.bf16.msra.mxu1 %v6564_v33  ;;  %v7704_v33 = vadd.s32 384, %v6833_v41  ;;  %vm3067_vm1 = vmor %vm2874_vm0, %vm3003_vm13 }
 0x368   :  { %1655 = vmatprep.subr.bf16.mxu1 %v6572_v56  ;;  %vm3195_vm9 = vmor %vm3066_vm15, %vm3131_vm5  ;;  %v1828_v56 = vadd.s32 264, %v6825_v38 }
 0x369   :  { %vm3260_vm12 = vcmp.eq.s32.totalorder %v7681_v6, %v7704_v33  ;;  %vm3261_vm8 = vcmp.eq.s32.totalorder %v1844_v7, %v7704_v33  ;;  %vm3196_vm14 = vmor %vm3067_vm1, %vm3132_vm7 }
 0x36a   :  { %vm3324_vm6 = vmor %vm3195_vm9, %vm3260_vm12  ;;  %vm2374_vm9 = vcmp.eq.s32.totalorder %v7720_v40, %v7723_v55  ;;  %vm2375_vm12 = vcmp.eq.s32.totalorder %v1828_v56, %v7723_v55  ;;  %vm2471_vm3 = vcmp.eq.s32.totalorder %v1828_v56, %v7026_v17  ;;  %vm2600_vm0 = vcmp.eq.s32.totalorder %v1828_v56, %v7727_v58 }
 0x36b   :  { %1656 = vmatpush1.bf16.msra.mxu1 %v6570_v63  ;;  %vm3325_vm2 = vmor %vm3196_vm14, %vm3261_vm8  ;;  %v7730_v63 = vadd.s32 256, %v6833_v41 }
 0x36c   :  { %1657 = vmatprep.subr.bf16.mxu1 %v6578_v60  ;;  %vm6374_vm4 = vmpackc.low %vm3325_vm2, %vm3324_vm6  ;;  %vm2470_vm6 = vcmp.eq.s32.totalorder %v7720_v40, %v7026_v17 }
 0x36d   :  { %6375 = vmatprep.subr.msk.bf16.mxu0 %vm6374_vm4, %v9185_v28  ;;  %vm2728_vm13 = vcmp.eq.s32.totalorder %v7720_v40, %v7730_v63  ;;  %vm2729_vm5 = vcmp.eq.s32.totalorder %v1828_v56, %v7730_v63  ;;  %vm2535_vm15 = vmor %vm2375_vm12, %vm2471_vm3  ;;  %vm9196_vm4 = vnez %v9162_v45  ;;  %vm9197_vm12 = vcmp.eq.s32.totalorder %v6913_v49, %v6839_v43 }
 0x36e   :  { %vm2664_vm1 = vmor %vm2535_vm15, %vm2600_vm0  ;;  %vm2136_vm0 = vcmp.eq.s32.totalorder %v6916_v52, %v7667_v51  ;;  %v1845_v45 = vadd.s32 400, %v6825_v38  ;;  %v7855_v56 = vadd.s32 416, %v6833_v41 }
 0x36f   :  { %1658 = vmatpush1.bf16.msra.mxu1 %v6576_v2  ;;  %vm2793_vm14 = vmor %vm2664_vm1, %vm2729_vm5 }
 0x370   :  { %6343 = vmatprep.subr.msk.bf16.mxu1 %vm6342_vm11, %v9185_v28  ;;  %vm7747_vm11 = vmor %vm2374_vm9, %vm2470_vm6  ;;  %vm1910_vm9 = vcmp.eq.s32.totalorder %v6913_v49, %v7664_v48  ;;  %vm1911_vm6 = vcmp.eq.s32.totalorder %v6916_v52, %v7664_v48 }
 0x371   :  { %vm2663_vm7 = vmor %vm7747_vm11, %vm2599_vm10  ;;  %vm2135_vm10 = vcmp.eq.s32.totalorder %v6913_v49, %v7667_v51 }
 0x372   :  { %vm2792_vm8 = vmor %vm2663_vm7, %vm2728_vm13  ;;  %vm9198_vm13 = vcmp.eq.s32.totalorder %v6916_v52, %v6839_v43  ;;  %vm9199_vm7 = vcmp.eq.s32.totalorder %v6913_v49, %v6842_v44  ;;  %v1829_v49 = vadd.s32 272, %v6825_v38 }
 0x373   :  { %vm6376_vm2 = vmpackc.low %vm2793_vm14, %vm2792_vm8  ;;  %vm2875_vm8 = vcmp.eq.s32.totalorder %v1845_v45, %v7684_v57  ;;  %vm3004_vm14 = vcmp.eq.s32.totalorder %v1845_v45, %v7687_v46 }
 0x374   :  { %vm2070_vm3 = vmor %vm1910_vm9, %vm9197_vm12 }
 0x375   :  { %vm2071_vm11 = vmor %vm1911_vm6, %vm9198_vm13 }
 0x376   :  { %vm2199_vm5 = vmor %vm2070_vm3, %vm2135_vm10  ;;  %vm3133_vm3 = vcmp.eq.s32.totalorder %v1845_v45, %v7694_v32 }
 0x377   :  { %vm2200_vm15 = vmor %vm2071_vm11, %vm2136_vm0  ;;  %vm3262_vm11 = vcmp.eq.s32.totalorder %v1845_v45, %v7704_v33 }
 0x378   :  { %vm2295_vm1 = vmor %vm2199_vm5, %vm9199_vm7  ;;  %vm9201_vm5 = vnez %v9167_v9  ;;  %v7834_v9 = vadd.s32 416, %v6825_v38 }
 0x379   :  { %vm3068_vm10 = vmor %vm2875_vm8, %vm3004_vm14  ;;  %vm2376_vm8 = vcmp.eq.s32.totalorder %v1829_v49, %v7723_v55  ;;  %vm2472_vm14 = vcmp.eq.s32.totalorder %v1829_v49, %v7026_v17 }
 0x405   :  { %v1194_v62 = vpop.f32.mrb[8].mxu1 }
 0x406   :  { %v1202_v60 = vrot.slane %v1194_v62, %v6900_v37  ;;  %v1196_v2 = vpop.f32.mrb[9].mxu1  ;;  %v1218_v5 = vrot.slane %v1194_v62, %v6904_v50 }
 0x407   :  { %v1206_v3 = vrot.slane %v1196_v2, %v6900_v37  ;;  %v1222_v7 = vrot.slane %v1196_v2, %v6904_v50 }
 0x408   :  { %v1207_v6 = vmul.f32 %v1202_v60, %v7269_v34  ;;  %v1209_v30 = vmul.f32 %v1202_v60, %v7273_v47  ;;  %v1211_v26 = vmul.f32 %v1202_v60, %v7289_v61  ;;  %v1213_v24 = vmul.f32 %v1202_v60, %v7299_v4 }
 0x409   :  { %v1208_v62 = vmul.f32 %v1206_v3, %v7271_v35  ;;  %v1210_v2 = vmul.f32 %v1206_v3, %v7281_v54  ;;  %v1212_v50 = vmul.f32 %v1206_v3, %v7294_v1  ;;  %v1214_v37 = vmul.f32 %v1206_v3, %v7304_v53 }
 0x40a   :  { %v1223_v34 = vadd.f32 %v1218_v5, %v1207_v6  ;;  %v1225_v23 = vadd.f32 %v1218_v5, %v1209_v30  ;;  %v1227_v47 = vadd.f32 %v1218_v5, %v1211_v26  ;;  %v1229_v22 = vadd.f32 %v1218_v5, %v1213_v24 }
 0x40b   :  { %v1224_v61 = vadd.f32 %v1222_v7, %v1208_v62  ;;  %v1226_v4 = vadd.f32 %v1222_v7, %v1210_v2  ;;  %v1228_v60 = vadd.f32 %v1222_v7, %v1212_v50  ;;  %v1230_v35 = vadd.f32 %v1222_v7, %v1214_v37 }
 0x40c   :  { %v1231_v54 = vmax.f32 %v1223_v34, 0.0  ;;  %v1233_v1 = vmax.f32 %v1225_v23, 0.0  ;;  %v1235_v53 = vmax.f32 %v1227_v47, 0.0  ;;  %v1237_v6 = vmax.f32 %v1229_v22, 0.0 }
 0x40d   :  { %v1232_v30 = vmax.f32 %v1224_v61, 0.0  ;;  %v1234_v26 = vmax.f32 %v1226_v4, 0.0  ;;  %v1236_v24 = vmax.f32 %v1228_v60, 0.0  ;;  %v1238_v5 = vmax.f32 %v1230_v35, 0.0  ;;  %v9226_v61 = vld [vmem:[#allocation7_spill] sm:$0xff]  ;;  %v9231_v35 = vld [vmem:[#allocation8_spill] sm:$0xff] }
 0x40e   :  { %v1239_v27 = vpack.c.bf16 %v1233_v1, %v1231_v54  ;;  %v1241_v3 = vpack.c.bf16 %v1237_v6, %v1235_v53  ;;  %v1846_v22 = vadd.s32 408, %v6825_v38  ;;  %v1848_v23 = vadd.s32 424, %v6825_v38  ;;  %v9232_v54 = vld [vmem:[#allocation9_spill] sm:$0xff]  ;;  %v9237_v6 = vld [vmem:[#allocation10_spill] sm:$0xff] }
 0x40f   :  { %v1240_v37 = vpack.c.bf16 %v1234_v26, %v1232_v30  ;;  %v1242_v50 = vpack.c.bf16 %v1238_v5, %v1236_v24  ;;  %v1832_v7 = vadd.s32 296, %v6825_v38  ;;  %v1849_v62 = vadd.s32 432, %v6825_v38  ;;  %v9238_v30 = vld [vmem:[#allocation11_spill] sm:$0xff] }
 0x410   :  { %vm2876_vm9 = vcmp.eq.s32.totalorder %v1846_v22, %v7684_v57  ;;  %vm3005_vm6 = vcmp.eq.s32.totalorder %v1846_v22, %v7687_v46  ;;  %vm3134_vm0 = vcmp.eq.s32.totalorder %v1846_v22, %v7694_v32  ;;  %vm3263_vm7 = vcmp.eq.s32.totalorder %v1846_v22, %v7704_v33 }
 0x411   :  { %1659 = vmatprep.mubr.bf16.mxu1 %v1240_v37  ;;  %1712 = vmatprep.mubr.bf16.mxu0 %v1240_v37  ;;  %vm3069_vm13 = vmor %vm2876_vm9, %vm3005_vm6  ;;  %v1850_v2 = vadd.s32 440, %v6825_v38  ;;  %v7975_v34 = vadd.s32 448, %v6833_v41  ;;  %v1836_v47 = vadd.s32 328, %v6825_v38  ;;  %v1853_v4 = vadd.s32 464, %v6825_v38 }
 0x412   :  { %1660 = vmatmul.mubr.bf16.vlgmr.msra.gmra.mrb[12].mxu1 %v1239_v27  ;;  %1713 = vmatmul.mubr.bf16.vlgmr.msra.gmra.mrb[12].mxu0 %v1239_v27  ;;  %v1854_v60 = vadd.s32 472, %v6825_v38  ;;  %v1837_v1 = vadd.s32 336, %v6825_v38  ;;  %v1838_v53 = vadd.s32 344, %v6825_v38  ;;  %v8092_v26 = vadd.s32 480, %v6825_v38 }
 0x413   :  { %1669 = vmatprep.mubr.bf16.mxu1 %v1242_v50  ;;  %1722 = vmatprep.mubr.bf16.mxu0 %v1242_v50  ;;  %v1856_v24 = vadd.s32 488, %v6825_v38  ;;  %v8113_v5 = vadd.s32 480, %v6833_v41 }
 0x414   :  { %6345 = vmatpush3.bf16.msk.msra.mxu1 %vm9196_vm4, %v9185_v28  ;;  %6377 = vmatpush3.bf16.msk.msra.mxu0 %vm6376_vm2, %v9185_v28  ;;  %vm9200_vm2 = vcmp.eq.s32.totalorder %v6916_v52, %v6842_v44  ;;  %v1830_v52 = vadd.s32 280, %v6825_v38 }
 0x415   :  { %vm2296_vm4 = vmor %vm2200_vm15, %vm9200_vm2 }
 0x416   :  { %vm6346_vm12 = vmpackc.low %vm2296_vm4, %vm2295_vm1  ;;  %vm2377_vm9 = vcmp.eq.s32.totalorder %v1830_v52, %v7723_v55  ;;  %vm2473_vm6 = vcmp.eq.s32.totalorder %v1830_v52, %v7026_v17 }
 0x417   :  { %6347 = vmatprep.subr.msk.bf16.mxu1 %vm6346_vm12, %v9185_v28  ;;  %vm3197_vm15 = vmor %vm3068_vm10, %vm3133_vm3  ;;  %vm2602_vm10 = vcmp.eq.s32.totalorder %v1830_v52, %v7727_v58 }
 0x418   :  { %6349 = vmatpush3.bf16.msk.msra.mxu1 %vm9201_vm5, %v9185_v28  ;;  %vm3198_vm1 = vmor %vm3069_vm13, %vm3134_vm0  ;;  %vm2601_vm5 = vcmp.eq.s32.totalorder %v1829_v49, %v7727_v58  ;;  %vm2730_vm13 = vcmp.eq.s32.totalorder %v1829_v49, %v7730_v63  ;;  %v9252_v49 = vld [vmem:[#allocation12_spill] sm:$0xff] }
 0x419   :  { %vm3326_vm2 = vmor %vm3197_vm15, %vm3262_vm11  ;;  %vm2731_vm15 = vcmp.eq.s32.totalorder %v1830_v52, %v7730_v63  ;;  %v9253_v52 = vld [vmem:[#allocation13_spill] sm:$0xff] }
 0x41a   :  { %1670 = vmatmul.mubr.bf16.gmra.mrb[16].mxu1 %v1241_v3  ;;  %1723 = vmatmul.mubr.bf16.gmra.mrb[16].mxu0 %v1241_v3  ;;  %vm3327_vm4 = vmor %vm3198_vm1, %vm3263_vm7 }
 0x41b   :  { %vm6378_vm12 = vmpackc.low %vm3327_vm4, %vm3326_vm2  ;;  %vm2137_vm2 = vcmp.eq.s32.totalorder %v6945_v0, %v7667_v51 }
 0x41c   :  { %6379 = vmatprep.subr.msk.bf16.mxu0 %vm6378_vm12, %v9185_v28  ;;  %vm2536_vm3 = vmor %vm2376_vm8, %vm2472_vm14  ;;  %vm2138_vm12 = vcmp.eq.s32.totalorder %v6948_v8, %v7667_v51  ;;  %vm9202_vm14 = vcmp.eq.s32.totalorder %v6945_v0, %v6839_v43 }
 0x41d   :  { %vm2537_vm0 = vmor %vm2377_vm9, %vm2473_vm6  ;;  %vm9203_vm6 = vcmp.eq.s32.totalorder %v6948_v8, %v6839_v43 }
 0x41e   :  { %vm2665_vm11 = vmor %vm2536_vm3, %vm2601_vm5  ;;  %vm2362_vm3 = vcmp.eq.s32.totalorder %v6945_v0, %v7723_v55 }
 0x41f   :  { %vm2666_vm1 = vmor %vm2537_vm0, %vm2602_vm10  ;;  %vm9204_vm10 = vcmp.eq.s32.totalorder %v6945_v0, %v6842_v44 }
 0x420   :  { %vm2794_vm7 = vmor %vm2665_vm11, %vm2730_vm13  ;;  %vm2363_vm13 = vcmp.eq.s32.totalorder %v6948_v8, %v7723_v55  ;;  %vm9205_vm11 = vcmp.eq.s32.totalorder %v6948_v8, %v6842_v44  ;;  %v7867_v8 = vadd.s32 288, %v6825_v38 }
 0x421   :  { %vm2795_vm4 = vmor %vm2666_vm1, %vm2731_vm15 }
 0x422   :  { %vm6380_vm8 = vmpackc.low %vm2795_vm4, %vm2794_vm7  ;;  %vm3006_vm7 = vcmp.eq.s32.totalorder %v7834_v9, %v7687_v46  ;;  %9206 = vst [vmem:[#allocation25_spill] sm:$0xff] %v7867_v8 }
 0x423   :  { %6381 = vmatpush3.bf16.msk.msra.mxu0 %vm6380_vm8, %v9185_v28  ;;  %vm2201_vm9 = vmor %vm9202_vm14, %vm2137_vm2  ;;  %vm3135_vm2 = vcmp.eq.s32.totalorder %v7834_v9, %v7694_v32  ;;  %vm3136_vm8 = vcmp.eq.s32.totalorder %v1848_v23, %v7694_v32 }
 0x424   :  { %vm2202_vm5 = vmor %vm9203_vm6, %vm2138_vm12  ;;  %vm3007_vm12 = vcmp.eq.s32.totalorder %v1848_v23, %v7687_v46 }
 0x425   :  { %vm2297_vm0 = vmor %vm2201_vm9, %vm9204_vm10  ;;  %vm3264_vm9 = vcmp.eq.s32.totalorder %v7834_v9, %v7704_v33  ;;  %vm3393_vm10 = vcmp.eq.s32.totalorder %v7834_v9, %v7855_v56 }
 0x426   :  { %vm2298_vm15 = vmor %vm2202_vm5, %vm9205_vm11  ;;  %vm3265_vm5 = vcmp.eq.s32.totalorder %v1848_v23, %v7704_v33 }
 0x427   :  { %vm2426_vm1 = vmor %vm2297_vm0, %vm2362_vm3 }
 0x428   :  { %vm2427_vm4 = vmor %vm2298_vm15, %vm2363_vm13  ;;  %vm3394_vm13 = vcmp.eq.s32.totalorder %v1848_v23, %v7855_v56  ;;  %v8145_v23 = vadd.s32 352, %v6825_v38 }
 0x429   :  { %vm6350_vm14 = vmpackc.low %vm2427_vm4, %vm2426_vm1  ;;  %vm1896_vm1 = vcmp.eq.s32.totalorder %v6990_v10, %v7664_v48 }
 0x42a   :  { %6351 = vmatprep.subr.msk.bf16.mxu1 %vm6350_vm14, %v9185_v28  ;;  %vm3199_vm6 = vmor %vm3006_vm7, %vm3135_vm2  ;;  %vm1897_vm2 = vcmp.eq.s32.totalorder %v6993_v11, %v7664_v48  ;;  %vm2474_vm14 = vcmp.eq.s32.totalorder %v7867_v8, %v7026_v17 }
 0x42b   :  { %vm3200_vm3 = vmor %vm3007_vm12, %vm3136_vm8  ;;  %vm9207_vm12 = vcmp.eq.s32.totalorder %v6990_v10, %v6833_v41 }
 0x42c   :  { %vm3328_vm0 = vmor %vm3199_vm6, %vm3264_vm9  ;;  %vm2603_vm9 = vcmp.eq.s32.totalorder %v7867_v8, %v7727_v58  ;;  %vm9208_vm6 = vcmp.eq.s32.totalorder %v6993_v11, %v6833_v41 }
 0x42d   :  { %vm3329_vm11 = vmor %vm3200_vm3, %vm3265_vm5  ;;  %vm2475_vm3 = vcmp.eq.s32.totalorder %v1832_v7, %v7026_v17 }
 0x42e   :  { %vm3457_vm15 = vmor %vm3328_vm0, %vm3393_vm10  ;;  %vm2604_vm10 = vcmp.eq.s32.totalorder %v1832_v7, %v7727_v58 }
 0x42f   :  { %vm3458_vm7 = vmor %vm3329_vm11, %vm3394_vm13  ;;  %vm2732_vm13 = vcmp.eq.s32.totalorder %v7867_v8, %v7730_v63 }
 0x430   :  { %vm6382_vm4 = vmpackc.low %vm3458_vm7, %vm3457_vm15  ;;  %vm2733_vm15 = vcmp.eq.s32.totalorder %v1832_v7, %v7730_v63  ;;  %vm2861_vm7 = vcmp.eq.s32.totalorder %v7867_v8, %v7684_v57 }
 0x431   :  { %6383 = vmatprep.subr.msk.bf16.mxu0 %vm6382_vm4, %v9185_v28  ;;  %vm1960_vm8 = vmor %vm9207_vm12, %vm1896_vm1 }
 0x432   :  { %vm1961_vm5 = vmor %vm9208_vm6, %vm1897_vm2  ;;  %vm2862_vm2 = vcmp.eq.s32.totalorder %v1832_v7, %v7684_v57  ;;  %v8148_v7 = vadd.s32 360, %v6825_v38 }
 0x433   :  { %vm6352_vm0 = vmpackc.low %vm1961_vm5, %vm1960_vm8  ;;  %vm2139_vm8 = vcmp.eq.s32.totalorder %v7007_v12, %v7667_v51 }
 0x434   :  { %6353 = vmatpush3.bf16.msk.msra.mxu1 %vm6352_vm0, %v9185_v28  ;;  %vm2667_vm11 = vmor %vm2474_vm14, %vm2603_vm9  ;;  %vm2140_vm0 = vcmp.eq.s32.totalorder %v7010_v13, %v7667_v51  ;;  %vm9209_vm14 = vcmp.eq.s32.totalorder %v7007_v12, %v6839_v43 }
 0x435   :  { %vm2668_vm1 = vmor %vm2475_vm3, %vm2604_vm10  ;;  %vm9210_vm10 = vcmp.eq.s32.totalorder %v7010_v13, %v6839_v43 }
 0x436   :  { %vm2796_vm4 = vmor %vm2667_vm11, %vm2732_vm13  ;;  %vm2364_vm11 = vcmp.eq.s32.totalorder %v7007_v12, %v7723_v55 }
 0x437   :  { %vm2797_vm12 = vmor %vm2668_vm1, %vm2733_vm15  ;;  %vm9211_vm15 = vcmp.eq.s32.totalorder %v7007_v12, %v6842_v44  ;;  %v1833_v12 = vadd.s32 304, %v6825_v38 }
 0x438   :  { %vm2925_vm6 = vmor %vm2796_vm4, %vm2861_vm7  ;;  %vm2365_vm7 = vcmp.eq.s32.totalorder %v7010_v13, %v7723_v55  ;;  %vm9212_vm4 = vcmp.eq.s32.totalorder %v7010_v13, %v6842_v44  ;;  %v1834_v13 = vadd.s32 312, %v6825_v38 }
 0x439   :  { %vm2926_vm5 = vmor %vm2797_vm12, %vm2862_vm2 }
 0x43a   :  { %vm6384_vm9 = vmpackc.low %vm2926_vm5, %vm2925_vm6  ;;  %vm3008_vm6 = vcmp.eq.s32.totalorder %v1849_v62, %v7687_v46 }
 0x43b   :  { %6385 = vmatpush3.bf16.msk.msra.mxu0 %vm6384_vm9, %v9185_v28  ;;  %vm2203_vm3 = vmor %vm9209_vm14, %vm2139_vm8  ;;  %vm3137_vm8 = vcmp.eq.s32.totalorder %v1849_v62, %v7694_v32  ;;  %vm3138_vm9 = vcmp.eq.s32.totalorder %v1850_v2, %v7694_v32 }
 0x43c   :  { %vm2204_vm13 = vmor %vm9210_vm10, %vm2140_vm0  ;;  %vm3009_vm0 = vcmp.eq.s32.totalorder %v1850_v2, %v7687_v46 }
 0x43d   :  { %vm2299_vm1 = vmor %vm2203_vm3, %vm9211_vm15  ;;  %vm3266_vm3 = vcmp.eq.s32.totalorder %v1849_v62, %v7704_v33  ;;  %vm3267_vm15 = vcmp.eq.s32.totalorder %v1850_v2, %v7704_v33 }
 0x43e   :  { %vm2300_vm2 = vmor %vm2204_vm13, %vm9212_vm4  ;;  %vm3395_vm13 = vcmp.eq.s32.totalorder %v1849_v62, %v7855_v56 }
 0x43f   :  { %vm2428_vm12 = vmor %vm2299_vm1, %vm2364_vm11  ;;  %vm3396_vm1 = vcmp.eq.s32.totalorder %v1850_v2, %v7855_v56 }
 0x440   :  { %vm2429_vm5 = vmor %vm2300_vm2, %vm2365_vm7 }
 0x441   :  { %vm6354_vm14 = vmpackc.low %vm2429_vm5, %vm2428_vm12  ;;  %vm1898_vm12 = vcmp.eq.s32.totalorder %v7013_v14, %v7664_v48 }
 0x442   :  { %6355 = vmatprep.subr.msk.bf16.mxu1 %vm6354_vm14, %v9185_v28  ;;  %vm3201_vm10 = vmor %vm3008_vm6, %vm3137_vm8  ;;  %vm1899_vm6 = vcmp.eq.s32.totalorder %v7016_v15, %v7664_v48  ;;  %vm2476_vm14 = vcmp.eq.s32.totalorder %v1833_v12, %v7026_v17 }
 0x443   :  { %vm3202_vm4 = vmor %vm3009_vm0, %vm3138_vm9  ;;  %vm9213_vm0 = vcmp.eq.s32.totalorder %v7013_v14, %v6833_v41  ;;  %v7961_v14 = vadd.s32 448, %v6825_v38 }
 0x444   :  { %vm3330_vm11 = vmor %vm3201_vm10, %vm3266_vm3  ;;  %vm2605_vm3 = vcmp.eq.s32.totalorder %v1833_v12, %v7727_v58  ;;  %vm9214_vm10 = vcmp.eq.s32.totalorder %v7016_v15, %v6833_v41  ;;  %v1852_v15 = vadd.s32 456, %v6825_v38 }
 0x445   :  { %vm3331_vm2 = vmor %vm3202_vm4, %vm3267_vm15  ;;  %vm2477_vm4 = vcmp.eq.s32.totalorder %v1834_v13, %v7026_v17  ;;  %9216 = vst [vmem:[#allocation26_spill] sm:$0xff] %v7961_v14 }
 0x446   :  { %vm3459_vm7 = vmor %vm3330_vm11, %vm3395_vm13  ;;  %vm2606_vm13 = vcmp.eq.s32.totalorder %v1834_v13, %v7727_v58 }
 0x447   :  { %vm3460_vm5 = vmor %vm3331_vm2, %vm3396_vm1  ;;  %vm2734_vm1 = vcmp.eq.s32.totalorder %v1833_v12, %v7730_v63 }
 0x448   :  { %vm6386_vm8 = vmpackc.low %vm3460_vm5, %vm3459_vm7  ;;  %vm2735_vm7 = vcmp.eq.s32.totalorder %v1834_v13, %v7730_v63  ;;  %vm2863_vm5 = vcmp.eq.s32.totalorder %v1833_v12, %v7684_v57 }
 0x449   :  { %6387 = vmatprep.subr.msk.bf16.mxu0 %vm6386_vm8, %v9185_v28  ;;  %vm1962_vm9 = vmor %vm9213_vm0, %vm1898_vm12  ;;  %vm2864_vm0 = vcmp.eq.s32.totalorder %v1834_v13, %v7684_v57 }
 0x44a   :  { %vm1963_vm15 = vmor %vm9214_vm10, %vm1899_vm6 }
 0x44b   :  { %vm6356_vm11 = vmpackc.low %vm1963_vm15, %vm1962_vm9  ;;  %vm2141_vm9 = vcmp.eq.s32.totalorder %v7023_v16, %v7667_v51 }
 0x44c   :  { %6357 = vmatpush3.bf16.msk.msra.mxu1 %vm6356_vm11, %v9185_v28  ;;  %vm2669_vm2 = vmor %vm2476_vm14, %vm2605_vm3  ;;  %vm2142_vm11 = vcmp.eq.s32.totalorder %v7033_v18, %v7667_v51  ;;  %vm2366_vm14 = vcmp.eq.s32.totalorder %v7023_v16, %v7723_v55 }
 0x44d   :  { %vm2670_vm12 = vmor %vm2477_vm4, %vm2606_vm13  ;;  %vm9215_vm4 = vcmp.eq.s32.totalorder %v7023_v16, %v6842_v44 }
 0x44e   :  { %vm2798_vm8 = vmor %vm2669_vm2, %vm2734_vm1  ;;  %vm2367_vm1 = vcmp.eq.s32.totalorder %v7033_v18, %v7723_v55  ;;  %vm9217_vm2 = vcmp.eq.s32.totalorder %v7033_v18, %v6842_v44 }
 0x44f   :  { %vm2799_vm6 = vmor %vm2670_vm12, %vm2735_vm7 }
 0x450   :  { %vm2927_vm10 = vmor %vm2798_vm8, %vm2863_vm5  ;;  %vm9218_vm8 = vcmp.eq.s32.totalorder %v7023_v16, %v7026_v17 }
 0x451   :  { %vm2928_vm15 = vmor %vm2799_vm6, %vm2864_vm0  ;;  %vm3139_vm6 = vcmp.eq.s32.totalorder %v7961_v14, %v7694_v32 }
 0x452   :  { %vm6388_vm3 = vmpackc.low %vm2928_vm15, %vm2927_vm10  ;;  %vm3268_vm10 = vcmp.eq.s32.totalorder %v7961_v14, %v7704_v33 }
 0x453   :  { %6389 = vmatpush3.bf16.msk.msra.mxu0 %vm6388_vm3, %v9185_v28  ;;  %vm2301_vm13 = vmor %vm2141_vm9, %vm9215_vm4  ;;  %vm9219_vm9 = vcmp.eq.s32.totalorder %v7033_v18, %v7026_v17  ;;  %vm3269_vm3 = vcmp.eq.s32.totalorder %v1852_v15, %v7704_v33  ;;  %vm3397_vm4 = vcmp.eq.s32.totalorder %v7961_v14, %v7855_v56  ;;  %v7994_v18 = vadd.s32 320, %v6825_v38 }
 0x454   :  { %vm2302_vm7 = vmor %vm2142_vm11, %vm9217_vm2  ;;  %vm3140_vm11 = vcmp.eq.s32.totalorder %v1852_v15, %v7694_v32 }
 0x455   :  { %vm2430_vm12 = vmor %vm2301_vm13, %vm2366_vm14  ;;  %9220 = vst [vmem:[#allocation27_spill] sm:$0xff] %v7994_v18 }
 0x456   :  { %vm2431_vm5 = vmor %vm2302_vm7, %vm2367_vm1  ;;  %vm3398_vm1 = vcmp.eq.s32.totalorder %v1852_v15, %v7855_v56  ;;  %vm3526_vm7 = vcmp.eq.s32.totalorder %v7961_v14, %v7975_v34 }
 0x457   :  { %vm2526_vm0 = vmor %vm2430_vm12, %vm9218_vm8 }
 0x458   :  { %vm2527_vm15 = vmor %vm2431_vm5, %vm9219_vm9  ;;  %vm3527_vm5 = vcmp.eq.s32.totalorder %v1852_v15, %v7975_v34 }
 0x459   :  { %vm6358_vm14 = vmpackc.low %vm2527_vm15, %vm2526_vm0  ;;  %vm1900_vm0 = vcmp.eq.s32.totalorder %v7046_v19, %v7664_v48 }
 0x45a   :  { %6359 = vmatprep.subr.msk.bf16.mxu1 %vm6358_vm14, %v9185_v28  ;;  %vm3332_vm13 = vmor %vm3139_vm6, %vm3268_vm10  ;;  %vm1901_vm14 = vcmp.eq.s32.totalorder %v7059_v20, %v7664_v48  ;;  %vm9221_vm10 = vcmp.eq.s32.totalorder %v7046_v19, %v6833_v41 }
 0x45b   :  { %vm3333_vm2 = vmor %vm3140_vm11, %vm3269_vm3  ;;  %vm9222_vm3 = vcmp.eq.s32.totalorder %v7059_v20, %v6833_v41 }
 0x45c   :  { %vm3461_vm12 = vmor %vm3332_vm13, %vm3397_vm4  ;;  %vm9223_vm13 = vcmp.eq.s32.totalorder %v7046_v19, %v6839_v43 }
 0x45d   :  { %vm3462_vm8 = vmor %vm3333_vm2, %vm3398_vm1  ;;  %vm2607_vm2 = vcmp.eq.s32.totalorder %v7994_v18, %v7727_v58 }
 0x45e   :  { %vm3590_vm9 = vmor %vm3461_vm12, %vm3526_vm7  ;;  %vm2736_vm7 = vcmp.eq.s32.totalorder %v7994_v18, %v7730_v63  ;;  %vm9224_vm12 = vcmp.eq.s32.totalorder %v7059_v20, %v6839_v43  ;;  %v9225_v20 = vld [vmem:[#allocation6_spill] sm:$0xff] }
 0x45f   :  { %vm3591_vm15 = vmor %vm3462_vm8, %vm3527_vm5  ;;  %vm2608_vm8 = vcmp.eq.s32.totalorder %v1836_v47, %v7727_v58  ;;  %9240 = vst [vmem:[#allocation6_spill] sm:$0xff] %v8092_v26 }
 0x460   :  { %vm6390_vm6 = vmpackc.low %vm3591_vm15, %vm3590_vm9  ;;  %vm2737_vm9 = vcmp.eq.s32.totalorder %v1836_v47, %v7730_v63  ;;  %vm2865_vm15 = vcmp.eq.s32.totalorder %v7994_v18, %v7684_v57 }
 0x461   :  { %6391 = vmatprep.subr.msk.bf16.mxu0 %vm6390_vm6, %v9185_v28  ;;  %vm1964_vm11 = vmor %vm9221_vm10, %vm1900_vm0  ;;  %vm2866_vm6 = vcmp.eq.s32.totalorder %v1836_v47, %v7684_v57 }
 0x462   :  { %vm1965_vm4 = vmor %vm9222_vm3, %vm1901_vm14 }
 0x463   :  { %vm2060_vm1 = vmor %vm1964_vm11, %vm9223_vm13  ;;  %vm2994_vm11 = vcmp.eq.s32.totalorder %v7994_v18, %v7687_v46 }
 0x464   :  { %vm2061_vm5 = vmor %vm1965_vm4, %vm9224_vm12  ;;  %vm2995_vm4 = vcmp.eq.s32.totalorder %v1836_v47, %v7687_v46 }
 0x465   :  { %vm6360_vm0 = vmpackc.low %vm2061_vm5, %vm2060_vm1  ;;  %vm2143_vm1 = vcmp.eq.s32.totalorder %v9225_v20, %v7667_v51 }
 0x466   :  { %6361 = vmatpush3.bf16.msk.msra.mxu1 %vm6360_vm0, %v9185_v28  ;;  %vm2800_vm14 = vmor %vm2607_vm2, %vm2736_vm7  ;;  %vm2144_vm0 = vcmp.eq.s32.totalorder %v9226_v61, %v7667_v51  ;;  %vm2368_vm7 = vcmp.eq.s32.totalorder %v9225_v20, %v7723_v55 }
 0x467   :  { %vm2801_vm10 = vmor %vm2608_vm8, %vm2737_vm9  ;;  %vm9227_vm8 = vcmp.eq.s32.totalorder %v9225_v20, %v6842_v44 }
 0x468   :  { %vm2929_vm3 = vmor %vm2800_vm14, %vm2865_vm15  ;;  %vm2369_vm15 = vcmp.eq.s32.totalorder %v9226_v61, %v7723_v55  ;;  %vm9228_vm14 = vcmp.eq.s32.totalorder %v9226_v61, %v6842_v44 }
 0x469   :  { %vm2930_vm13 = vmor %vm2801_vm10, %vm2866_vm6 }
 0x46a   :  { %vm3058_vm12 = vmor %vm2929_vm3, %vm2994_vm11  ;;  %vm9229_vm3 = vcmp.eq.s32.totalorder %v9225_v20, %v7026_v17 }
 0x46b   :  { %vm3059_vm5 = vmor %vm2930_vm13, %vm2995_vm4  ;;  %vm3141_vm13 = vcmp.eq.s32.totalorder %v1853_v4, %v7694_v32 }
 0x46c   :  { %vm6392_vm2 = vmpackc.low %vm3059_vm5, %vm3058_vm12  ;;  %vm3270_vm12 = vcmp.eq.s32.totalorder %v1853_v4, %v7704_v33 }
 0x46d   :  { %6393 = vmatpush3.bf16.msk.msra.mxu0 %vm6392_vm2, %v9185_v28  ;;  %vm2303_vm9 = vmor %vm2143_vm1, %vm9227_vm8  ;;  %vm9230_vm1 = vcmp.eq.s32.totalorder %v9226_v61, %v7026_v17  ;;  %vm3142_vm2 = vcmp.eq.s32.totalorder %v1854_v60, %v7694_v32 }
 0x46e   :  { %vm2304_vm6 = vmor %vm2144_vm0, %vm9228_vm14  ;;  %vm3271_vm0 = vcmp.eq.s32.totalorder %v1854_v60, %v7704_v33 }
 0x46f   :  { %vm2432_vm10 = vmor %vm2303_vm9, %vm2368_vm7  ;;  %vm3399_vm7 = vcmp.eq.s32.totalorder %v1853_v4, %v7855_v56 }
 0x470   :  { %vm2433_vm11 = vmor %vm2304_vm6, %vm2369_vm15  ;;  %vm3400_vm15 = vcmp.eq.s32.totalorder %v1854_v60, %v7855_v56  ;;  %vm3528_vm6 = vcmp.eq.s32.totalorder %v1853_v4, %v7975_v34 }
 0x471   :  { %vm2528_vm4 = vmor %vm2432_vm10, %vm9229_vm3  ;;  %vm3529_vm3 = vcmp.eq.s32.totalorder %v1854_v60, %v7975_v34 }
 0x472   :  { %vm2529_vm5 = vmor %vm2433_vm11, %vm9230_vm1 }
 0x473   :  { %vm6362_vm8 = vmpackc.low %vm2529_vm5, %vm2528_vm4  ;;  %vm1902_vm4 = vcmp.eq.s32.totalorder %v9231_v35, %v7664_v48 }
 0x474   :  { %6363 = vmatprep.subr.msk.bf16.mxu1 %vm6362_vm8, %v9185_v28  ;;  %vm3334_vm9 = vmor %vm3141_vm13, %vm3270_vm12  ;;  %vm1903_vm8 = vcmp.eq.s32.totalorder %v9232_v54, %v7664_v48  ;;  %vm9233_vm12 = vcmp.eq.s32.totalorder %v9231_v35, %v6833_v41 }
 0x475   :  { %vm3335_vm14 = vmor %vm3142_vm2, %vm3271_vm0  ;;  %vm9234_vm0 = vcmp.eq.s32.totalorder %v9232_v54, %v6833_v41 }
 0x476   :  { %vm3463_vm10 = vmor %vm3334_vm9, %vm3399_vm7  ;;  %vm9235_vm9 = vcmp.eq.s32.totalorder %v9231_v35, %v6839_v43 }
 0x477   :  { %vm3464_vm1 = vmor %vm3335_vm14, %vm3400_vm15  ;;  %vm2609_vm14 = vcmp.eq.s32.totalorder %v1837_v1, %v7727_v58 }
 0x478   :  { %vm3592_vm11 = vmor %vm3463_vm10, %vm3528_vm6  ;;  %vm2738_vm6 = vcmp.eq.s32.totalorder %v1837_v1, %v7730_v63  ;;  %vm9236_vm10 = vcmp.eq.s32.totalorder %v9232_v54, %v6839_v43 }
 0x479   :  { %vm3593_vm5 = vmor %vm3464_vm1, %vm3529_vm3  ;;  %vm2610_vm1 = vcmp.eq.s32.totalorder %v1838_v53, %v7727_v58 }
 0x47a   :  { %vm6394_vm13 = vmpackc.low %vm3593_vm5, %vm3592_vm11  ;;  %vm2739_vm11 = vcmp.eq.s32.totalorder %v1838_v53, %v7730_v63  ;;  %vm2867_vm5 = vcmp.eq.s32.totalorder %v1837_v1, %v7684_v57 }
 0x47b   :  { %6395 = vmatprep.subr.msk.bf16.mxu0 %vm6394_vm13, %v9185_v28  ;;  %vm1966_vm2 = vmor %vm9233_vm12, %vm1902_vm4  ;;  %vm2868_vm13 = vcmp.eq.s32.totalorder %v1838_v53, %v7684_v57 }
 0x47c   :  { %vm1967_vm7 = vmor %vm9234_vm0, %vm1903_vm8 }
 0x47d   :  { %vm2062_vm15 = vmor %vm1966_vm2, %vm9235_vm9  ;;  %vm2996_vm2 = vcmp.eq.s32.totalorder %v1837_v1, %v7687_v46  ;;  %vm2997_vm9 = vcmp.eq.s32.totalorder %v1838_v53, %v7687_v46 }
 0x47e   :  { %vm2063_vm3 = vmor %vm1967_vm7, %vm9236_vm10 }
 0x47f   :  { %vm6364_vm4 = vmpackc.low %vm2063_vm3, %vm2062_vm15  ;;  %vm2370_vm3 = vcmp.eq.s32.totalorder %v9237_v6, %v7723_v55 }
 0x480   :  { %6365 = vmatpush3.bf16.msk.msra.mxu1 %vm6364_vm4, %v9185_v28  ;;  %vm2802_vm8 = vmor %vm2609_vm14, %vm2738_vm6  ;;  %vm2371_vm4 = vcmp.eq.s32.totalorder %v9238_v30, %v7723_v55  ;;  %vm9239_vm14 = vcmp.eq.s32.totalorder %v9237_v6, %v6842_v44 }
 0x481   :  { %vm2803_vm12 = vmor %vm2610_vm1, %vm2739_vm11  ;;  %vm9241_vm11 = vcmp.eq.s32.totalorder %v9238_v30, %v6842_v44 }
 0x482   :  { %vm2931_vm0 = vmor %vm2802_vm8, %vm2867_vm5  ;;  %vm2595_vm8 = vcmp.eq.s32.totalorder %v9237_v6, %v7727_v58 }
 0x483   :  { %vm2932_vm7 = vmor %vm2803_vm12, %vm2868_vm13  ;;  %vm9242_vm13 = vcmp.eq.s32.totalorder %v9237_v6, %v7026_v17 }
 0x484   :  { %vm3060_vm10 = vmor %vm2931_vm0, %vm2996_vm2  ;;  %vm2596_vm2 = vcmp.eq.s32.totalorder %v9238_v30, %v7727_v58  ;;  %vm9243_vm0 = vcmp.eq.s32.totalorder %v9238_v30, %v7026_v17 }
 0x485   :  { %vm3061_vm15 = vmor %vm2932_vm7, %vm2997_vm9 }
 0x486   :  { %vm6396_vm6 = vmpackc.low %vm3061_vm15, %vm3060_vm10  ;;  %vm3272_vm10 = vcmp.eq.s32.totalorder %v8092_v26, %v7704_v33 }
 0x487   :  { %6397 = vmatpush3.bf16.msk.msra.mxu0 %vm6396_vm6, %v9185_v28  ;;  %vm2434_vm1 = vmor %vm9239_vm14, %vm2370_vm3  ;;  %vm3401_vm3 = vcmp.eq.s32.totalorder %v8092_v26, %v7855_v56  ;;  %vm3402_vm6 = vcmp.eq.s32.totalorder %v1856_v24, %v7855_v56 }
 0x488   :  { %vm2435_vm5 = vmor %vm9241_vm11, %vm2371_vm4  ;;  %vm3273_vm4 = vcmp.eq.s32.totalorder %v1856_v24, %v7704_v33 }
 0x489   :  { %vm2530_vm12 = vmor %vm2434_vm1, %vm9242_vm13  ;;  %vm3530_vm1 = vcmp.eq.s32.totalorder %v8092_v26, %v7975_v34  ;;  %vm3659_vm13 = vcmp.eq.s32.totalorder %v8092_v26, %v8113_v5 }
 0x48a   :  { %vm2531_vm9 = vmor %vm2435_vm5, %vm9243_vm0  ;;  %vm3531_vm5 = vcmp.eq.s32.totalorder %v1856_v24, %v7975_v34 }
 0x48b   :  { %vm2659_vm7 = vmor %vm2530_vm12, %vm2595_vm8 }
 0x48c   :  { %vm2660_vm15 = vmor %vm2531_vm9, %vm2596_vm2  ;;  %vm3660_vm2 = vcmp.eq.s32.totalorder %v1856_v24, %v8113_v5  ;;  %vm1904_vm9 = vcmp.eq.s32.totalorder %v9252_v49, %v7664_v48 }
 0x48d   :  { %vm6366_vm14 = vmpackc.low %vm2660_vm15, %vm2659_vm7  ;;  %vm1905_vm7 = vcmp.eq.s32.totalorder %v9253_v52, %v7664_v48 }
 0x48e   :  { %6367 = vmatprep.subr.msk.bf16.mxu1 %vm6366_vm14, %v9185_v28  ;;  %vm3465_vm11 = vmor %vm3272_vm10, %vm3401_vm3  ;;  %vm2129_vm14 = vcmp.eq.s32.totalorder %v9252_v49, %v7667_v51 }
 0x48f   :  { %vm3466_vm8 = vmor %vm3273_vm4, %vm3402_vm6  ;;  %vm9260_vm4 = vcmp.eq.s32.totalorder %v9252_v49, %v6833_v41 }
 0x490   :  { %vm8127_vm12 = vmor %vm3465_vm11, %vm3530_vm1  ;;  %vm2130_vm1 = vcmp.eq.s32.totalorder %v9253_v52, %v7667_v51  ;;  %vm9261_vm11 = vcmp.eq.s32.totalorder %v9253_v52, %v6833_v41 }
 0x491   :  { %vm8136_vm0 = vmor %vm3466_vm8, %vm3531_vm5  ;;  %vm2740_vm8 = vcmp.eq.s32.totalorder %v8145_v23, %v7730_v63 }
 0x492   :  { %vm8167_vm10 = vmor %vm8127_vm12, %vm3659_vm13  ;;  %vm9262_vm13 = vcmp.eq.s32.totalorder %v9252_v49, %v6839_v43 }
 0x493   :  { %vm3724_vm3 = vmor %vm8136_vm0, %vm3660_vm2  ;;  %vm2741_vm2 = vcmp.eq.s32.totalorder %v8148_v7, %v7730_v63  ;;  %vm2869_vm0 = vcmp.eq.s32.totalorder %v8145_v23, %v7684_v57 }
 0x494   :  { %vm6398_vm15 = vmpackc.low %vm3724_vm3, %vm8167_vm10  ;;  %vm9267_vm10 = vcmp.eq.s32.totalorder %v9253_v52, %v6839_v43 }
 0x495   :  { %6399 = vmatprep.subr.msk.bf16.mxu0 %vm6398_vm15, %v9185_v28  ;;  %vm1968_vm6 = vmor %vm9260_vm4, %vm1904_vm9  ;;  %vm2870_vm9 = vcmp.eq.s32.totalorder %v8148_v7, %v7684_v57  ;;  %vm2999_vm15 = vcmp.eq.s32.totalorder %v8148_v7, %v7687_v46  ;;  %vm3127_vm4 = vcmp.eq.s32.totalorder %v8145_v23, %v7694_v32 }
 0x496   :  { %vm1969_vm5 = vmor %vm9261_vm11, %vm1905_vm7  ;;  %vm2998_vm7 = vcmp.eq.s32.totalorder %v8145_v23, %v7687_v46 }
 0x497   :  { %vm8222_vm12 = vmor %vm1968_vm6, %vm9262_vm13  ;;  %vm3128_vm6 = vcmp.eq.s32.totalorder %v8148_v7, %v7694_v32 }
 0x498   :  { %vm8241_vm3 = vmor %vm1969_vm5, %vm9267_vm10 }
 0x499   :  { %vm8271_vm5 = vmor %vm8222_vm12, %vm2129_vm14 }
 0x49a   :  { %vm2194_vm14 = vmor %vm8241_vm3, %vm2130_vm1 }
 0x49b   :  { %vm6368_vm12 = vmpackc.low %vm2194_vm14, %vm8271_vm5 }
 0x49c   :  { %6369 = vmatpush3.bf16.msk.msra.mxu1 %vm6368_vm12, %v9185_v28  ;;  %vm2933_vm1 = vmor %vm2740_vm8, %vm2869_vm0 }
 0x49d   :  { %vm2934_vm3 = vmor %vm2741_vm2, %vm2870_vm9 }
 0x49e   :  { %vm3062_vm0 = vmor %vm2933_vm1, %vm2998_vm7 }
 0x49f   :  { %vm3063_vm2 = vmor %vm2934_vm3, %vm2999_vm15 }
 0x4a0   :  { %vm8340_vm7 = vmor %vm3062_vm0, %vm3127_vm4 }
 0x4a1   :  { %vm3192_vm15 = vmor %vm3063_vm2, %vm3128_vm6 }
 0x4a2   :  { %vm6400_vm14 = vmpackc.low %vm3192_vm15, %vm8340_vm7 }
 0x4a3   :  { %6401 = vmatpush3.bf16.msk.msra.mxu0 %vm6400_vm14, %v9185_v28 }
 0x4e5   :  { %v8123_v27 = vpop.f32.mrb[12].mxu1  ;;  %v8125_v3 = vpop.f32.mrb[12].mxu0 }
 0x4e6   :  { %9244 = vst [vmem:[#allocation7_spill] sm:$0xff] %v8123_v27  ;;  %9245 = vst [vmem:[#allocation8_spill] sm:$0xff] %v8125_v3  ;;  %v8132_v50 = vpop.f32.mrb[13].mxu1  ;;  %v8134_v45 = vpop.f32.mrb[13].mxu0  ;;  %v1771_v62 = vmul.f32 %v8123_v27, %v8123_v27  ;;  %v1773_v2 = vmul.f32 %v8125_v3, %v8125_v3 }
 0x4e7   :  { %9248 = vst [vmem:[#allocation9_spill] sm:$0xff] %v8132_v50  ;;  %9249 = vst [vmem:[#allocation10_spill] sm:$0xff] %v8134_v45  ;;  %v1772_v12 = vmul.f32 %v8132_v50, %v8132_v50  ;;  %v1774_v13 = vmul.f32 %v8134_v45, %v8134_v45  ;;  %v8158_v15 = vpop.f32.mrb[14].mxu1  ;;  %v8160_v47 = vpop.f32.mrb[14].mxu0 }
 0x4e8   :  { %9254 = vst [vmem:[#allocation11_spill] sm:$0xff] %v8158_v15  ;;  %9255 = vst [vmem:[#allocation12_spill] sm:$0xff] %v8160_v47  ;;  %v1735_v61 = vadd.f32 %v8158_v15, %v8123_v27  ;;  %v1775_v4 = vmul.f32 %v8158_v15, %v8158_v15  ;;  %v1753_v60 = vadd.f32 %v8160_v47, %v8125_v3  ;;  %v8179_v54 = vpop.f32.mrb[15].mxu1  ;;  %v8181_v1 = vpop.f32.mrb[15].mxu0 }
 0x4e9   :  { %v1777_v35 = vmul.f32 %v8160_v47, %v8160_v47  ;;  %9258 = vst [vmem:[#allocation13_spill] sm:$0xff] %v8179_v54  ;;  %9259 = vst [vmem:[#allocation28_spill] sm:$0xff] %v8181_v1  ;;  %v1744_v53 = vadd.f32 %v8179_v54, %v8132_v50  ;;  %v1776_v30 = vmul.f32 %v8179_v54, %v8179_v54 }
 0x4ea   :  { %v1762_v37 = vadd.f32 %v8181_v1, %v8134_v45  ;;  %v1778_v11 = vmul.f32 %v8181_v1, %v8181_v1  ;;  %v1787_v47 = vadd.f32 %v1775_v4, %v1771_v62  ;;  %v8217_v62 = vadd.s32 496, %v6825_v38  ;;  %v9270_v4 = vld [vmem:[#allocation14_spill] sm:$0xff] }
 0x4eb   :  { %v1805_v24 = vadd.f32 %v1777_v35, %v1773_v2  ;;  %v1796_v22 = vadd.f32 %v1776_v30, %v1772_v12  ;;  %vm2372_vm11 = vcmp.eq.s32.totalorder %v9270_v4, %v7723_v55  ;;  %v8254_v35 = vadd.s32 504, %v6825_v38 }
 0x4ec   :  { %v1814_v20 = vadd.f32 %v1778_v11, %v1774_v13  ;;  %vm2597_vm10 = vcmp.eq.s32.totalorder %v9270_v4, %v7727_v58  ;;  %vm3274_vm9 = vcmp.eq.s32.totalorder %v8217_v62, %v7704_v33  ;;  %vm3403_vm5 = vcmp.eq.s32.totalorder %v8217_v62, %v7855_v56 }
 0x4ed   :  { %v8234_v11 = vpop.f32.mrb[16].mxu1  ;;  %v8236_v12 = vpop.f32.mrb[16].mxu0  ;;  %vm9282_vm4 = vcmp.eq.s32.totalorder %v9270_v4, %v6842_v44  ;;  %vm9284_vm3 = vcmp.eq.s32.totalorder %v9270_v4, %v7026_v17  ;;  %vm3275_vm7 = vcmp.eq.s32.totalorder %v8254_v35, %v7704_v33  ;;  %vm3404_vm14 = vcmp.eq.s32.totalorder %v8254_v35, %v7855_v56 }
 0x4ee   :  { %9265 = vst [vmem:[#allocation29_spill] sm:$0xff] %v8234_v11  ;;  %9266 = vst [vmem:[#allocation30_spill] sm:$0xff] %v8236_v12  ;;  %v1736_v30 = vadd.f32 %v1735_v61, %v8234_v11  ;;  %v1779_v1 = vmul.f32 %v8234_v11, %v8234_v11  ;;  %v1754_v45 = vadd.f32 %v1753_v60, %v8236_v12  ;;  %v8262_v54 = vpop.f32.mrb[17].mxu1  ;;  %v8264_v50 = vpop.f32.mrb[17].mxu0  ;;  %v9275_v61 = vld [vmem:[#allocation15_spill] sm:$0xff] }
 0x4ef   :  { %v1781_v3 = vmul.f32 %v8236_v12, %v8236_v12  ;;  %9271 = vst [vmem:[#allocation14_spill] sm:$0xff] %v8262_v54  ;;  %9272 = vst [vmem:[#allocation31_spill] sm:$0xff] %v8264_v50  ;;  %vm2373_vm13 = vcmp.eq.s32.totalorder %v9275_v61, %v7723_v55  ;;  %v1745_v60 = vadd.f32 %v1744_v53, %v8262_v54  ;;  %v8283_v18 = vpop.f32.mrb[18].mxu1  ;;  %v8285_v2 = vpop.f32.mrb[18].mxu0 }
 0x4f0   :  { %v1780_v12 = vmul.f32 %v8262_v54, %v8262_v54  ;;  %v1763_v11 = vadd.f32 %v1762_v37, %v8264_v50  ;;  %v1782_v27 = vmul.f32 %v8264_v50, %v8264_v50  ;;  %9276 = vst [vmem:[#allocation15_spill] sm:$0xff] %v8283_v18  ;;  %9277 = vst [vmem:[#allocation32_spill] sm:$0xff] %v8285_v2  ;;  %v8295_v54 = vpop.f32.mrb[19].mxu1  ;;  %v8297_v50 = vpop.f32.mrb[19].mxu0 }
 0x4f1   :  { %v1788_v8 = vadd.f32 %v1787_v47, %v1779_v1  ;;  %v1806_v53 = vadd.f32 %v1805_v24, %v1781_v3  ;;  %v1737_v40 = vadd.f32 %v1736_v30, %v8283_v18  ;;  %v1783_v37 = vmul.f32 %v8283_v18, %v8283_v18  ;;  %9278 = vst [vmem:[#allocation33_spill] sm:$0xff] %v8295_v54  ;;  %vm2436_vm6 = vmor %vm9282_vm4, %vm2372_vm11 }
 0x4f2   :  { %9279 = vst [vmem:[#allocation34_spill] sm:$0xff] %v8297_v50  ;;  %v1797_v26 = vadd.f32 %v1796_v22, %v1780_v12  ;;  %v1815_v14 = vadd.f32 %v1814_v20, %v1782_v27  ;;  %v1755_v52 = vadd.f32 %v1754_v45, %v8285_v2  ;;  %v1785_v47 = vmul.f32 %v8285_v2, %v8285_v2  ;;  %vm2532_vm0 = vmor %vm2436_vm6, %vm9284_vm3 }
 0x4f3   :  { %v1738_v3 = vrot.slane %v1737_v40, 4  ;;  %v1789_v15 = vadd.f32 %v1788_v8, %v1783_v37  ;;  %v1746_v27 = vadd.f32 %v1745_v60, %v8295_v54  ;;  %v1784_v45 = vmul.f32 %v8295_v54, %v8295_v54 }
 0x4f4   :  { %vm2598_vm8 = vcmp.eq.s32.totalorder %v9275_v61, %v7727_v58  ;;  %v1756_v1 = vrot.slane %v1755_v52, 4  ;;  %v1807_v24 = vadd.f32 %v1806_v53, %v1785_v47  ;;  %v1764_v22 = vadd.f32 %v1763_v11, %v8297_v50 }
 0x4f5   :  { %v1786_v8 = vmul.f32 %v8297_v50, %v8297_v50  ;;  %v1739_v20 = vadd.f32 %v1738_v3, %v1737_v40  ;;  %v1790_v12 = vrot.slane %v1789_v15, 4  ;;  %v1747_v13 = vrot.slane %v1746_v27, 4 }
 0x4f6   :  { %v1798_v30 = vadd.f32 %v1797_v26, %v1784_v45  ;;  %v1757_v11 = vadd.f32 %v1756_v1, %v1755_v52  ;;  %v1808_v60 = vrot.slane %v1807_v24, 4  ;;  %v1765_v53 = vrot.slane %v1764_v22, 4 }
 0x4f7   :  { %v1816_v37 = vadd.f32 %v1815_v14, %v1786_v8  ;;  %v1740_v26 = vrot.slane %v1739_v20, 2  ;;  %v1791_v47 = vadd.f32 %v1790_v12, %v1789_v15  ;;  %v1748_v3 = vadd.f32 %v1747_v13, %v1746_v27 }
 0x4f8   :  { %v1799_v45 = vrot.slane %v1798_v30, 4  ;;  %v1758_v50 = vrot.slane %v1757_v11, 2  ;;  %v1809_v52 = vadd.f32 %v1808_v60, %v1807_v24  ;;  %v1766_v1 = vadd.f32 %v1765_v53, %v1764_v22 }
 0x4f9   :  { %v1817_v2 = vrot.slane %v1816_v37, 4  ;;  %v1741_v14 = vadd.f32 %v1740_v26, %v1739_v20  ;;  %v1792_v8 = vrot.slane %v1791_v47, 2  ;;  %v1749_v54 = vrot.slane %v1748_v3, 2 }
 0x4fa   :  { %v1800_v18 = vadd.f32 %v1799_v45, %v1798_v30  ;;  %v1759_v7 = vadd.f32 %v1758_v50, %v1757_v11  ;;  %v1810_v15 = vrot.slane %v1809_v52, 2  ;;  %v1767_v27 = vrot.slane %v1766_v1, 2 }
 0x4fb   :  { %v1818_v24 = vadd.f32 %v1817_v2, %v1816_v37  ;;  %vm9283_vm12 = vcmp.eq.s32.totalorder %v9275_v61, %v6842_v44  ;;  %v1742_v22 = vrot.slane %v1741_v14, 1  ;;  %v1793_v20 = vadd.f32 %v1792_v8, %v1791_v47  ;;  %v9291_v8 = vld [vmem:[#allocation16_spill] sm:$0xff] }
 0x4fc   :  { %vm2437_vm1 = vmor %vm9283_vm12, %vm2373_vm13  ;;  %v1750_v12 = vadd.f32 %v1749_v54, %v1748_v3  ;;  %v1801_v13 = vrot.slane %v1800_v18, 2  ;;  %v1760_v30 = vrot.slane %v1759_v7, 1  ;;  %v1811_v50 = vadd.f32 %v1810_v15, %v1809_v52  ;;  %v6589_v2 = vld [vmem:[%s9015_s4 + $0x10] sm:$0xff]  }
 0x4fd   :  { %v1768_v11 = vadd.f32 %v1767_v27, %v1766_v1  ;;  %v1819_v60 = vrot.slane %v1818_v24, 2  ;;  %vm9285_vm11 = vcmp.eq.s32.totalorder %v9275_v61, %v7026_v17  ;;  %v1794_v55 = vrot.slane %v1793_v20, 1  ;;  %vm8371_vm13 = vmor %vm2532_vm0, %vm2597_vm10  ;;  %v9317_v27 = vld [vmem:[#allocation21_spill] sm:$0xff] }
 0x4fe   :  { %vm2533_vm2 = vmor %vm2437_vm1, %vm9285_vm11  ;;  %v1751_v54 = vrot.slane %v1750_v12, 1  ;;  %v1802_v53 = vadd.f32 %v1801_v13, %v1800_v18  ;;  %v1812_v37 = vrot.slane %v1811_v50, 1  ;;  %v1743_v4 = vadd.f32 %v1742_v22, %v1741_v14  ;;  %v9319_v22 = vld [vmem:[#allocation22_spill] sm:$0xff]  ;;  %v9321_v13 = vld [vmem:[#allocation23_spill] sm:$0xff] }
 0x4ff   :  { %vm2662_vm15 = vmor %vm2533_vm2, %vm2598_vm8  ;;  %v1769_v17 = vrot.slane %v1768_v11, 1  ;;  %v1820_v40 = vadd.f32 %v1819_v60, %v1818_v24  ;;  %vm3532_vm4 = vcmp.eq.s32.totalorder %v8217_v62, %v7975_v34  ;;  %v1795_v47 = vadd.f32 %v1794_v55, %v1793_v20  ;;  %v6582_v24 = vld [vmem:[%s9015_s4 + $0x40] sm:$0xff]   ;;  %v6587_v55 = vld [vmem:[%s9015_s4 + $0x50] sm:$0xff]  }
 0x500   :  { %vm6370_vm10 = vmpackc.low %vm2662_vm15, %vm8371_vm13  ;;  %v1803_v26 = vrot.slane %v1802_v53, 1  ;;  %v1761_v18 = vadd.f32 %v1760_v30, %v1759_v7  ;;  %vm3533_vm6 = vcmp.eq.s32.totalorder %v8254_v35, %v7975_v34  ;;  %v1813_v61 = vadd.f32 %v1812_v37, %v1811_v50  ;;  %v9293_v7 = vld [vmem:[#allocation17_spill] sm:$0xff]  ;;  %v6584_v50 = vld [vmem:[%s9015_s4 + $0x48] sm:$0xff]  }
 0x501   :  { %6371 = vmatprep.subr.msk.bf16.mxu1 %vm6370_vm10, %v9185_v28  ;;  %vm3467_vm8 = vmor %vm3274_vm9, %vm3403_vm5  ;;  %v1821_v58 = vrot.slane %v1820_v40, 1  ;;  %vm3661_vm1 = vcmp.eq.s32.totalorder %v8217_v62, %v8113_v5  ;;  %v1752_v3 = vadd.f32 %v1751_v54, %v1750_v12  ;;  %vm9288_vm3 = vcmask 1040384   ;;  %v6583_v12 = vld [vmem:[%s9015_s4] sm:$0xff]   ;;  %v6591_v54 = vld [vmem:[%s9015_s4 + $0x58] sm:$0xff]  }
 0x502   :  { %vm3468_vm12 = vmor %vm3275_vm7, %vm3404_vm14  ;;  %v1804_v45 = vadd.f32 %v1803_v26, %v1802_v53  ;;  %v1823_v56 = vsel %vm9288_vm3, %v1743_v4, %v1795_v47  ;;  %vm3662_vm9 = vcmp.eq.s32.totalorder %v8254_v35, %v8113_v5  ;;  %v1770_v52 = vadd.f32 %v1769_v17, %v1768_v11  ;;  %v9322_v11 = vld [vmem:[#allocation26_spill] sm:$0xff]  ;;  %v6593_v53 = vld [vmem:[%s9015_s4 + $0x18] sm:$0xff]  }
 0x503   :  { %vm3596_vm0 = vmor %vm3467_vm8, %vm3532_vm4  ;;  %v1822_v1 = vadd.f32 %v1821_v58, %v1820_v40  ;;  %vm1906_vm7 = vcmp.eq.s32.totalorder %v9291_v8, %v7664_v48  ;;  %vm1907_vm10 = vcmp.eq.s32.totalorder %v9293_v7, %v7664_v48  ;;  %vm9294_vm8 = vcmp.eq.s32.totalorder %v9291_v8, %v6833_v41  ;;  %v9323_v60 = vld [vmem:[#allocation6_spill] sm:$0xff] }
 0x504   :  { %vm9289_vm5 = vmmov %vm9288_vm3  ;;  %v1841_v5 = vadd.s32 368, %v6825_v38  ;;  %v1842_v35 = vadd.s32 376, %v6825_v38  ;;  %v4155_v48 = vadd.s32 160, %v6836_v42  ;;  %v4424_v15 = vadd.s32 416, %v6836_v42  ;;  %v6595_v37 = vld [vmem:[%s9015_s4 + $0x60] sm:$0xff]  }
 0x505   :  { %v1825_v34 = vsel %vm9289_vm5, %v1761_v18, %v1813_v61  ;;  %vm3597_vm11 = vmor %vm3468_vm12, %vm3533_vm6  ;;  %vm9295_vm12 = vcmp.eq.s32.totalorder %v9293_v7, %v6833_v41  ;;  %vm2132_vm5 = vcmp.eq.s32.totalorder %v9293_v7, %v7667_v51  ;;  %v4459_v20 = vadd.s32 448, %v6836_v42  ;;  %v6597_v17 = vld [vmem:[%s9015_s4 + $0x20] sm:$0xff]  }
 0x506   :  { %vm9290_vm2 = vmmov %vm9288_vm3  ;;  %vm2131_vm3 = vcmp.eq.s32.totalorder %v9291_v8, %v7667_v51  ;;  %v4214_v51 = vadd.s32 224, %v6836_v42  ;;  %v4494_v30 = vadd.s32 480, %v6836_v42 }
 0x507   :  { %v1824_v14 = vsel %vm9290_vm2, %v1752_v3, %v1804_v45  ;;  %vm3725_vm13 = vmor %vm3596_vm0, %vm3661_vm1  ;;  %vm9296_vm0 = vcmp.eq.s32.totalorder %v9291_v8, %v6839_v43  ;;  %v4284_v8 = vadd.s32 288, %v6836_v42 }
 0x508   :  { %3919 = vmatprep.mubr.f32.mxu1 %v1824_v14  ;;  %vm9292_vm15 = vmmov %vm9290_vm2  ;;  %v4249_v14 = vadd.s32 256, %v6836_v42 }
 0x509   :  { %v1826_v62 = vsel %vm9292_vm15, %v1770_v52, %v1822_v1  ;;  %vm3726_vm14 = vmor %vm3597_vm11, %vm3662_vm9  ;;  %vm9297_vm11 = vcmp.eq.s32.totalorder %v9293_v7, %v6839_v43  ;;  %vm2871_vm15 = vcmp.eq.s32.totalorder %v1841_v5, %v7684_v57  ;;  %v9298_v43 = vmov 0.0   ;;  %v9325_v7 = vld [vmem:[#allocation25_spill] sm:$0xff] }
 0x50a   :  { %3989 = vmatprep.mubr.f32.mxu0 %v1826_v62  ;;  %vm6402_vm4 = vmpackc.low %vm3726_vm14, %vm3725_vm13  ;;  %v9324_v62 = vld [vmem:[#allocation24_spill] sm:$0xff] }
 0x50b   :  { %6403 = vmatprep.subr.msk.bf16.mxu0 %vm6402_vm4, %v9185_v28  ;;  %vm1970_vm6 = vmor %vm9294_vm8, %vm1906_vm7  ;;  %vm2742_vm7 = vcmp.eq.s32.totalorder %v1841_v5, %v7730_v63  ;;  %vm2872_vm4 = vcmp.eq.s32.totalorder %v1842_v35, %v7684_v57  ;;  %v4039_v57 = vadd.s32 32, %v6836_v42 }
 0x50c   :  { %vm1971_vm1 = vmor %vm9295_vm12, %vm1907_vm10  ;;  %vm2743_vm10 = vcmp.eq.s32.totalorder %v1842_v35, %v7730_v63 }
 0x50d   :  { %vm2066_vm9 = vmor %vm1970_vm6, %vm9296_vm0  ;;  %vm3000_vm6 = vcmp.eq.s32.totalorder %v1841_v5, %v7687_v46  ;;  %vm3001_vm0 = vcmp.eq.s32.totalorder %v1842_v35, %v7687_v46  ;;  %v4041_v46 = vadd.s32 32, %v6936_v59 }
 0x50e   :  { %vm2067_vm2 = vmor %vm1971_vm1, %vm9297_vm11  ;;  %vm3130_vm11 = vcmp.eq.s32.totalorder %v1842_v35, %v7694_v32  ;;  %v9326_v35 = vld [vmem:[#allocation27_spill] sm:$0xff] }
 0x50f   :  { %vm2195_vm13 = vmor %vm2066_vm9, %vm2131_vm3  ;;  %vm3129_vm3 = vcmp.eq.s32.totalorder %v1841_v5, %v7694_v32  ;;  %v9311_v32 = vld [vmem:[#allocation19_spill] sm:$0xff]  ;;  %v4319_v5 = vadd.s32 320, %v6836_v42 }
 0x510   :  { %vm2196_vm14 = vmor %vm2067_vm2, %vm2132_vm5 }
 0x511   :  { %vm6372_vm8 = vmpackc.low %vm2196_vm14, %vm2195_vm13 }
 0x512   :  { %6373 = vmatpush3.bf16.msk.msra.mxu1 %vm6372_vm8, %v9185_v28  ;;  %vm2935_vm12 = vmor %vm2742_vm7, %vm2871_vm15  ;;  %vm4159_vm7 = vcmp.eq.s32.totalorder %v6842_v44, %v6945_v0  ;;  %vm4163_vm15 = vcmp.eq.s32.totalorder %v6842_v44, %v4155_v48  ;;  %vm9300_vm8 = vcmp.eq.s32.totalorder %v6842_v44, %v7312_v31  ;;  %v4156_v0 = vadd.s32 160, %v6933_v36 }
 0x513   :  { %vm2936_vm1 = vmor %vm2743_vm10, %vm2872_vm4  ;;  %vm9299_vm10 = vcmp.eq.s32.totalorder %v6842_v44, %v6828_v39  ;;  %v4096_v39 = vadd.s32 96, %v6836_v42  ;;  %v4215_v31 = vadd.s32 224, %v6933_v36  ;;  %v4390_v48 = vadd.s32 384, %v6933_v36 }
 0x514   :  { %vm3064_vm9 = vmor %vm2935_vm12, %vm3000_vm6  ;;  %vm4218_vm12 = vcmp.eq.s32.totalorder %v6842_v44, %v9237_v6  ;;  %v9313_v6 = vld [vmem:[#allocation20_spill] sm:$0xff] }
 0x515   :  { %vm3065_vm2 = vmor %vm2936_vm1, %vm3001_vm0  ;;  %3920 = vmatmul.mubr.f32.vlgmr.msra.gmra.mrb[10].mxu1 %v1823_v56  ;;  %vm9301_vm0 = vcmp.eq.s32.totalorder %v6842_v44, %v7023_v16  ;;  %v4157_v16 = vadd.s32 160, %v6936_v59 }
 0x516   :  { %vm3193_vm5 = vmor %vm3064_vm9, %vm3129_vm3  ;;  %4629 = vmatprep.mubr.f32.mxu1 %v9298_v43  ;;  %vm4222_vm3 = vcmp.eq.s32.totalorder %v6842_v44, %v4214_v51  ;;  %vm9302_vm9 = vcmp.eq.s32.totalorder %v6842_v44, %v7315_v29  ;;  %v4216_v29 = vadd.s32 224, %v6936_v59  ;;  %v4425_v51 = vadd.s32 416, %v6933_v36 }
 0x517   :  { %vm3194_vm13 = vmor %vm3065_vm2, %vm3130_vm11 }
 0x518   :  { %vm6404_vm14 = vmpackc.low %vm3194_vm13, %vm3193_vm5  ;;  %vm4044_vm13 = vcmp.eq.s32.totalorder %v6833_v41, %v4039_v57  ;;  %v4354_v57 = vadd.s32 352, %v6836_v42 }
 0x519   :  { %6405 = vmatpush3.bf16.msk.msra.mxu0 %vm6404_vm14, %v9185_v28  ;;  %vm4175_vm4 = vmor %vm9299_vm10, %vm4159_vm7  ;;  %vm9303_vm7 = vcmp.eq.s32.totalorder %v6833_v41, %v6990_v10 }
 0x51a   :  { %vm4179_vm6 = vmor %vm9300_vm8, %vm4163_vm15  ;;  %vm9304_vm15 = vcmp.eq.s32.totalorder %v6833_v41, %v6825_v38  ;;  %6209 = vmatprep.subr.bf16.mxu0 %v6582_v24  ;;  %v1733_v24 = vld [vmem:[%s9016_s9] sm:$0x1] }
 0x51b   :  { %vm4199_vm1 = vmor %vm4175_vm4, %vm9301_vm0  ;;  %vm9305_vm4 = vcmp.eq.s32.totalorder %v6833_v41, %v6836_v42 }
 0x51c   :  { %3990 = vmatmul.mubr.f32.vlgmr.msra.gmra.mrb[10].mxu0 %v1825_v34  ;;  %vm4203_vm11 = vmor %vm4179_vm6, %vm9302_vm9  ;;  %vm4099_vm6 = vcmp.eq.s32.totalorder %v6833_v41, %v9252_v49  ;;  %v4098_v49 = vadd.s32 96, %v6936_v59 }
 0x51d   :  { %vm4234_vm2 = vmor %vm4199_vm1, %vm4218_vm12  ;;  %vm9306_vm12 = vcmp.eq.s32.totalorder %v6833_v41, %v7046_v19  ;;  %vm4103_vm1 = vcmp.eq.s32.totalorder %v6833_v41, %v4096_v39  ;;  %v4040_v19 = vadd.s32 32, %v6933_v36  ;;  %6210 = vmatpush3.bf16.msra.mxu0 %v6583_v12  ;;  %v4391_v39 = vadd.s32 384, %v6936_v59 }
 0x51e   :  { %vm4238_vm5 = vmor %vm4203_vm11, %vm4222_vm3  ;;  %vm9307_vm3 = vcmp.eq.s32.totalorder %v6833_v41, %v7318_v25  ;;  %v9309_v25 = vld [vmem:[#allocation18_spill] sm:$0xff]  ;;  %6211 = vmatprep.subr.bf16.mxu0 %v6584_v50  ;;  %v4321_v12 = vadd.s32 320, %v6936_v59  ;;  %v4355_v50 = vadd.s32 352, %v6933_v36 }
 0x51f   :  { %vm6406_vm14 = vmpackc.low %vm4238_vm5, %vm4234_vm2  ;;  %vm4167_vm2 = vcmp.eq.s32.totalorder %v6842_v44, %v4156_v0  ;;  %v4426_v0 = vadd.s32 416, %v6936_v59 }
 0x520   :  { %6407 = vmatprep.subr.msk.bf16.mxu1 %vm6406_vm14, %v9185_v28  ;;  %vm4056_vm10 = vmor %vm9304_vm15, %vm9303_vm7  ;;  %vm9308_vm7 = vcmp.eq.s32.totalorder %v6842_v44, %v7349_v21  ;;  %v4097_v21 = vadd.s32 96, %v6933_v36 }
 0x521   :  { %vm4060_vm8 = vmor %vm9305_vm4, %vm4044_vm13  ;;  %vm4171_vm13 = vcmp.eq.s32.totalorder %v6842_v44, %v4157_v16  ;;  %v4460_v16 = vadd.s32 448, %v6933_v36 }
 0x522   :  { %vm4080_vm0 = vmor %vm4056_vm10, %vm9306_vm12  ;;  %vm9310_vm10 = vcmp.eq.s32.totalorder %v6842_v44, %v9309_v25  ;;  %v9329_v25 = vld [vmem:[#allocation2_spill] sm:$0xff] }
 0x523   :  { %vm4084_vm9 = vmor %vm4060_vm8, %vm9307_vm3  ;;  %vm4226_vm8 = vcmp.eq.s32.totalorder %v6842_v44, %v4215_v31  ;;  %v4461_v31 = vadd.s32 448, %v6936_v59 }
 0x524   :  { %vm4115_vm11 = vmor %vm4080_vm0, %vm4099_vm6  ;;  %vm9312_vm6 = vcmp.eq.s32.totalorder %v6842_v44, %v9311_v32  ;;  %vm4230_vm0 = vcmp.eq.s32.totalorder %v6842_v44, %v4216_v29  ;;  %v4250_v32 = vadd.s32 256, %v6933_v36 }
 0x525   :  { %vm4119_vm5 = vmor %vm4084_vm9, %vm4103_vm1  ;;  %vm9314_vm1 = vcmp.eq.s32.totalorder %v6842_v44, %v9313_v6  ;;  %v4389_v44 = vadd.s32 384, %v6836_v42  ;;  %v4285_v6 = vadd.s32 288, %v6933_v36 }
 0x526   :  { %vm6408_vm14 = vmpackc.low %vm4119_vm5, %vm4115_vm11  ;;  %vm4048_vm11 = vcmp.eq.s32.totalorder %v6833_v41, %v4040_v19  ;;  %vm4052_vm5 = vcmp.eq.s32.totalorder %v6833_v41, %v4041_v46  ;;  %v9327_v19 = vmov 0 }
 0x527   :  { %6409 = vmatpush1.bf16.msk.msra.mxu1 %vm6408_vm14, %v9185_v28  ;;  %vm4183_vm15 = vmor %vm9308_vm7, %vm4167_vm2  ;;  %vm9315_vm14 = vcmp.eq.s32.totalorder %v6833_v41, %v6933_v36 }
 0x528   :  { %vm4187_vm4 = vmor %vm9310_vm10, %vm4171_vm13 }
 0x529   :  { %vm4207_vm12 = vmor %vm4183_vm15, %vm9312_vm6  ;;  %vm9316_vm15 = vcmp.eq.s32.totalorder %v6833_v41, %v6936_v59 }
 0x52a   :  { %vm4211_vm3 = vmor %vm4187_vm4, %vm9314_vm1  ;;  %vm4107_vm4 = vcmp.eq.s32.totalorder %v6833_v41, %v4097_v21 }
 0x52b   :  { %vm4242_vm9 = vmor %vm4207_vm12, %vm4226_vm8  ;;  %vm9318_vm8 = vcmp.eq.s32.totalorder %v6833_v41, %v9317_v27  ;;  %vm4111_vm12 = vcmp.eq.s32.totalorder %v6833_v41, %v4098_v49  ;;  %v4251_v49 = vadd.s32 256, %v6936_v59  ;;  %v4496_v27 = vadd.s32 480, %v6936_v59 }
 0x52c   :  { %vm4246_vm2 = vmor %vm4211_vm3, %vm4230_vm0  ;;  %vm9320_vm0 = vcmp.eq.s32.totalorder %v6833_v41, %v9319_v22  ;;  %v4320_v22 = vadd.s32 320, %v6933_v36 }
 0x52d   :  { %vm6410_vm13 = vmpackc.low %vm4246_vm2, %vm4242_vm9  ;;  %vm4395_vm9 = vcmp.eq.s32.totalorder %v7704_v33, %v9321_v13 }
 0x52e   :  { %6411 = vmatprep.subr.msk.bf16.mxu1 %vm6410_vm13, %v9185_v28  ;;  %vm4064_vm7 = vmor %vm9315_vm14, %vm4048_vm11  ;;  %vm4430_vm11 = vcmp.eq.s32.totalorder %v7704_v33, %v7834_v9  ;;  %vm4434_vm13 = vcmp.eq.s32.totalorder %v7704_v33, %v4424_v15  ;;  %v6585_v9 = vld [vmem:[%s9015_s4 + $0x8] sm:$0xff]  }
 0x52f   :  { %vm4068_vm10 = vmor %vm9316_vm15, %vm4052_vm5  ;;  %vm4399_vm5 = vcmp.eq.s32.totalorder %v7704_v33, %v4389_v44  ;;  %6212 = vmatpush3.bf16.msra.mxu0 %v6585_v9  ;;  %v4286_v44 = vadd.s32 288, %v6936_v59  ;;  %v4356_v9 = vadd.s32 352, %v6936_v59 }
 0x530   :  { %vm4088_vm6 = vmor %vm4064_vm7, %vm9318_vm8  ;;  %vm4465_vm7 = vcmp.eq.s32.totalorder %v7704_v33, %v9322_v11  ;;  %vm4500_vm8 = vcmp.eq.s32.totalorder %v7704_v33, %v9323_v60  ;;  %6213 = vmatprep.subr.bf16.mxu0 %v6587_v55  ;;  %v1734_v11 = vld [vmem:[%s9017_s10] sm:$0x1] }
 0x531   :  { %vm4092_vm1 = vmor %vm4068_vm10, %vm9320_vm0  ;;  %vm4469_vm10 = vcmp.eq.s32.totalorder %v7704_v33, %v4459_v20 }
 0x532   :  { %vm4123_vm3 = vmor %vm4088_vm6, %vm4107_vm4 }
 0x533   :  { %vm4127_vm2 = vmor %vm4092_vm1, %vm4111_vm12  ;;  %vm4504_vm12 = vcmp.eq.s32.totalorder %v7704_v33, %v4494_v30  ;;  %6214 = vmatpush3.bf16.msra.mxu0 %v6589_v2  ;;  %v9336_v2 = vld [vmem:[#allocation3_spill] sm:$0xff] }
 0x534   :  { %vm6412_vm14 = vmpackc.low %vm4127_vm2, %vm4123_vm3  ;;  %6215 = vmatprep.subr.bf16.mxu0 %v6591_v54  ;;  %vm4289_vm2 = vcmp.eq.s32.totalorder %v7730_v63, %v9325_v7  ;;  %v6612_v7 = vld [vmem:[%s9015_s4 + $0xf8] sm:$0xff]  }
 0x535   :  { %6413 = vmatpush1.bf16.msk.msra.mxu1 %vm6412_vm14, %v9185_v28  ;;  %vm4446_vm15 = vmor %vm4395_vm9, %vm4430_vm11  ;;  %vm4254_vm11 = vcmp.eq.s32.totalorder %v7730_v63, %v9324_v62  ;;  %v6611_v62 = vld [vmem:[%s9015_s4 + $0xb0] sm:$0xff]  }
 0x536   :  { %vm4450_vm4 = vmor %vm4399_vm5, %vm4434_vm13  ;;  %vm4258_vm5 = vcmp.eq.s32.totalorder %v7730_v63, %v4249_v14  ;;  %vm4293_vm13 = vcmp.eq.s32.totalorder %v7730_v63, %v4284_v8  ;;  %v6609_v14 = vld [vmem:[%s9015_s4 + $0x38] sm:$0xff]   ;;  %v6610_v8 = vld [vmem:[%s9015_s4 + $0xf0] sm:$0xff]  }
 0x537   :  { %vm4481_vm6 = vmor %vm4446_vm15, %vm4465_vm7  ;;  %6216 = vmatpush3.bf16.msra.mxu0 %v6593_v53  ;;  %vm4324_vm7 = vcmp.eq.s32.totalorder %v7730_v63, %v9326_v35 }
 0x538   :  { %vm4485_vm0 = vmor %vm4450_vm4, %vm4469_vm10  ;;  %6217 = vmatprep.subr.bf16.mxu0 %v6595_v37  ;;  %vm4328_vm10 = vcmp.eq.s32.totalorder %v7730_v63, %v4319_v5  ;;  %v6588_v37 = vld [vmem:[%s9015_s4 + $0x80] sm:$0xff]   ;;  %v6613_v5 = vld [vmem:[%s9015_s4 + $0xb8] sm:$0xff]  }
 0x539   :  { %vm4516_vm1 = vmor %vm4481_vm6, %vm4500_vm8  ;;  %vm4359_vm8 = vcmp.eq.s32.totalorder %v7730_v63, %v8145_v23  ;;  %vm4403_vm6 = vcmp.eq.s32.totalorder %v7704_v33, %v4390_v48  ;;  %v4495_v23 = vadd.s32 480, %v6933_v36 }
 0x53a   :  { %vm4520_vm3 = vmor %vm4485_vm0, %vm4504_vm12  ;;  %vm4438_vm12 = vcmp.eq.s32.totalorder %v7704_v33, %v4425_v51 }
 0x53b   :  { %vm6414_vm9 = vmpackc.low %vm4520_vm3, %vm4516_vm1  ;;  %6218 = vmatpush3.bf16.msra.mxu0 %v6597_v17  ;;  %vm4363_vm1 = vcmp.eq.s32.totalorder %v7730_v63, %v4354_v57  ;;  %v6590_v17 = vld [vmem:[%s9015_s4 + $0xc8] sm:$0xff]   ;;  %v9340_v57 = vld [vmem:[#allocation4_spill] sm:$0xff] }
 0x53c   :  { %6415 = vmatprep.subr.msk.bf16.mxu1 %vm6414_vm9, %v9185_v28  ;;  %vm4305_vm14 = vmor %vm4254_vm11, %vm4289_vm2  ;;  %vm4407_vm9 = vcmp.eq.s32.totalorder %v7704_v33, %v4391_v39  ;;  %vm4442_vm11 = vcmp.eq.s32.totalorder %v7704_v33, %v4426_v0 }
 0x53d   :  { %vm4309_vm15 = vmor %vm4258_vm5, %vm4293_vm13  ;;  %vm4473_vm5 = vcmp.eq.s32.totalorder %v7704_v33, %v4460_v16 }
 0x53e   :  { %vm4340_vm4 = vmor %vm4305_vm14, %vm4324_vm7  ;;  %vm4477_vm7 = vcmp.eq.s32.totalorder %v7704_v33, %v4461_v31  ;;  %v9341_v31 = vld [vmem:[#allocation7_spill] sm:$0xff] }
 0x53f   :  { %vm4344_vm0 = vmor %vm4309_vm15, %vm4328_vm10  ;;  %vm4508_vm10 = vcmp.eq.s32.totalorder %v7704_v33, %v4495_v23 }
 0x540   :  { %vm8601_vm3 = vmor %vm4340_vm4, %vm4359_vm8  ;;  %vm4262_vm4 = vcmp.eq.s32.totalorder %v7730_v63, %v4250_v32  ;;  %vm4297_vm8 = vcmp.eq.s32.totalorder %v7730_v63, %v4285_v6  ;;  %v9344_v6 = vld [vmem:[#allocation15_spill] sm:$0xff] }
 0x541   :  { %v9328_v19 = vsel %vm8601_vm3, 4294967295, %v9327_v19  ;;  %vm4454_vm2 = vmor %vm4403_vm6, %vm4438_vm12  ;;  %vm4367_vm6 = vcmp.eq.s32.totalorder %v7730_v63, %v4355_v50 }
 0x542   :  { %vm8612_vm13 = vmor %vm4344_vm0, %vm4363_vm1  ;;  %vm4266_vm0 = vcmp.eq.s32.totalorder %v7730_v63, %v4251_v49  ;;  %vm4301_vm1 = vcmp.eq.s32.totalorder %v7730_v63, %v4286_v44  ;;  %v9345_v49 = vld [vmem:[#allocation9_spill] sm:$0xff] }
 0x543   :  { %vm4458_vm14 = vmor %vm4407_vm9, %vm4442_vm11  ;;  %vm4512_vm9 = vcmp.eq.s32.totalorder %v7704_v33, %v4496_v27 }
 0x544   :  { %vm4489_vm15 = vmor %vm4454_vm2, %vm4473_vm5  ;;  %vm4332_vm5 = vcmp.eq.s32.totalorder %v7730_v63, %v4320_v22 }
 0x545   :  { %vm4493_vm12 = vmor %vm4458_vm14, %vm4477_vm7  ;;  %vm4336_vm7 = vcmp.eq.s32.totalorder %v7730_v63, %v4321_v12 }
 0x546   :  { %vm8636_vm11 = vmor %vm4489_vm15, %vm4508_vm10 }
 0x547   :  { %vm4313_vm2 = vmor %vm4262_vm4, %vm4297_vm8  ;;  %vm4371_vm4 = vcmp.eq.s32.totalorder %v7730_v63, %v4356_v9  ;;  %vm4561_vm8 = vcmask 261120   ;;  %v6586_v63 = vld [vmem:[%s9015_s4 + $0xc0] sm:$0xff]  }
 0x548   :  { %vm4317_vm14 = vmor %vm4266_vm0, %vm4301_vm1 }
 0x549   :  { %vm8648_vm15 = vmor %vm4493_vm12, %vm4512_vm9  ;;  %vm9337_vm12 = vcmask 1040384  }
 0x54a   :  { %vm4348_vm10 = vmor %vm4313_vm2, %vm4332_vm5  ;;  %vm9338_vm2 = vnez %v9328_v19  ;;  %v9342_v19 = vld [vmem:[#allocation11_spill] sm:$0xff] }
 0x54b   :  { %vm4352_vm3 = vmor %vm4317_vm14, %vm4336_vm7 }
 0x54c   :  { %vm6418_vm0 = vmpackc.low %vm8648_vm15, %vm8636_vm11 }
 0x54d   :  { %vm4383_vm1 = vmor %vm4348_vm10, %vm4367_vm6 }
 0x54e   :  { %vm4387_vm9 = vmor %vm4352_vm3, %vm4371_vm4 }
 0x54f   :  { %vm9339_vm5 = vmpackc.low %vm8612_vm13, %vm9338_vm2  ;;  %vm9357_vm13 = vcmp.eq.s32.totalorder %v6836_v42, %v6833_v41  ;;  %vm9359_vm2 = vcmp.eq.s32.totalorder %v6936_v59, %v6833_v41 }
 0x550   :  { %vm6420_vm14 = vmpackc.low %vm4387_vm9, %vm4383_vm1  ;;  %vm9358_vm1 = vcmp.eq.s32.totalorder %v6933_v36, %v6833_v41 }
 0x5e8   :  { %v6171_v40 = vpop.f32.mrb[10].mxu1 }
 0x5e9   :  { %v6172_v4 = vpop.f32.mrb[11].mxu1 }
 0x5ea   :  { %v6173_v26 = vadd.f32 %v6172_v4, %v6171_v40  ;;  %v6592_v40 = vld [vmem:[%s9015_s4 + $0x88] sm:$0xff]   ;;  %v6596_v4 = vld [vmem:[%s9015_s4 + $0x90] sm:$0xff]  }
 0x5ef   :  { %v6206_v47 = vpop.f32.mrb[10].mxu0 }
 0x5f0   :  { %v6207_v18 = vpop.f32.mrb[11].mxu0 }
 0x5f1   :  { %v6208_v58 = vadd.f32 %v6207_v18, %v6206_v47  ;;  %v6599_v47 = vld [vmem:[%s9015_s4 + $0x68] sm:$0xff]   ;;  %v6600_v18 = vld [vmem:[%s9015_s4 + $0x98] sm:$0xff]  }
 0x5f2   :  { %6219 = vmatprep.subr.bf16.mxu0 %v6599_v47 }
 0x5f3   :  { %v3992_v61 = vadd.f32 %v6208_v58, %v6173_v26  ;;  %v6598_v26 = vld [vmem:[%s9015_s4 + $0xd8] sm:$0xff]   ;;  %v6601_v58 = vld [vmem:[%s9015_s4 + $0x28] sm:$0xff]  }
 0x5f4   :  { %6220 = vmatpush3.bf16.msra.mxu0 %v6601_v58 }
 0x5f5   :  { %v8572_v3 = vmul.f32 0.001953125, %v3992_v61  ;;  %v6602_v61 = vld [vmem:[%s9015_s4 + $0xe0] sm:$0xff]  }
 0x5f7   :  { %v3996_v45 = vmul.f32 %v8572_v3, %v8572_v3 }
 0x5f9   :  { %v3998_v56 = vrot.slane %v3996_v45, 7  ;;  %v6604_v45 = vld [vmem:[%s9015_s4 + $0xa0] sm:$0xff]  }
 0x5fb   :  { %v4000_v52 = vsub.f32 %v8572_v3, %v3998_v56  ;;  %v6605_v56 = vld [vmem:[%s9015_s4 + $0x30] sm:$0xff]  }
 0x5fd   :  { %v4001_v1 = vmax.f32 %v4000_v52, 0.0  ;;  %v6606_v52 = vld [vmem:[%s9015_s4 + $0xe8] sm:$0xff]  }
 0x5ff   :  { %v4002_v34 = vadd.f32 1e-05, %v4001_v1  ;;  %v6607_v1 = vld [vmem:[%s9015_s4 + $0x78] sm:$0xff]  }
 0x601   :  { %6618 = vrsqrt.f32 %v4002_v34  ;;  %v6608_v34 = vld [vmem:[%s9015_s4 + $0xa8] sm:$0xff]  }
 0x60b   :  { %v6619_v29 = vpop.eup %6618 }
 0x60c   :  { %v4011_v46 = vrot.slane %v6619_v29, %v9329_v25 }
 0x60e   :  { %v4012_v15 = vcombine.high %v4011_v46, %v4011_v46  ;;  %v9343_v46 = vld [vmem:[#allocation29_spill] sm:$0xff] }
 0x610   :  { %v4019_v20 = vrot.slane %v4012_v15, %v9329_v25  ;;  %v9346_v15 = vld [vmem:[#allocation13_spill] sm:$0xff] }
 0x612   :  { %v4021_v13 = vmul.f32 %v4019_v20, %v1733_v24  ;;  %v9347_v24 = vld [vmem:[#allocation14_spill] sm:$0xff]  ;;  %v9348_v20 = vld [vmem:[#allocation33_spill] sm:$0xff] }
 0x614   :  { %v4022_v60 = vmul.f32 %v4021_v13, %v8572_v3  ;;  %v6603_v3 = vld [vmem:[%s9015_s4 + $0x70] sm:$0xff]  }
 0x615   :  { %6221 = vmatprep.subr.bf16.mxu0 %v6603_v3 }
 0x616   :  { %v4023_v55 = vsub.f32 %v1734_v11, %v4022_v60  ;;  %6222 = vmatpush3.bf16.msra.mxu0 %v6605_v56 }
 0x617   :  { %6223 = vmatprep.subr.bf16.mxu0 %v6607_v1 }
 0x618   :  { %v4028_v54 = vrot.slane %v4023_v55, %v9336_v2 }
 0x61a   :  { %v4030_v53 = vsel %vm9337_vm12, %v4021_v13, %v4028_v54  ;;  %6224 = vmatpush3.bf16.msra.mxu0 %v6609_v14 }
 0x61b   :  { %6019 = vmatmul.mubr.msk.f32.vlgmr.msra.gmra.mrb[20].mxu1 %vm4561_vm8, %v4030_v53 }
 0x61c   :  { %6417 = vmatpush1.bf16.msk.msra.mxu1 %vm9339_vm5, %v9185_v28  ;;  %4700 = vmatprep.mubr.f32.mxu1 %v9298_v43 }
 0x61d   :  { %6419 = vmatprep.subr.msk.bf16.mxu1 %vm6418_vm0, %v9185_v28 }
 0x620   :  { %6421 = vmatpush1.bf16.msk.msra.mxu1 %vm6420_vm14, %v9185_v28  ;;  %v6594_v28 = vld [vmem:[%s9015_s4 + $0xd0] sm:$0xff]  }
 0x621   :  { %6237 = vmatprep.subr.bf16.mxu1 %v6586_v63 }
 0x623   :  { %6028 = vmatmul.mubr.msk.f32.vlgmr.msra.gmra.mrb[22].mxu1 %vm4561_vm8, %v4030_v53 }
 0x624   :  { %6238 = vmatpush3.bf16.msra.mxu1 %v6588_v37 }
 0x625   :  { %6239 = vmatprep.subr.bf16.mxu1 %v6590_v17 }
 0x628   :  { %6240 = vmatpush3.bf16.msra.mxu1 %v6592_v40 }
 0x629   :  { %6241 = vmatprep.subr.bf16.mxu1 %v6594_v28 }
 0x62c   :  { %6242 = vmatpush3.bf16.msra.mxu1 %v6596_v4 }
 0x62d   :  { %6243 = vmatprep.subr.bf16.mxu1 %v6598_v26 }
 0x630   :  { %6244 = vmatpush3.bf16.msra.mxu1 %v6600_v18 }
 0x631   :  { %6245 = vmatprep.subr.bf16.mxu1 %v6602_v61 }
 0x634   :  { %6246 = vmatpush3.bf16.msra.mxu1 %v6604_v45 }
 0x635   :  { %6247 = vmatprep.subr.bf16.mxu1 %v6606_v52 }
 0x638   :  { %6248 = vmatpush3.bf16.msra.mxu1 %v6608_v34  ;;  %v9349_v34 = vld [vmem:[#allocation8_spill] sm:$0xff] }
 0x639   :  { %6249 = vmatprep.subr.bf16.mxu1 %v6610_v8  ;;  %v9350_v8 = vld [vmem:[#allocation12_spill] sm:$0xff] }
 0x63c   :  { %6250 = vmatpush3.bf16.msra.mxu1 %v6611_v62 }
 0x63d   :  { %6251 = vmatprep.subr.bf16.mxu1 %v6612_v7  ;;  %v9351_v7 = vld [vmem:[#allocation30_spill] sm:$0xff] }
 0x640   :  { %6252 = vmatpush3.bf16.msra.mxu1 %v6613_v5 }
 0x641   :  { %6289 = vmatprep.subr.mxu1 %v9298_v43 }
 0x6ee   :  { %v4631_v35 = vpop.f32.mrb[20].mxu1 }
 0x6ef   :  { %v4710_v48 = vrot.slane %v4631_v35, %v9336_v2  ;;  %v4633_v51 = vpop.f32.mrb[21].mxu1  ;;  %v4742_v39 = vrot.slane %v4631_v35, %v9340_v57  ;;  %v9352_v35 = vld [vmem:[#allocation32_spill] sm:$0xff] }
 0x6f0   :  { %v4714_v0 = vrot.slane %v4633_v51, %v9336_v2  ;;  %v4746_v16 = vrot.slane %v4633_v51, %v9340_v57  ;;  %v9353_v51 = vld [vmem:[#allocation10_spill] sm:$0xff] }
 0x6f1   :  { %v4723_v29 = vmul.f32 %v4710_v48, %v9341_v31  ;;  %v4727_v23 = vmul.f32 %v4710_v48, %v9342_v19  ;;  %v4731_v32 = vmul.f32 %v4710_v48, %v9343_v46  ;;  %v4735_v21 = vmul.f32 %v4710_v48, %v9344_v6  ;;  %v9355_v31 = vld [vmem:[#allocation31_spill] sm:$0xff]  ;;  %v9356_v19 = vld [vmem:[#allocation34_spill] sm:$0xff] }
 0x6f2   :  { %v4724_v44 = vmul.f32 %v4714_v0, %v9345_v49  ;;  %v4728_v27 = vmul.f32 %v4714_v0, %v9346_v15  ;;  %v4732_v22 = vmul.f32 %v4714_v0, %v9347_v24  ;;  %v4736_v12 = vmul.f32 %v4714_v0, %v9348_v20  ;;  %v9354_v0 = vld [vmem:[#allocation28_spill] sm:$0xff] }
 0x6f3   :  { %v4755_v13 = vadd.f32 %v4742_v39, %v4723_v29  ;;  %v4759_v30 = vadd.f32 %v4742_v39, %v4727_v23  ;;  %v4763_v50 = vadd.f32 %v4742_v39, %v4731_v32  ;;  %v4767_v11 = vadd.f32 %v4742_v39, %v4735_v21 }
 0x6f4   :  { %v4756_v9 = vadd.f32 %v4746_v16, %v4724_v44  ;;  %v4760_v60 = vadd.f32 %v4746_v16, %v4728_v27  ;;  %v4764_v33 = vadd.f32 %v4746_v16, %v4732_v22  ;;  %v4768_v55 = vadd.f32 %v4746_v16, %v4736_v12 }
 0x6f5   :  { %v4771_v54 = vmax.f32 %v4755_v13, 0.0  ;;  %v4775_v53 = vmax.f32 %v4759_v30, 0.0  ;;  %v4779_v63 = vmax.f32 %v4763_v50, 0.0  ;;  %v4783_v37 = vmax.f32 %v4767_v11, 0.0 }
 0x6f6   :  { %v4702_v17 = vpop.f32.mrb[22].mxu1  ;;  %v4772_v40 = vmax.f32 %v4756_v9, 0.0  ;;  %v4776_v28 = vmax.f32 %v4760_v60, 0.0  ;;  %v4780_v4 = vmax.f32 %v4764_v33, 0.0  ;;  %v4784_v26 = vmax.f32 %v4768_v55, 0.0 }
 0x6f7   :  { %v4718_v47 = vrot.slane %v4702_v17, %v9336_v2  ;;  %v4750_v18 = vrot.slane %v4702_v17, %v9340_v57  ;;  %v4704_v58 = vpop.f32.mrb[23].mxu1  ;;  %v4787_v61 = vpack.c.bf16 %v4775_v53, %v4771_v54  ;;  %v4791_v3 = vpack.c.bf16 %v4783_v37, %v4779_v63 }
 0x6f8   :  { %v4722_v45 = vrot.slane %v4704_v58, %v9336_v2  ;;  %v4754_v56 = vrot.slane %v4704_v58, %v9340_v57  ;;  %v4788_v52 = vpack.c.bf16 %v4776_v28, %v4772_v40  ;;  %v4792_v1 = vpack.c.bf16 %v4784_v26, %v4780_v4  ;;  %v9362_v40 = vld [vmem:[#allocation5_spill] sm:$0xff] }
 0x6f9   :  { %v4725_v14 = vmul.f32 %v4718_v47, %v9349_v34  ;;  %v4729_v62 = vmul.f32 %v4718_v47, %v9350_v8  ;;  %v4733_v5 = vmul.f32 %v4718_v47, %v9351_v7  ;;  %v4737_v48 = vmul.f32 %v4718_v47, %v9352_v35 }
 0x6fa   :  { %5083 = vmatprep.mubr.bf16.mxu0 %v4788_v52  ;;  %v4726_v39 = vmul.f32 %v4722_v45, %v9353_v51  ;;  %v4730_v16 = vmul.f32 %v4722_v45, %v9354_v0  ;;  %v4734_v29 = vmul.f32 %v4722_v45, %v9355_v31  ;;  %v4738_v23 = vmul.f32 %v4722_v45, %v9356_v19 }
 0x6fb   :  { %v4757_v46 = vadd.f32 %v4750_v18, %v4725_v14  ;;  %v4761_v32 = vadd.f32 %v4750_v18, %v4729_v62  ;;  %5084 = vmatmul.mubr.bf16.vlgmr.msra.gmra.mrb[20].mxu0 %v4787_v61  ;;  %v4765_v6 = vadd.f32 %v4750_v18, %v4733_v5  ;;  %v4769_v21 = vadd.f32 %v4750_v18, %v4737_v48 }
 0x6fc   :  { %5091 = vmatprep.mubr.bf16.mxu0 %v4792_v1  ;;  %v4758_v49 = vadd.f32 %v4754_v56, %v4726_v39  ;;  %v4762_v44 = vadd.f32 %v4754_v56, %v4730_v16  ;;  %v4766_v15 = vadd.f32 %v4754_v56, %v4734_v29  ;;  %v4770_v27 = vadd.f32 %v4754_v56, %v4738_v23 }
 0x6fd   :  { %v4773_v24 = vmax.f32 %v4757_v46, 0.0  ;;  %v4777_v22 = vmax.f32 %v4761_v32, 0.0  ;;  %v4781_v20 = vmax.f32 %v4765_v6, 0.0  ;;  %v4785_v12 = vmax.f32 %v4769_v21, 0.0 }
 0x6fe   :  { %v4774_v13 = vmax.f32 %v4758_v49, 0.0  ;;  %v4778_v30 = vmax.f32 %v4762_v44, 0.0  ;;  %v4782_v50 = vmax.f32 %v4766_v15, 0.0  ;;  %v4786_v11 = vmax.f32 %v4770_v27, 0.0 }
 0x6ff   :  { %v4789_v9 = vpack.c.bf16 %v4777_v22, %v4773_v24  ;;  %v4793_v60 = vpack.c.bf16 %v4785_v12, %v4781_v20  ;;  %v8761_v54 = vadd.s32 3, %v6833_v41  ;;  %v8766_v53 = vadd.s32 6, %v6833_v41 }
 0x700   :  { %v4790_v33 = vpack.c.bf16 %v4778_v30, %v4774_v13  ;;  %v4794_v55 = vpack.c.bf16 %v4786_v11, %v4782_v50  ;;  %v5209_v63 = vadd.s32 9, %v6833_v41  ;;  %v5222_v37 = vadd.s32 12, %v6833_v41 }
 0x701   :  { %vm5185_vm3 = vcmp.eq.s32.totalorder %v6836_v42, %v8761_v54  ;;  %vm5198_vm11 = vcmp.eq.s32.totalorder %v6836_v42, %v8766_v53  ;;  %vm5186_vm10 = vcmp.eq.s32.totalorder %v6933_v36, %v8761_v54  ;;  %vm5187_vm4 = vcmp.eq.s32.totalorder %v6936_v59, %v8761_v54 }
 0x702   :  { %5132 = vmatprep.mubr.bf16.mxu1 %v4790_v33  ;;  %vm5191_vm6 = vmor %vm9357_vm13, %vm5185_vm3  ;;  %vm5211_vm15 = vcmp.eq.s32.totalorder %v6836_v42, %v5209_v63  ;;  %vm5224_vm0 = vcmp.eq.s32.totalorder %v6836_v42, %v5222_v37  ;;  %vm5199_vm9 = vcmp.eq.s32.totalorder %v6933_v36, %v8766_v53  ;;  %vm5200_vm14 = vcmp.eq.s32.totalorder %v6936_v59, %v8766_v53 }
 0x703   :  { %5133 = vmatmul.mubr.bf16.vlgmr.msra.gmra.mrb[24].mxu1 %v4789_v9  ;;  %5092 = vmatmul.mubr.bf16.gmra.mrb[24].mxu0 %v4791_v3  ;;  %vm5204_vm7 = vmor %vm5191_vm6, %vm5198_vm11  ;;  %vm5189_vm13 = vcmp.eq.s32.totalorder %v9362_v40, %v8761_v54  ;;  %vm5188_vm11 = vcmp.eq.s32.totalorder %v6990_v10, %v8761_v54  ;;  %v5235_v28 = vadd.s32 15, %v6833_v41  ;;  %v9365_v4 = vmov 0 }
 0x704   :  { %5140 = vmatprep.mubr.bf16.mxu1 %v4794_v55  ;;  %vm5217_vm8 = vmor %vm5204_vm7, %vm5211_vm15  ;;  %vm5212_vm15 = vcmp.eq.s32.totalorder %v6933_v36, %v5209_v63  ;;  %v5248_v26 = vadd.s32 18, %v6833_v41  ;;  %v9370_v47 = vmov 0  ;;  %v5261_v18 = vadd.s32 21, %v6833_v41 }
 0x705   :  { %vm5192_vm12 = vmor %vm9358_vm1, %vm5186_vm10  ;;  %vm9363_vm10 = vcmp.eq.s32.totalorder %v9362_v40, %v6833_v41  ;;  %vm9364_vm1 = vcmp.eq.s32.totalorder %v6990_v10, %v6833_v41  ;;  %v9375_v3 = vmov 0  ;;  %v5274_v45 = vadd.s32 24, %v6833_v41 }
 0x706   :  { %vm5193_vm5 = vmor %vm9359_vm2, %vm5187_vm4  ;;  %vm5213_vm2 = vcmp.eq.s32.totalorder %v6936_v59, %v5209_v63  ;;  %v5287_v56 = vadd.s32 27, %v6833_v41  ;;  %v9378_v52 = vmov 0  ;;  %v6642_v1 = vmov 1.0  }
 0x707   :  { %vm8791_vm3 = vmor %vm5217_vm8, %vm5224_vm0  ;;  %vm5202_vm8 = vcmp.eq.s32.totalorder %v9362_v40, %v8766_v53  ;;  %vm5237_vm0 = vcmp.eq.s32.totalorder %v6836_v42, %v5235_v28  ;;  %v9367_v42 = vmov 0  ;;  %v6643_v14 = vmov 0.0|0.0  }
 0x708   :  { %vm5205_vm6 = vmor %vm5192_vm12, %vm5199_vm9  ;;  %vm5201_vm9 = vcmp.eq.s32.totalorder %v6990_v10, %v8766_v53  ;;  %6422 = vmatprep.subr.bf16.mxu0 %v6643_v14  ;;  %v5300_v8 = vadd.s32 30, %v6833_v41  ;;  %v5313_v5 = vadd.s32 33, %v6833_v41  ;;  %v5326_v35 = vadd.s32 36, %v6833_v41 }
 0x709   :  { %vm5206_vm7 = vmor %vm5193_vm5, %vm5200_vm14  ;;  %v5339_v48 = vadd.s32 39, %v6833_v41  ;;  %v5352_v51 = vadd.s32 42, %v6833_v41  ;;  %v5365_v39 = vadd.s32 45, %v6833_v41 }
 0x70a   :  { %vm5195_vm4 = vmor %vm9363_vm10, %vm5189_vm13  ;;  %vm5215_vm13 = vcmp.eq.s32.totalorder %v9362_v40, %v5209_v63 }
 0x70b   :  { %5141 = vmatmul.mubr.bf16.gmra.mrb[28].mxu1 %v4793_v60  ;;  %vm5194_vm12 = vmor %vm9364_vm1, %vm5188_vm11  ;;  %vm5214_vm11 = vcmp.eq.s32.totalorder %v6990_v10, %v5209_v63 }
 0x70c   :  { %vm8813_vm5 = vmor %vm5205_vm6, %vm5212_vm15  ;;  %vm5226_vm15 = vcmp.eq.s32.totalorder %v6936_v59, %v5222_v37 }
 0x70d   :  { %v9366_v4 = vsel %vm8813_vm5, 4294967295, %v9365_v4  ;;  %vm5208_vm14 = vmor %vm5195_vm4, %vm5202_vm8  ;;  %vm5225_vm5 = vcmp.eq.s32.totalorder %v6933_v36, %v5222_v37  ;;  %vm5228_vm8 = vcmp.eq.s32.totalorder %v9362_v40, %v5222_v37 }
 0x70e   :  { %vm8820_vm10 = vmor %vm8791_vm3, %vm5237_vm0  ;;  %vm5227_vm3 = vcmp.eq.s32.totalorder %v6990_v10, %v5222_v37 }
 0x70f   :  { %v9368_v42 = vsel %vm8820_vm10, 4294967295, %v9367_v42  ;;  %vm5207_vm1 = vmor %vm5194_vm12, %vm5201_vm9  ;;  %vm5239_vm9 = vcmp.eq.s32.totalorder %v6936_v59, %v5235_v28  ;;  %vm9369_vm12 = vnez %v9366_v4 }
 0x710   :  { %vm5219_vm6 = vmor %vm5206_vm7, %vm5213_vm2 }
 0x711   :  { %vm5221_vm4 = vmor %vm5208_vm14, %vm5215_vm13  ;;  %vm5241_vm13 = vcmp.eq.s32.totalorder %v9362_v40, %v5235_v28 }
 0x712   :  { %vm5220_vm0 = vmor %vm5207_vm1, %vm5214_vm11  ;;  %vm5240_vm1 = vcmp.eq.s32.totalorder %v6990_v10, %v5235_v28 }
 0x713   :  { %vm5232_vm10 = vmor %vm5219_vm6, %vm5226_vm15  ;;  %vm5252_vm6 = vcmp.eq.s32.totalorder %v6936_v59, %v5248_v26 }
 0x714   :  { %vm8833_vm2 = vmor %vm9369_vm12, %vm5225_vm5  ;;  %vm5254_vm5 = vcmp.eq.s32.totalorder %v9362_v40, %v5248_v26 }
 0x715   :  { %v9371_v47 = vsel %vm8833_vm2, 4294967295, %v9370_v47  ;;  %vm5234_vm7 = vmor %vm5221_vm4, %vm5228_vm8  ;;  %vm5253_vm2 = vcmp.eq.s32.totalorder %v6990_v10, %v5248_v26  ;;  %vm9374_vm8 = vnez %v9368_v42 }
 0x716   :  { %vm5233_vm14 = vmor %vm5220_vm0, %vm5227_vm3  ;;  %v6062_v61 = vsel %vm9374_vm8, 1.0, %v9298_v43  ;;  %vm9380_vm8 = vnez %v9371_v47 }
 0x717   :  { %vm5245_vm11 = vmor %vm5232_vm10, %vm5239_vm9  ;;  %vm5267_vm10 = vcmp.eq.s32.totalorder %v9362_v40, %v5261_v18  ;;  %vm5184_vm9 = vcmp.eq.s32.totalorder %v6825_v38, %v8761_v54  ;;  %v6423_v34 = vpack.c.bf16 %v6062_v61, %v6642_v1 }
 0x718   :  { %vm5247_vm15 = vmor %vm5234_vm7, %vm5241_vm13  ;;  %vm9377_vm7 = vcmp.eq.s32.totalorder %v6825_v38, %v6833_v41 }
 0x719   :  { %vm5246_vm12 = vmor %vm5233_vm14, %vm5240_vm1  ;;  %vm5197_vm14 = vcmp.eq.s32.totalorder %v6825_v38, %v8766_v53  ;;  %vm5238_vm1 = vcmp.eq.s32.totalorder %v6933_v36, %v5235_v28 }
 0x71a   :  { %vm8843_vm4 = vmor %vm5245_vm11, %vm5252_vm6  ;;  %vm5251_vm6 = vcmp.eq.s32.totalorder %v6933_v36, %v5248_v26 }
 0x71b   :  { %vm5260_vm0 = vmor %vm5247_vm15, %vm5254_vm5  ;;  %vm6644_vm15 = vmmov 1  }
 0x71c   :  { %vm8851_vm3 = vmor %vm5246_vm12, %vm5253_vm2  ;;  %vm5264_vm12 = vcmp.eq.s32.totalorder %v6933_v36, %v5261_v18 }
 0x71d   :  { %v9376_v3 = vsel %vm8851_vm3, 4294967295, %v9375_v3  ;;  %vm5190_vm13 = vmor %vm9377_vm7, %vm5184_vm9  ;;  %vm5278_vm7 = vcmp.eq.s32.totalorder %v6936_v59, %v5274_v45 }
 0x71e   :  { %vm8865_vm2 = vmor %vm5260_vm0, %vm5267_vm10  ;;  %vm5265_vm10 = vcmp.eq.s32.totalorder %v6936_v59, %v5261_v18 }
 0x71f   :  { %v9379_v52 = vsel %vm8865_vm2, 4294967295, %v9378_v52  ;;  %vm5203_vm11 = vmor %vm5190_vm13, %vm5197_vm14  ;;  %vm5291_vm14 = vcmp.eq.s32.totalorder %v6936_v59, %v5287_v56 }
 0x720   :  { %vm6424_vm5 = vmpackc.low %vm6644_vm15, %vm5203_vm11  ;;  %vm5304_vm15 = vcmp.eq.s32.totalorder %v6936_v59, %v5300_v8 }
 0x721   :  { %6425 = vmatpush3.bf16.msk.msra.mxu0 %vm6424_vm5, %v6423_v34  ;;  %vm5244_vm0 = vmor %vm9380_vm8, %vm5238_vm1  ;;  %vm5266_vm5 = vcmp.eq.s32.totalorder %v6990_v10, %v5261_v18  ;;  %vm5279_vm1 = vcmp.eq.s32.totalorder %v6990_v10, %v5274_v45 }
 0x722   :  { %6426 = vmatprep.subr.bf16.mxu0 %v6643_v14  ;;  %vm5257_vm9 = vmor %vm5244_vm0, %vm5251_vm6  ;;  %vm5280_vm6 = vcmp.eq.s32.totalorder %v9362_v40, %v5274_v45  ;;  %vm6645_vm0 = vmmov 0  }
 0x723   :  { %vm5270_vm13 = vmor %vm5257_vm9, %vm5264_vm12  ;;  %6286 = vmatprep.mubr.msk.f32.mxu0 %vm6645_vm0, %v9298_v43  ;;  %6291 = vmatprep.mubr.msk.f32.mxu1 %vm6645_vm0, %v9298_v43  ;;  %vm5293_vm9 = vcmp.eq.s32.totalorder %v9362_v40, %v5287_v56 }
 0x724   :  { %vm5271_vm11 = vmor %vm8843_vm4, %vm5265_vm10  ;;  %v6063_v36 = vsel %vm5270_vm13, 1.0, %v9298_v43  ;;  %vm9381_vm4 = vnez %v9376_v3  ;;  %vm5292_vm10 = vcmp.eq.s32.totalorder %v6990_v10, %v5287_v56  ;;  %vm5305_vm13 = vcmp.eq.s32.totalorder %v6990_v10, %v5300_v8 }
 0x725   :  { %vm5284_vm2 = vmor %vm5271_vm11, %vm5278_vm7  ;;  %vm5306_vm11 = vcmp.eq.s32.totalorder %v9362_v40, %v5300_v8 }
 0x726   :  { %vm5297_vm3 = vmor %vm5284_vm2, %vm5291_vm14 }
 0x727   :  { %vm5310_vm8 = vmor %vm5297_vm3, %vm5304_vm15  ;;  %vm9382_vm3 = vnez %v9379_v52 }
 0x728   :  { %v6064_v62 = vsel %vm5310_vm8, 1.0, %v9298_v43  ;;  %vm5272_vm12 = vmor %vm9381_vm4, %vm5266_vm5  ;;  %vm5318_vm5 = vcmp.eq.s32.totalorder %v6990_v10, %v5313_v5  ;;  %vm5319_vm8 = vcmp.eq.s32.totalorder %v9362_v40, %v5313_v5 }
 0x729   :  { %v6427_v7 = vpack.c.bf16 %v6064_v62, %v6063_v36  ;;  %vm5285_vm2 = vmor %vm5272_vm12, %vm5279_vm1  ;;  %vm5332_vm12 = vcmp.eq.s32.totalorder %v9362_v40, %v5326_v35 }
 0x72a   :  { %vm5286_vm7 = vmor %vm9382_vm3, %vm5280_vm6  ;;  %vm5331_vm6 = vcmp.eq.s32.totalorder %v6990_v10, %v5326_v35  ;;  %vm5345_vm3 = vcmp.eq.s32.totalorder %v9362_v40, %v5339_v48 }
 0x72b   :  { %6428 = vmatpush3.bf16.msra.mxu0 %v6427_v7  ;;  %vm5298_vm14 = vmor %vm5285_vm2, %vm5292_vm10  ;;  %vm5344_vm2 = vcmp.eq.s32.totalorder %v6990_v10, %v5339_v48 }
 0x72c   :  { %6429 = vmatprep.subr.bf16.mxu0 %v6643_v14  ;;  %vm5299_vm15 = vmor %vm5286_vm7, %vm5293_vm9 }
 0x72d   :  { %vm5311_vm1 = vmor %vm5298_vm14, %vm5305_vm13  ;;  %vm5358_vm13 = vcmp.eq.s32.totalorder %v9362_v40, %v5352_v51 }
 0x72e   :  { %vm5312_vm0 = vmor %vm5299_vm15, %vm5306_vm11  ;;  %vm5371_vm11 = vcmp.eq.s32.totalorder %v9362_v40, %v5365_v39 }
 0x72f   :  { %vm5324_vm4 = vmor %vm5311_vm1, %vm5318_vm5 }
 0x730   :  { %vm5325_vm10 = vmor %vm5312_vm0, %vm5319_vm8  ;;  %vm5151_vm8 = vcmask 392192   ;;  %vm9383_vm0 = vcmask 1040384  }
 0x731   :  { %vm5337_vm9 = vmor %vm5324_vm4, %vm5331_vm6  ;;  %vm9384_vm4 = vcmp.eq.s32.totalorder %v6833_v41, %v6825_v38 }
 0x732   :  { %vm5338_vm7 = vmor %vm5325_vm10, %vm5332_vm12 }
 0x733   :  { %vm5350_vm14 = vmor %vm5337_vm9, %vm5344_vm2 }
 0x734   :  { %vm5351_vm15 = vmor %vm5338_vm7, %vm5345_vm3  ;;  %v6065_v0 = vsel %vm5350_vm14, 1.0, %v9298_v43 }
 0x735   :  { %vm5364_vm1 = vmor %vm5351_vm15, %vm5358_vm13 }
 0x736   :  { %vm5377_vm5 = vmor %vm5364_vm1, %vm5371_vm11 }
 0x737   :  { %v6066_v16 = vsel %vm5377_vm5, 1.0, %v9298_v43 }
 0x738   :  { %v6430_v31 = vpack.c.bf16 %v6066_v16, %v6065_v0 }
 0x73a   :  { %6431 = vmatpush3.bf16.msra.mxu0 %v6430_v31 }
 0x7ce   :  { %v6225_v29 = vpop.f32.mrb[20].mxu0 }
 0x7cf   :  { %v6226_v10 = vpop.f32.mrb[21].mxu0 }
 0x7d0   :  { %v6227_v19 = vadd.f32 %v6226_v10, %v6225_v29  ;;  %v6228_v23 = vpop.f32.mrb[22].mxu0 }
 0x7d1   :  { %v6229_v46 = vpop.f32.mrb[23].mxu0 }
 0x7d2   :  { %v6230_v32 = vadd.f32 %v6229_v46, %v6228_v23  ;;  %v5502_v23 = vadd.s32 6, %v6825_v38  ;;  %v5505_v46 = vadd.s32 9, %v6825_v38 }
 0x7d4   :  { %vm5503_vm10 = vcmp.eq.s32.totalorder %v6833_v41, %v5502_v23  ;;  %vm5506_vm9 = vcmp.eq.s32.totalorder %v6833_v41, %v5505_v46 }
 0x7d6   :  { %v6253_v6 = vpop.f32.mrb[24].mxu1  ;;  %v6231_v21 = vpop.f32.mrb[24].mxu0 }
 0x7d7   :  { %v6254_v49 = vpop.f32.mrb[25].mxu1  ;;  %v6232_v44 = vpop.f32.mrb[25].mxu0 }
 0x7d8   :  { %v6255_v15 = vadd.f32 %v6254_v49, %v6253_v6  ;;  %v6233_v27 = vadd.f32 %v6232_v44, %v6231_v21  ;;  %v6256_v24 = vpop.f32.mrb[26].mxu1  ;;  %v6234_v22 = vpop.f32.mrb[26].mxu0  ;;  %v5511_v6 = vadd.s32 15, %v6825_v38  ;;  %v5514_v21 = vadd.s32 18, %v6825_v38 }
 0x7d9   :  { %v6257_v20 = vpop.f32.mrb[27].mxu1  ;;  %v6235_v12 = vpop.f32.mrb[27].mxu0  ;;  %v5517_v49 = vadd.s32 21, %v6825_v38  ;;  %v5521_v44 = vadd.s32 27, %v6825_v38 }
 0x7da   :  { %v8910_v13 = vadd.f32 %v6255_v15, %v6227_v19  ;;  %v6258_v30 = vadd.f32 %v6257_v20, %v6256_v24  ;;  %v6236_v50 = vadd.f32 %v6235_v12, %v6234_v22  ;;  %v5499_v19 = vadd.s32 3, %v6825_v38 }
 0x7db   :  { %vm5512_vm14 = vcmp.eq.s32.totalorder %v6833_v41, %v5511_v6  ;;  %vm5515_vm15 = vcmp.eq.s32.totalorder %v6833_v41, %v5514_v21  ;;  %vm5518_vm5 = vcmp.eq.s32.totalorder %v6833_v41, %v5517_v49  ;;  %v5524_v15 = vadd.s32 30, %v6825_v38 }
 0x7dc   :  { %v8912_v11 = vadd.f32 %v6258_v30, %v6230_v32  ;;  %v5165_v55 = vmul.f32 %v8910_v13, %v8910_v13  ;;  %v5152_v17 = vsel %vm5151_vm8, %v8910_v13, 0.0  ;;  %vm5500_vm6 = vcmp.eq.s32.totalorder %v6833_v41, %v5499_v19 }
 0x7dd   :  { %vm5501_vm12 = vmor %vm9384_vm4, %vm5500_vm6  ;;  %v5508_v32 = vadd.s32 12, %v6825_v38  ;;  %vm9385_vm6 = vcmp.eq.s32.totalorder %v6833_v41, %v6936_v59  ;;  %v5530_v24 = vadd.s32 36, %v6825_v38  ;;  %v5533_v22 = vadd.s32 39, %v6825_v38 }
 0x7de   :  { %v5166_v9 = vmul.f32 %v8912_v11, %v8912_v11  ;;  %v6259_v60 = vpop.f32.mrb[28].mxu1  ;;  %v5153_v54 = vsel %vm5151_vm8, %v8912_v11, 0.0  ;;  %v5169_v26 = vsel %vm5151_vm8, %v5165_v55, 0.0  ;;  %vm5504_vm2 = vmor %vm5501_vm12, %vm5503_vm10  ;;  %vm5522_vm12 = vcmp.eq.s32.totalorder %v6833_v41, %v5521_v44 }
 0x7df   :  { %v6260_v33 = vpop.f32.mrb[29].mxu1  ;;  %v5154_v42 = vadd.f32 %v5153_v54, %v5152_v17  ;;  %vm5507_vm3 = vmor %vm5504_vm2, %vm5506_vm9  ;;  %vm5509_vm7 = vcmp.eq.s32.totalorder %v6833_v41, %v5508_v32  ;;  %vm5525_vm2 = vcmp.eq.s32.totalorder %v6833_v41, %v5524_v15  ;;  %v5536_v59 = vadd.s32 42, %v6825_v38 }
 0x7e0   :  { %v6261_v53 = vadd.f32 %v6260_v33, %v6259_v60  ;;  %v6262_v63 = vpop.f32.mrb[30].mxu1  ;;  %v5170_v40 = vsel %vm5151_vm8, %v5166_v9, 0.0  ;;  %vm5510_vm13 = vmor %vm5507_vm3, %vm5509_vm7  ;;  %v5539_v20 = vadd.s32 45, %v6825_v38 }
 0x7e1   :  { %v6263_v37 = vpop.f32.mrb[31].mxu1  ;;  %v5171_v61 = vadd.f32 %v5170_v40, %v5169_v26  ;;  %vm5513_vm11 = vmor %vm5510_vm13, %vm5512_vm14  ;;  %vm5531_vm13 = vcmp.eq.s32.totalorder %v6833_v41, %v5530_v24  ;;  %v5150_v40 = vld [vmem:[%s9019_s12] sm:$0x1] }
 0x7e2   :  { %v8923_v28 = vadd.f32 %v6261_v53, %v6233_v27  ;;  %v6264_v4 = vadd.f32 %v6263_v37, %v6262_v63  ;;  %vm5516_vm1 = vmor %vm5513_vm11, %vm5515_vm15  ;;  %v5527_v27 = vadd.s32 33, %v6825_v38  ;;  %vm5534_vm11 = vcmp.eq.s32.totalorder %v6833_v41, %v5533_v22 }
 0x7e4   :  { %v5155_v47 = vsel %vm5151_vm8, %v8923_v28, 0.0  ;;  %v5167_v18 = vmul.f32 %v8923_v28, %v8923_v28  ;;  %v8930_v58 = vadd.f32 %v6264_v4, %v6236_v50  ;;  %vm5528_vm3 = vcmp.eq.s32.totalorder %v6833_v41, %v5527_v27 }
 0x7e5   :  { %v5156_v3 = vadd.f32 %v5155_v47, %v5154_v42 }
 0x7e6   :  { %v5172_v45 = vsel %vm5151_vm8, %v5167_v18, 0.0  ;;  %v5157_v56 = vsel %vm5151_vm8, %v8930_v58, 0.0  ;;  %v5168_v52 = vmul.f32 %v8930_v58, %v8930_v58 }
 0x7e7   :  { %v5173_v1 = vadd.f32 %v5172_v45, %v5171_v61  ;;  %v5158_v34 = vadd.f32 %v5157_v56, %v5156_v3 }
 0x7e8   :  { %v5174_v14 = vsel %vm5151_vm8, %v5168_v52, 0.0 }
 0x7e9   :  { %v5159_v8 = vrot.slane %v5158_v34, 4  ;;  %v5175_v36 = vadd.f32 %v5174_v14, %v5173_v1 }
 0x7eb   :  { %v5160_v62 = vadd.f32 %v5159_v8, %v5158_v34  ;;  %v5176_v7 = vrot.slane %v5175_v36, 4 }
 0x7ed   :  { %v5161_v5 = vrot.slane %v5160_v62, 2  ;;  %v5177_v35 = vadd.f32 %v5176_v7, %v5175_v36 }
 0x7ef   :  { %v5162_v48 = vadd.f32 %v5161_v5, %v5160_v62  ;;  %v5178_v51 = vrot.slane %v5177_v35, 2 }
 0x7f1   :  { %v5163_v39 = vrot.slane %v5162_v48, 1  ;;  %v5179_v0 = vadd.f32 %v5178_v51, %v5177_v35 }
 0x7f3   :  { %v5180_v16 = vrot.slane %v5179_v0, 1  ;;  %v5164_v31 = vadd.f32 %v5163_v39, %v5162_v48 }
 0x7f5   :  { %v5181_v29 = vadd.f32 %v5180_v16, %v5179_v0 }
 0x7f7   :  { %v5182_v10 = vsel %vm9383_vm0, %v5164_v31, %v5181_v29  ;;  %vm5519_vm0 = vmor %vm5516_vm1, %vm5518_vm5  ;;  %vm5537_vm1 = vcmp.eq.s32.totalorder %v6833_v41, %v5536_v59 }
 0x7f8   :  { %6287 = vmatmul.mubr.msk.f32.vlgmr.msra.gmra.mrb[28].mxu0 %vm5151_vm8, %v5182_v10  ;;  %vm5520_vm4 = vmor %vm5519_vm0, %vm9385_vm6  ;;  %vm5540_vm0 = vcmp.eq.s32.totalorder %v6833_v41, %v5539_v20  ;;  %v5149_v41 = vld [vmem:[%s9018_s11] sm:$0x1] }
 0x7f9   :  { %vm5523_vm10 = vmor %vm5520_vm4, %vm5522_vm12  ;;  %vm5548_vm4 = vcmask 1042432   ;;  %vm5544_vm12 = vcmask 23552  }
 0x7fa   :  { %vm5526_vm9 = vmor %vm5523_vm10, %vm5525_vm2  ;;  %vm9386_vm10 = vcmask 1040384  }
 0x7fb   :  { %vm5529_vm7 = vmor %vm5526_vm9, %vm5528_vm3 }
 0x7fc   :  { %vm5532_vm14 = vmor %vm5529_vm7, %vm5531_vm13 }
 0x7fd   :  { %vm5535_vm15 = vmor %vm5532_vm14, %vm5534_vm11 }
 0x7fe   :  { %vm5538_vm5 = vmor %vm5535_vm15, %vm5537_vm1 }
 0x7ff   :  { %vm5541_vm6 = vmor %vm5538_vm5, %vm5540_vm0 }
 0x800   :  { %v6069_v12 = vsel %vm5541_vm6, 1.0, %v9298_v43 }
 0x801   :  { %6290 = vmatpush3.msk.msra.mxu1 %vm5548_vm4, %v6069_v12 }
 0x8cb   :  { %v5459_v30 = vpop.f32.mrb[28].mxu0 }
 0x8cc   :  { %v5463_v50 = vmul.f32 0.001953125, %v5459_v30  ;;  %v6288_v9 = vpop.f32.mrb[29].mxu0 }
 0x8ce   :  { %v5464_v60 = vmul.f32 %v5463_v50, %v5463_v50 }
 0x8d0   :  { %v5466_v33 = vrot.slane %v5464_v60, 7 }
 0x8d2   :  { %v5468_v55 = vsub.f32 %v5463_v50, %v5466_v33 }
 0x8d4   :  { %v5469_v54 = vmax.f32 %v5468_v55, 0.0 }
 0x8d6   :  { %v5470_v53 = vadd.f32 1e-05, %v5469_v54 }
 0x8d8   :  { %6620 = vrsqrt.f32 %v5470_v53 }
 0x8e2   :  { %v6621_v38 = vpop.eup %6620 }
 0x8e3   :  { %v5479_v63 = vrot.slane %v6621_v38, %v9329_v25 }
 0x8e5   :  { %v5480_v37 = vcombine.high %v5479_v63, %v5479_v63 }
 0x8e7   :  { %v5487_v43 = vrot.slane %v5480_v37, %v9329_v25 }
 0x8e9   :  { %v5489_v17 = vmul.f32 %v5487_v43, %v5149_v41 }
 0x8eb   :  { %v5490_v4 = vmul.f32 %v5489_v17, %v5463_v50 }
 0x8ed   :  { %v5491_v42 = vsub.f32 %v5150_v40, %v5490_v4 }
 0x8ef   :  { %v5496_v26 = vrot.slane %v5491_v42, %v9336_v2 }
 0x8f1   :  { %v5498_v47 = vsel %vm9386_vm10, %v5489_v17, %v5496_v26 }
 0x8f2   :  { %6292 = vmatmul.mubr.msk.f32.vlgmr.msra.gmra.mrb[32].mxu1 %vm5544_vm12, %v5498_v47 }
 0x9c5   :  { %v5618_v18 = vpop.f32.mrb[32].mxu1 }
 0x9c6   :  { %v5625_v61 = vrot.slane %v5618_v18, %v9336_v2  ;;  %v6293_v3 = vpop.f32.mrb[33].mxu1  ;;  %v5633_v45 = vrot.slane %v5618_v18, %v9340_v57 }
 0x9c8   :  { %v5626_v25 = vmul.f32 %v5625_v61, %v8910_v13  ;;  %v5627_v56 = vmul.f32 %v5625_v61, %v8912_v11  ;;  %v5628_v52 = vmul.f32 %v5625_v61, %v8923_v28  ;;  %v5629_v1 = vmul.f32 %v5625_v61, %v8930_v58 }
 0x9ca   :  { %v5634_v34 = vadd.f32 %v5633_v45, %v5626_v25  ;;  %v5635_v14 = vadd.f32 %v5633_v45, %v5627_v56  ;;  %v5636_v8 = vadd.f32 %v5633_v45, %v5628_v52  ;;  %v5637_v36 = vadd.f32 %v5633_v45, %v5629_v1 }
 0x9cc   :  { %v6072_v62 = vmul.f32 -1.442695, %v5634_v34  ;;  %v6073_v7 = vmul.f32 -1.442695, %v5635_v14  ;;  %v6074_v5 = vmul.f32 -1.442695, %v5636_v8 }
 0x9cd   :  { %v6075_v35 = vmul.f32 -1.442695, %v5637_v36 }
 0x9ce   :  { %6622 = vpow2.f32 %v6072_v62 }
 0x9cf   :  { %6624 = vpow2.f32 %v6073_v7 }
 0x9d0   :  { %6626 = vpow2.f32 %v6074_v5 }
 0x9d1   :  { %6628 = vpow2.f32 %v6075_v35 }
 0x9d8   :  { %v6623_v2 = vpop.eup %6622 }
 0x9d9   :  { %v6625_v57 = vpop.eup %6624  ;;  %v5650_v13 = vadd.f32 1.0, %v6623_v2 }
 0x9da   :  { %v6627_v11 = vpop.eup %6626  ;;  %v5651_v48 = vadd.f32 1.0, %v6625_v57 }
 0x9db   :  { %v6629_v28 = vpop.eup %6628  ;;  %v5652_v51 = vadd.f32 1.0, %v6627_v11  ;;  %6630 = vrcp.f32 %v5650_v13 }
 0x9dc   :  { %v5653_v58 = vadd.f32 1.0, %v6629_v28  ;;  %6632 = vrcp.f32 %v5651_v48 }
 0x9dd   :  { %6634 = vrcp.f32 %v5652_v51 }
 0x9de   :  { %6636 = vrcp.f32 %v5653_v58 }
 0x9e5   :  { %v6631_v39 = vpop.eup %6630 }
 0x9e6   :  { %v6633_v0 = vpop.eup %6632  ;;  %5662 = vst.msk [vmem:[%s9020_s13] sm:$0xff] %vm5151_vm8, %v6631_v39 }
 0x9e7   :  { %v6635_v16 = vpop.eup %6634  ;;  %5663 = vst.msk [vmem:[%s9020_s13 + $0x8] sm:$0xff] %vm5151_vm8, %v6633_v0 }
 0x9e8   :  { %v6637_v31 = vpop.eup %6636  ;;  %5664 = vst.msk [vmem:[%s9020_s13 + $0x10] sm:$0xff] %vm5151_vm8, %v6635_v16 }
 0x9e9   :  { %5665 = vst.msk [vmem:[%s9020_s13 + $0x18] sm:$0xff] %vm5151_vm8, %v6637_v31 }

</bundles_post_ra>
